<compile_context>
chip_gen: v7x
topology: tpu7x:2x2x1
jax: 0.10.0
libtpu: 0.0.40
codegen_flags: <defaults>
</compile_context>

<pallas_src>
import functools

import jax
import jax.numpy as jnp
from jax.experimental import pallas as pl
from jax.experimental.pallas import tpu as pltpu


# ----------------------------- config ---------------------------------------
class Cfg:
    pass


cfgs = Cfg()
cfgs.word_emb_size = 32
cfgs.hidden_size = 32
cfgs.flat_mlp_size = 16
cfgs.flat_out_size = 32          # == hidden_size so elementwise fusions line up
cfgs.flat_glimpses = 1
cfgs.max_que_token = 8
cfgs.max_opt_token = 8
cfgs.max_dq_ans = 4
cfgs.max_sent = 4
cfgs.max_sent_token = 8
cfgs.span_width = 2
cfgs.p_times = 2                 # = span_width   (so pooled span feat dim == hidden)
cfgs.k_times = 3                 # = span_width+1 (so pooled que+evi feat dim == hidden)
TOKEN_SIZE = 50
PATCH = 8
INV_LN2 = 1.4426950408889634     # 1 / ln(2)

VMEM_FULL = functools.partial(pl.BlockSpec, memory_space=pltpu.MemorySpace.VMEM)


# ------------------- fused GRU + FlattenAtt encoder kernel -------------------
def _encode_kernel(x_ref, mask_ref, wih_ref, whh_ref, bih_ref, bhh_ref,
                   w1_ref, b1_ref, w2_ref, b2_ref, wm_ref, bm_ref,
                   seq_ref, flat_ref, *, seq_len, hidden):
    """x_ref: (T, N, E) time-major; outputs: seq (T, N, H), flat (N, F)."""
    n = x_ref.shape[1]
    wih = wih_ref[...]            # (E, 3H) gates stacked [r | z | n]
    whh = whh_ref[...]            # (H, 3H)
    bih = bih_ref[...]            # (1, 3H)
    bhh = bhh_ref[...]            # (1, 3H)
    w1 = w1_ref[...]              # (H, M)
    b1 = b1_ref[...]              # (1, M)
    w2 = w2_ref[...]              # (M, 1)
    b2 = b2_ref[...]              # (1, 1)

    h = jnp.zeros((n, hidden), jnp.float32)
    h_list = []
    s_list = []
    # Static Python loop over T=8: single launch, hidden state carried in vregs.
    for t in range(seq_len):
        x_t = x_ref[t]                                                   # (N, E)
        gi = jnp.dot(x_t, wih, preferred_element_type=jnp.float32) + bih  # (N, 3H)
        gh = jnp.dot(h, whh, preferred_element_type=jnp.float32) + bhh    # (N, 3H)
        r = jax.nn.sigmoid(gi[:, 0:hidden] + gh[:, 0:hidden])
        z = jax.nn.sigmoid(gi[:, hidden:2 * hidden] + gh[:, hidden:2 * hidden])
        ng = jnp.tanh(gi[:, 2 * hidden:3 * hidden] + r * gh[:, 2 * hidden:3 * hidden])
        h = (1.0 - z) * ng + z * h                                        # (N, H)
        seq_ref[t] = h
        # FlattenAtt score MLP on this step's hidden state (stays in vregs).
        a1 = jnp.dot(h, w1, preferred_element_type=jnp.float32) + b1
        s_t = jnp.dot(a1, w2, preferred_element_type=jnp.float32) + b2    # (N, 1)
        h_list.append(h)
        s_list.append(s_t)

    scores = jnp.concatenate(s_list, axis=1)                              # (N, T)
    mask = mask_ref[...]                                                  # (N, T) 1.0 = pad
    scores = jnp.where(mask > 0.5, -1e9, scores)
    scores = scores - jnp.max(scores, axis=1, keepdims=True)
    e = jnp.exp(scores)
    att = e * pl.reciprocal(jnp.sum(e, axis=1, keepdims=True), approx=False)

    pooled = jnp.zeros((n, hidden), jnp.float32)
    for t in range(seq_len):
        pooled = pooled + att[:, t:t + 1] * h_list[t]

    flat_ref[...] = (jnp.dot(pooled, wm_ref[...], preferred_element_type=jnp.float32)
                     + bm_ref[...])


def encode(x, pad_mask, params):
    """x: (N, T, E), pad_mask: (N, T) 1.0=pad -> (seq (T,N,H), flat (N,F))."""
    n, t, e = x.shape
    h = cfgs.hidden_size
    f = cfgs.flat_out_size
    x_tm = jnp.transpose(x, (1, 0, 2))
    seq, flat = pl.pallas_call(
        functools.partial(_encode_kernel, seq_len=t, hidden=h),
        out_shape=(jax.ShapeDtypeStruct((t, n, h), jnp.float32),
                   jax.ShapeDtypeStruct((n, f), jnp.float32)),
        in_specs=[VMEM_FULL()] * 12,
        out_specs=(VMEM_FULL(), VMEM_FULL()),
    )(x_tm, pad_mask.astype(jnp.float32),
      params["gru_wih"], params["gru_whh"], params["gru_bih"], params["gru_bhh"],
      params["fa_w1"], params["fa_b1"], params["fa_w2"], params["fa_b2"],
      params["fa_wm"], params["fa_bm"])
    return seq, flat


# ------------- fused score_lang + sigmoid + binary entropy kernel ------------
def _score_kernel(x_ref, w1_ref, b1_ref, w2_ref, b2_ref, p_ref, ent_ref):
    h1 = jnp.dot(x_ref[...], w1_ref[...], preferred_element_type=jnp.float32) + b1_ref[...]
    logit = jnp.dot(h1, w2_ref[...], preferred_element_type=jnp.float32) + b2_ref[...]
    p = jax.nn.sigmoid(logit)
    # Clamp to avoid 0*log(0)=NaN when the sigmoid saturates in f32.
    pc = jnp.clip(p, 1e-7, 1.0 - 1e-7)
    ent = -(pc * jnp.log(pc) + (1.0 - pc) * jnp.log(1.0 - pc)) * INV_LN2
    p_ref[...] = p
    ent_ref[...] = ent


def score_lang_entropy(x2d, params):
    """x2d: (R, H) -> (p (R,1), entropy (R,1)) for MLP([H, flat_mlp, 1], act='')."""
    r = x2d.shape[0]
    return pl.pallas_call(
        _score_kernel,
        out_shape=(jax.ShapeDtypeStruct((r, 1), jnp.float32),
                   jax.ShapeDtypeStruct((r, 1), jnp.float32)),
        in_specs=[VMEM_FULL()] * 5,
        out_specs=(VMEM_FULL(), VMEM_FULL()),
    )(x2d, params["sl_w1"], params["sl_b1"], params["sl_w2"], params["sl_b2"])


# ----------------------------- SimCLR-lite kernel ----------------------------
def _simclr_kernel(x_ref, w1_ref, b1_ref, w2_ref, b2_ref, o_ref, *, n_img, n_patch):
    h1 = jnp.dot(x_ref[...], w1_ref[...], preferred_element_type=jnp.float32) + b1_ref[...]
    h1 = jnp.maximum(h1, 0.0)                                          # (n_img*n_patch, 2H)
    pooled = jnp.concatenate(
        [jnp.mean(h1[i * n_patch:(i + 1) * n_patch, :], axis=0, keepdims=True)
         for i in range(n_img)], axis=0)                               # (n_img, 2H)
    o_ref[...] = (jnp.dot(pooled, w2_ref[...], preferred_element_type=jnp.float32)
                  + b2_ref[...])


def simclr_forward(dia, params):
    # TODO(synk): pretrained ResNet/SimCLR backbone replaced by a deterministic
    # patch-projection encoder (fused Pallas matmuls); output dim = 2*hidden_size.
    b, c, hh, ww = dia.shape
    p = PATCH
    n_patch = (hh // p) * (ww // p)
    x = dia.reshape(b, c, hh // p, p, ww // p, p)
    x = jnp.transpose(x, (0, 2, 4, 1, 3, 5)).reshape(b * n_patch, c * p * p)
    return pl.pallas_call(
        functools.partial(_simclr_kernel, n_img=b, n_patch=n_patch),
        out_shape=jax.ShapeDtypeStruct((b, 2 * cfgs.hidden_size), jnp.float32),
        in_specs=[VMEM_FULL()] * 5,
        out_specs=VMEM_FULL(),
    )(x, params["simclr_w1"], params["simclr_b1"], params["simclr_w2"], params["simclr_b2"])


# ------------------------ BAN-style fusion kernel ----------------------------
def _ban_kernel(q_ref, v_ref, wq_ref, wv_ref, wo_ref, o_ref, *, n_batch):
    """q: (B, T, H), v: (B, 2H) -> mean over T of (q + residual update): (B, H)."""
    wq = wq_ref[...]
    wv = wv_ref[...]
    wo = wo_ref[...]
    outs = []
    for bi in range(n_batch):
        q_b = q_ref[bi]                                                    # (T, H)
        hq = jnp.dot(q_b, wq, preferred_element_type=jnp.float32)          # (T, H)
        hv = jnp.dot(v_ref[bi:bi + 1, :], wv, preferred_element_type=jnp.float32)  # (1, H)
        logits = jnp.sum(hq * hv, axis=-1, keepdims=True)                  # (T, 1)
        logits = logits - jnp.max(logits, axis=0, keepdims=True)
        e = jnp.exp(logits)
        att = e * pl.reciprocal(jnp.sum(e, axis=0, keepdims=True), approx=False)
        joint = jnp.sum(att * hq, axis=0, keepdims=True) * hv              # (1, H)
        upd = jnp.dot(joint, wo, preferred_element_type=jnp.float32)       # (1, H)
        outs.append(jnp.mean(q_b, axis=0, keepdims=True) + upd)            # mean_T(q) + upd
    o_ref[...] = jnp.concatenate(outs, axis=0)


def ban_backbone(q_feat, dia_feat, params):
    """Simplified single-glimpse bilinear fusion, fused with the .mean(1): (B,T,H),(B,2H)->(B,H)."""
    b, t, h = q_feat.shape
    return pl.pallas_call(
        functools.partial(_ban_kernel, n_batch=b),
        out_shape=jax.ShapeDtypeStruct((b, h), jnp.float32),
        in_specs=[VMEM_FULL()] * 5,
        out_specs=VMEM_FULL(),
    )(q_feat, dia_feat, params["ban_wq"], params["ban_wv"], params["ban_wo"])


# ----------------------------- classifier kernel -----------------------------
def _classifier_kernel(x_ref, w1_ref, b1_ref, w2_ref, b2_ref, o_ref):
    h1 = jnp.dot(x_ref[...], w1_ref[...], preferred_element_type=jnp.float32) + b1_ref[...]
    h1 = jnp.maximum(h1, 0.0)
    o_ref[...] = jnp.dot(h1, w2_ref[...], preferred_element_type=jnp.float32) + b2_ref[...]


def classifier(x2d, params):
    r = x2d.shape[0]
    return pl.pallas_call(
        _classifier_kernel,
        out_shape=jax.ShapeDtypeStruct((r, 1), jnp.float32),
        in_specs=[VMEM_FULL()] * 5,
        out_specs=VMEM_FULL(),
    )(x2d, params["cls_w1"], params["cls_b1"], params["cls_w2"], params["cls_b2"])


# ----------------------------- glue helpers ----------------------------------
def avg_pool_last(x, k):
    # torch.nn.AvgPool1d(k, stride=k) on (N, C, L): pool the last dim in groups of k.
    b, c, l = x.shape
    return x.reshape(b, c, l // k, k).mean(axis=-1)


def get_span_feat(cp_feat, span_width):
    # TODO(synk): original get_span_feat not available; spans are enumerated as
    # (start sentence, width 1..span_width) — consistent with cp_sent_mask layout —
    # and represented by the concat of start/end sentence features.
    b, s, h = cp_feat.shape
    starts = jnp.repeat(jnp.arange(s), span_width)
    offs = jnp.tile(jnp.arange(span_width), s)
    ends = jnp.minimum(starts + offs, s - 1)
    return jnp.concatenate([cp_feat[:, starts, :], cp_feat[:, ends, :]], axis=-1)


# ----------------------------- full forward ----------------------------------
def net_forward(params, que_ix, opt_ix, dia, ins_dia, cp_ix):
    del ins_dia  # unused in the original forward as well
    b = que_ix.shape[0]
    h = cfgs.hidden_size
    a = cfgs.max_dq_ans
    s = cfgs.max_sent

    # --- one fused GRU + FlattenAtt pass over all sequences -------------------
    opt_ix2 = opt_ix.reshape(-1, cfgs.max_opt_token)          # (B*A, T)
    cp_ix2 = cp_ix.reshape(-1, cfgs.max_sent_token)           # (B*S, T)
    all_ix = jnp.concatenate([que_ix, opt_ix2, cp_ix2], axis=0)
    all_mask = (all_ix == 0).astype(jnp.float32)              # make_mask: 1.0 = padding
    all_emb = params["emb"][all_ix]                           # (N, T, E)

    seq_tm, flat_all = encode(all_emb, all_mask, params)      # (T, N, H), (N, F)

    que_feat = jnp.transpose(seq_tm[:, :b, :], (1, 0, 2))     # (B, T, H) full sequence
    flat_que = flat_all[:b]                                   # (B, H)
    opt_feat = flat_all[b:b + b * a].reshape(b, a, -1)        # (B, A, H)
    cp_feat = flat_all[b + b * a:].reshape(b, s, -1)          # (B, S, H)

    span_feat = get_span_feat(cp_feat, cfgs.span_width)       # (B, S*W, 2H)
    cp_sent_pad = jnp.all(cp_ix2 == 0, axis=-1).reshape(b, s)
    cp_sent_mask = jnp.repeat(cp_sent_pad[:, :, None], cfgs.span_width, axis=2).reshape(b, -1)

    dia_feat = simclr_forward(dia, params)                    # (B, 2H)

    span_num = span_feat.shape[1]
    flat_que_exp = jnp.broadcast_to(flat_que[:, None, :], (b, span_num, h))
    que_with_evi = jnp.concatenate([flat_que_exp, span_feat], axis=-1)   # (B, sn, 3H)
    que_with_evi = avg_pool_last(que_with_evi, cfgs.k_times)             # (B, sn, H)
    span_pooled = avg_pool_last(span_feat, cfgs.p_times)                 # (B, sn, H)

    # --- one fused scorer pass over all three score_lang call-sites ----------
    score_in = jnp.concatenate(
        [flat_que, span_pooled.reshape(-1, h), que_with_evi.reshape(-1, h)], axis=0)
    p_all, ent_all = score_lang_entropy(score_in, params)                # (R,1), (R,1)
    que_entropy = ent_all[:b]                                            # (B, 1)
    evi_logit = p_all[b:b + b * span_num].reshape(b, span_num, 1)        # sigmoid(score(span))
    qe_ent = ent_all[b + b * span_num:].reshape(b, span_num, 1)          # H(sigmoid(score(q+evi)))
    que_cond_ent = evi_logit * qe_ent                                    # (B, sn, 1)
    inf_gain = que_entropy - que_cond_ent[..., 0]                        # (B, sn)

    # get_ix: masked argmax over spans
    evi_ix = jnp.argmax(jnp.where(cp_sent_mask, -1e9, inf_gain), axis=-1)  # (B,)
    evi_feat = span_pooled[jnp.arange(b), evi_ix]                          # (B, H)

    fuse_que_dia = ban_backbone(que_feat, dia_feat, params)                # (B, H)

    evi_a = jnp.broadcast_to(evi_feat[:, None, :], (b, a, h))
    flat_que_a = jnp.broadcast_to(flat_que[:, None, :], (b, a, h))
    fqd_a = jnp.broadcast_to(fuse_que_dia[:, None, :], (b, a, h))
    dia_rep = jnp.broadcast_to(dia_feat[:, None, :], (b, a, dia_feat.shape[-1]))

    fuse_feat = jnp.concatenate(
        [flat_que_a, dia_rep, opt_feat, evi_a,
         evi_a * opt_feat, flat_que_a * opt_feat, flat_que_a * evi_a,
         flat_que_a * opt_feat * fqd_a], axis=-1)                          # (B, A, 9H)

    logits = classifier(fuse_feat.reshape(b * a, 9 * h), params)           # (B*A, 1)
    return logits.reshape(b, a)


# ----------------------------- params ----------------------------------------
def init_params(key):
    h, e = cfgs.hidden_size, cfgs.word_emb_size
    m, f = cfgs.flat_mlp_size, cfgs.flat_out_size
    ks = jax.random.split(key, 20)

    def w(k, shape, fan_in):
        return (jax.random.normal(k, shape, jnp.float32) / jnp.sqrt(float(fan_in))).astype(jnp.float32)

    patch_dim = 3 * PATCH * PATCH
    params = {
        "emb": w(ks[0], (TOKEN_SIZE, e), e),
        # shared GRU encoder, gates stacked along the output axis [r | z | n]
        "gru_wih": w(ks[1], (e, 3 * h), e),
        "gru_whh": w(ks[2], (h, 3 * h), h),
        "gru_bih": jnp.zeros((1, 3 * h), jnp.float32),
        "gru_bhh": jnp.zeros((1, 3 * h), jnp.float32),
        # FlattenAtt
        "fa_w1": w(ks[3], (h, m), h),
        "fa_b1": jnp.zeros((1, m), jnp.float32),
        "fa_w2": w(ks[4], (m, cfgs.flat_glimpses), m),
        "fa_b2": jnp.zeros((1, cfgs.flat_glimpses), jnp.float32),
        "fa_wm": w(ks[5], (h * cfgs.flat_glimpses, f), h),
        "fa_bm": jnp.zeros((1, f), jnp.float32),
        # score_lang MLP
        "sl_w1": w(ks[6], (h, m), h),
        "sl_b1": jnp.zeros((1, m), jnp.float32),
        "sl_w2": w(ks[7], (m, 1), m),
        "sl_b2": jnp.zeros((1, 1), jnp.float32),
        # SimCLR-lite
        "simclr_w1": w(ks[8], (patch_dim, 2 * h), patch_dim),
        "simclr_b1": jnp.zeros((1, 2 * h), jnp.float32),
        "simclr_w2": w(ks[9], (2 * h, 2 * h), 2 * h),
        "simclr_b2": jnp.zeros((1, 2 * h), jnp.float32),
        # BAN-lite
        "ban_wq": w(ks[10], (h, h), h),
        "ban_wv": w(ks[11], (2 * h, h), 2 * h),
        "ban_wo": w(ks[12], (h, h), h),
        # classifier (weight_norm Linear -> ReLU -> weight_norm Linear at inference)
        "cls_w1": w(ks[13], (9 * h, f), 9 * h),
        "cls_b1": jnp.zeros((1, f), jnp.float32),
        "cls_w2": w(ks[14], (f, 1), f),
        "cls_b2": jnp.zeros((1, 1), jnp.float32),
    }
    return params


# ----------------------------- main -------------------------------------------
if __name__ == "__main__":
    key = jax.random.PRNGKey(0)
    kq, ko, kc, kd, ki, kp = jax.random.split(key, 6)
    B = 2

    que_ix = jax.random.randint(kq, (B, cfgs.max_que_token), 1, TOKEN_SIZE)
    que_ix = que_ix.at[:, -2:].set(0)                                  # padding tokens
    opt_ix = jax.random.randint(ko, (B, cfgs.max_dq_ans, cfgs.max_opt_token), 1, TOKEN_SIZE)
    opt_ix = opt_ix.at[..., -2:].set(0)
    cp_ix = jax.random.randint(kc, (B, cfgs.max_sent, cfgs.max_sent_token), 1, TOKEN_SIZE)
    cp_ix = cp_ix.at[..., -2:].set(0)
    cp_ix = cp_ix.at[:, -1, :].set(0)                                  # one fully-padded sentence
    dia = jax.random.normal(kd, (B, 3, 32, 32), jnp.float32)
    ins_dia = jax.random.normal(ki, (B, 3, 32, 32), jnp.float32)

    params = init_params(kp)

    fwd = jax.jit(functools.partial(net_forward, params))
    out = fwd(que_ix, opt_ix, dia, ins_dia, cp_ix)
    out = jax.block_until_ready(out)
    assert out.shape == (B, cfgs.max_dq_ans), out.shape
    assert bool(jnp.all(jnp.isfinite(out)))
    print("KERNEL_OK")
</pallas_src>

<mosaic_0001>
module attributes {stable_mosaic.version = 11 : i64} {
  func.func @_encode_kernel(%arg0: memref<8x18x32xf32, #tpu.memory_space<vmem>>, %arg1: memref<18x8xf32, #tpu.memory_space<vmem>>, %arg2: memref<32x96xf32, #tpu.memory_space<vmem>>, %arg3: memref<32x96xf32, #tpu.memory_space<vmem>>, %arg4: memref<1x96xf32, #tpu.memory_space<vmem>>, %arg5: memref<1x96xf32, #tpu.memory_space<vmem>>, %arg6: memref<32x16xf32, #tpu.memory_space<vmem>>, %arg7: memref<1x16xf32, #tpu.memory_space<vmem>>, %arg8: memref<16x1xf32, #tpu.memory_space<vmem>>, %arg9: memref<1x1xf32, #tpu.memory_space<vmem>>, %arg10: memref<32x32xf32, #tpu.memory_space<vmem>>, %arg11: memref<1x32xf32, #tpu.memory_space<vmem>>, %arg12: memref<8x18x32xf32, #tpu.memory_space<vmem>>, %arg13: memref<18x32xf32, #tpu.memory_space<vmem>>) attributes {dimension_semantics = [], scalar_prefetch = 0 : i64, scratch_operands = 0 : i64, tpu.core_type = #tpu.core_type<tc>} {
    %c0 = arith.constant 0 : index
    %c0_0 = arith.constant 0 : index
    %0 = vector.load %arg2[%c0, %c0_0] : memref<32x96xf32, #tpu.memory_space<vmem>>, vector<32x96xf32>
    %c0_1 = arith.constant 0 : index
    %c0_2 = arith.constant 0 : index
    %1 = vector.load %arg3[%c0_1, %c0_2] : memref<32x96xf32, #tpu.memory_space<vmem>>, vector<32x96xf32>
    %c0_3 = arith.constant 0 : index
    %c0_4 = arith.constant 0 : index
    %2 = vector.load %arg4[%c0_3, %c0_4] : memref<1x96xf32, #tpu.memory_space<vmem>>, vector<1x96xf32>
    %c0_5 = arith.constant 0 : index
    %c0_6 = arith.constant 0 : index
    %3 = vector.load %arg5[%c0_5, %c0_6] : memref<1x96xf32, #tpu.memory_space<vmem>>, vector<1x96xf32>
    %c0_7 = arith.constant 0 : index
    %c0_8 = arith.constant 0 : index
    %4 = vector.load %arg6[%c0_7, %c0_8] : memref<32x16xf32, #tpu.memory_space<vmem>>, vector<32x16xf32>
    %c0_9 = arith.constant 0 : index
    %c0_10 = arith.constant 0 : index
    %5 = vector.load %arg7[%c0_9, %c0_10] : memref<1x16xf32, #tpu.memory_space<vmem>>, vector<1x16xf32>
    %c0_11 = arith.constant 0 : index
    %c0_12 = arith.constant 0 : index
    %6 = vector.load %arg8[%c0_11, %c0_12] : memref<16x1xf32, #tpu.memory_space<vmem>>, vector<16x1xf32>
    %c0_13 = arith.constant 0 : index
    %c0_14 = arith.constant 0 : index
    %7 = vector.load %arg9[%c0_13, %c0_14] : memref<1x1xf32, #tpu.memory_space<vmem>>, vector<1x1xf32>
    %cst = arith.constant 0.000000e+00 : f32
    %8 = vector.broadcast %cst : f32 to vector<18x32xf32>
    %c0_15 = arith.constant 0 : index
    %c0_16 = arith.constant 0 : index
    %c0_17 = arith.constant 0 : index
    %9 = vector.load %arg0[%c0_15, %c0_16, %c0_17] : memref<8x18x32xf32, #tpu.memory_space<vmem>>, vector<1x18x32xf32>
    %10 = vector.shape_cast %9 : vector<1x18x32xf32> to vector<18x32xf32>
    %cst_18 = arith.constant dense<0.000000e+00> : vector<18x96xf32>
    %11 = tpu.matmul %10, %0, %cst_18 {dimension_numbers = #tpu.dot_dimension_numbers<[1], [0], [0], [1], [0, 0, 1, 1], [], []>} : vector<18x32xf32>, vector<32x96xf32>, vector<18x96xf32> -> vector<18x96xf32>
    %12 = vector.broadcast %2 : vector<1x96xf32> to vector<18x96xf32>
    %13 = arith.addf %11, %12 : vector<18x96xf32>
    %cst_19 = arith.constant dense<0.000000e+00> : vector<18x96xf32>
    %14 = tpu.matmul %8, %1, %cst_19 {dimension_numbers = #tpu.dot_dimension_numbers<[1], [0], [0], [1], [0, 0, 1, 1], [], []>} : vector<18x32xf32>, vector<32x96xf32>, vector<18x96xf32> -> vector<18x96xf32>
    %15 = vector.broadcast %3 : vector<1x96xf32> to vector<18x96xf32>
    %16 = arith.addf %14, %15 : vector<18x96xf32>
    %17 = vector.extract_strided_slice %13 {offsets = [0, 0], sizes = [18, 32], strides = [1, 1]} : vector<18x96xf32> to vector<18x32xf32>
    %18 = vector.extract_strided_slice %16 {offsets = [0, 0], sizes = [18, 32], strides = [1, 1]} : vector<18x96xf32> to vector<18x32xf32>
    %19 = arith.addf %17, %18 : vector<18x32xf32>
    %20 = arith.negf %19 : vector<18x32xf32>
    %21 = math.exp %20 : vector<18x32xf32>
    %cst_20 = arith.constant 1.000000e+00 : f32
    %22 = vector.broadcast %cst_20 : f32 to vector<18x32xf32>
    %23 = arith.addf %22, %21 : vector<18x32xf32>
    %24 = arith.divf %22, %23 : vector<18x32xf32>
    %25 = vector.extract_strided_slice %13 {offsets = [0, 32], sizes = [18, 32], strides = [1, 1]} : vector<18x96xf32> to vector<18x32xf32>
    %26 = vector.extract_strided_slice %16 {offsets = [0, 32], sizes = [18, 32], strides = [1, 1]} : vector<18x96xf32> to vector<18x32xf32>
    %27 = arith.addf %25, %26 : vector<18x32xf32>
    %28 = arith.negf %27 : vector<18x32xf32>
    %29 = math.exp %28 : vector<18x32xf32>
    %cst_21 = arith.constant 1.000000e+00 : f32
    %30 = vector.broadcast %cst_21 : f32 to vector<18x32xf32>
    %31 = arith.addf %30, %29 : vector<18x32xf32>
    %32 = arith.divf %30, %31 : vector<18x32xf32>
    %33 = vector.extract_strided_slice %13 {offsets = [0, 64], sizes = [18, 32], strides = [1, 1]} : vector<18x96xf32> to vector<18x32xf32>
    %34 = vector.extract_strided_slice %16 {offsets = [0, 64], sizes = [18, 32], strides = [1, 1]} : vector<18x96xf32> to vector<18x32xf32>
    %35 = arith.mulf %24, %34 : vector<18x32xf32>
    %36 = arith.addf %33, %35 : vector<18x32xf32>
    %37 = math.tanh %36 : vector<18x32xf32>
    %cst_22 = arith.constant 1.000000e+00 : f32
    %38 = vector.broadcast %cst_22 : f32 to vector<18x32xf32>
    %39 = arith.subf %38, %32 : vector<18x32xf32>
    %40 = arith.mulf %39, %37 : vector<18x32xf32>
    %41 = arith.mulf %32, %8 : vector<18x32xf32>
    %42 = arith.addf %40, %41 : vector<18x32xf32>
    %c0_23 = arith.constant 0 : index
    %c0_24 = arith.constant 0 : index
    %c0_25 = arith.constant 0 : index
    %43 = vector.load %arg12[%c0_23, %c0_24, %c0_25] : memref<8x18x32xf32, #tpu.memory_space<vmem>>, vector<1x18x32xf32>
    %44 = vector.shape_cast %43 : vector<1x18x32xf32> to vector<18x32xf32>
    %45 = vector.shape_cast %42 : vector<18x32xf32> to vector<1x18x32xf32>
    tpu.vector_store %arg12[%c0_23, %c0_24, %c0_25], %45 {strides = array<i32>} : memref<8x18x32xf32, #tpu.memory_space<vmem>>, vector<1x18x32xf32>,
    %cst_26 = arith.constant dense<0.000000e+00> : vector<18x16xf32>
    %46 = tpu.matmul %42, %4, %cst_26 {dimension_numbers = #tpu.dot_dimension_numbers<[1], [0], [0], [1], [0, 0, 1, 1], [], []>} : vector<18x32xf32>, vector<32x16xf32>, vector<18x16xf32> -> vector<18x16xf32>
    %47 = vector.broadcast %5 : vector<1x16xf32> to vector<18x16xf32>
    %48 = arith.addf %46, %47 : vector<18x16xf32>
    %cst_27 = arith.constant dense<0.000000e+00> : vector<18x1xf32>
    %49 = tpu.matmul %48, %6, %cst_27 {dimension_numbers = #tpu.dot_dimension_numbers<[1], [0], [0], [1], [0, 0, 1, 1], [], []>} : vector<18x16xf32>, vector<16x1xf32>, vector<18x1xf32> -> vector<18x1xf32>
    %50 = vector.broadcast %7 : vector<1x1xf32> to vector<18x1xf32>
    %51 = arith.addf %49, %50 : vector<18x1xf32>
    %c1 = arith.constant 1 : index
    %c0_28 = arith.constant 0 : index
    %c0_29 = arith.constant 0 : index
    %52 = vector.load %arg0[%c1, %c0_28, %c0_29] : memref<8x18x32xf32, #tpu.memory_space<vmem>>, vector<1x18x32xf32>
    %53 = vector.shape_cast %52 : vector<1x18x32xf32> to vector<18x32xf32>
    %cst_30 = arith.constant dense<0.000000e+00> : vector<18x96xf32>
    %54 = tpu.matmul %53, %0, %cst_30 {dimension_numbers = #tpu.dot_dimension_numbers<[1], [0], [0], [1], [0, 0, 1, 1], [], []>} : vector<18x32xf32>, vector<32x96xf32>, vector<18x96xf32> -> vector<18x96xf32>
    %55 = vector.broadcast %2 : vector<1x96xf32> to vector<18x96xf32>
    %56 = arith.addf %54, %55 : vector<18x96xf32>
    %cst_31 = arith.constant dense<0.000000e+00> : vector<18x96xf32>
    %57 = tpu.matmul %42, %1, %cst_31 {dimension_numbers = #tpu.dot_dimension_numbers<[1], [0], [0], [1], [0, 0, 1, 1], [], []>} : vector<18x32xf32>, vector<32x96xf32>, vector<18x96xf32> -> vector<18x96xf32>
    %58 = vector.broadcast %3 : vector<1x96xf32> to vector<18x96xf32>
    %59 = arith.addf %57, %58 : vector<18x96xf32>
    %60 = vector.extract_strided_slice %56 {offsets = [0, 0], sizes = [18, 32], strides = [1, 1]} : vector<18x96xf32> to vector<18x32xf32>
    %61 = vector.extract_strided_slice %59 {offsets = [0, 0], sizes = [18, 32], strides = [1, 1]} : vector<18x96xf32> to vector<18x32xf32>
    %62 = arith.addf %60, %61 : vector<18x32xf32>
    %63 = arith.negf %62 : vector<18x32xf32>
    %64 = math.exp %63 : vector<18x32xf32>
    %cst_32 = arith.constant 1.000000e+00 : f32
    %65 = vector.broadcast %cst_32 : f32 to vector<18x32xf32>
    %66 = arith.addf %65, %64 : vector<18x32xf32>
    %67 = arith.divf %65, %66 : vector<18x32xf32>
    %68 = vector.extract_strided_slice %56 {offsets = [0, 32], sizes = [18, 32], strides = [1, 1]} : vector<18x96xf32> to vector<18x32xf32>
    %69 = vector.extract_strided_slice %59 {offsets = [0, 32], sizes = [18, 32], strides = [1, 1]} : vector<18x96xf32> to vector<18x32xf32>
    %70 = arith.addf %68, %69 : vector<18x32xf32>
    %71 = arith.negf %70 : vector<18x32xf32>
    %72 = math.exp %71 : vector<18x32xf32>
    %cst_33 = arith.constant 1.000000e+00 : f32
    %73 = vector.broadcast %cst_33 : f32 to vector<18x32xf32>
    %74 = arith.addf %73, %72 : vector<18x32xf32>
    %75 = arith.divf %73, %74 : vector<18x32xf32>
    %76 = vector.extract_strided_slice %56 {offsets = [0, 64], sizes = [18, 32], strides = [1, 1]} : vector<18x96xf32> to vector<18x32xf32>
    %77 = vector.extract_strided_slice %59 {offsets = [0, 64], sizes = [18, 32], strides = [1, 1]} : vector<18x96xf32> to vector<18x32xf32>
    %78 = arith.mulf %67, %77 : vector<18x32xf32>
    %79 = arith.addf %76, %78 : vector<18x32xf32>
    %80 = math.tanh %79 : vector<18x32xf32>
    %cst_34 = arith.constant 1.000000e+00 : f32
    %81 = vector.broadcast %cst_34 : f32 to vector<18x32xf32>
    %82 = arith.subf %81, %75 : vector<18x32xf32>
    %83 = arith.mulf %82, %80 : vector<18x32xf32>
    %84 = arith.mulf %75, %42 : vector<18x32xf32>
    %85 = arith.addf %83, %84 : vector<18x32xf32>
    %c1_35 = arith.constant 1 : index
    %c0_36 = arith.constant 0 : index
    %c0_37 = arith.constant 0 : index
    %86 = vector.load %arg12[%c1_35, %c0_36, %c0_37] : memref<8x18x32xf32, #tpu.memory_space<vmem>>, vector<1x18x32xf32>
    %87 = vector.shape_cast %86 : vector<1x18x32xf32> to vector<18x32xf32>
    %88 = vector.shape_cast %85 : vector<18x32xf32> to vector<1x18x32xf32>
    tpu.vector_store %arg12[%c1_35, %c0_36, %c0_37], %88 {strides = array<i32>} : memref<8x18x32xf32, #tpu.memory_space<vmem>>, vector<1x18x32xf32>,
    %cst_38 = arith.constant dense<0.000000e+00> : vector<18x16xf32>
    %89 = tpu.matmul %85, %4, %cst_38 {dimension_numbers = #tpu.dot_dimension_numbers<[1], [0], [0], [1], [0, 0, 1, 1], [], []>} : vector<18x32xf32>, vector<32x16xf32>, vector<18x16xf32> -> vector<18x16xf32>
    %90 = vector.broadcast %5 : vector<1x16xf32> to vector<18x16xf32>
    %91 = arith.addf %89, %90 : vector<18x16xf32>
    %cst_39 = arith.constant dense<0.000000e+00> : vector<18x1xf32>
    %92 = tpu.matmul %91, %6, %cst_39 {dimension_numbers = #tpu.dot_dimension_numbers<[1], [0], [0], [1], [0, 0, 1, 1], [], []>} : vector<18x16xf32>, vector<16x1xf32>, vector<18x1xf32> -> vector<18x1xf32>
    %93 = vector.broadcast %7 : vector<1x1xf32> to vector<18x1xf32>
    %94 = arith.addf %92, %93 : vector<18x1xf32>
    %c2 = arith.constant 2 : index
    %c0_40 = arith.constant 0 : index
    %c0_41 = arith.constant 0 : index
    %95 = vector.load %arg0[%c2, %c0_40, %c0_41] : memref<8x18x32xf32, #tpu.memory_space<vmem>>, vector<1x18x32xf32>
    %96 = vector.shape_cast %95 : vector<1x18x32xf32> to vector<18x32xf32>
    %cst_42 = arith.constant dense<0.000000e+00> : vector<18x96xf32>
    %97 = tpu.matmul %96, %0, %cst_42 {dimension_numbers = #tpu.dot_dimension_numbers<[1], [0], [0], [1], [0, 0, 1, 1], [], []>} : vector<18x32xf32>, vector<32x96xf32>, vector<18x96xf32> -> vector<18x96xf32>
    %98 = vector.broadcast %2 : vector<1x96xf32> to vector<18x96xf32>
    %99 = arith.addf %97, %98 : vector<18x96xf32>
    %cst_43 = arith.constant dense<0.000000e+00> : vector<18x96xf32>
    %100 = tpu.matmul %85, %1, %cst_43 {dimension_numbers = #tpu.dot_dimension_numbers<[1], [0], [0], [1], [0, 0, 1, 1], [], []>} : vector<18x32xf32>, vector<32x96xf32>, vector<18x96xf32> -> vector<18x96xf32>
    %101 = vector.broadcast %3 : vector<1x96xf32> to vector<18x96xf32>
    %102 = arith.addf %100, %101 : vector<18x96xf32>
    %103 = vector.extract_strided_slice %99 {offsets = [0, 0], sizes = [18, 32], strides = [1, 1]} : vector<18x96xf32> to vector<18x32xf32>
    %104 = vector.extract_strided_slice %102 {offsets = [0, 0], sizes = [18, 32], strides = [1, 1]} : vector<18x96xf32> to vector<18x32xf32>
    %105 = arith.addf %103, %104 : vector<18x32xf32>
    %106 = arith.negf %105 : vector<18x32xf32>
    %107 = math.exp %106 : vector<18x32xf32>
    %cst_44 = arith.constant 1.000000e+00 : f32
    %108 = vector.broadcast %cst_44 : f32 to vector<18x32xf32>
    %109 = arith.addf %108, %107 : vector<18x32xf32>
    %110 = arith.divf %108, %109 : vector<18x32xf32>
    %111 = vector.extract_strided_slice %99 {offsets = [0, 32], sizes = [18, 32], strides = [1, 1]} : vector<18x96xf32> to vector<18x32xf32>
    %112 = vector.extract_strided_slice %102 {offsets = [0, 32], sizes = [18, 32], strides = [1, 1]} : vector<18x96xf32> to vector<18x32xf32>
    %113 = arith.addf %111, %112 : vector<18x32xf32>
    %114 = arith.negf %113 : vector<18x32xf32>
    %115 = math.exp %114 : vector<18x32xf32>
    %cst_45 = arith.constant 1.000000e+00 : f32
    %116 = vector.broadcast %cst_45 : f32 to vector<18x32xf32>
    %117 = arith.addf %116, %115 : vector<18x32xf32>
    %118 = arith.divf %116, %117 : vector<18x32xf32>
    %119 = vector.extract_strided_slice %99 {offsets = [0, 64], sizes = [18, 32], strides = [1, 1]} : vector<18x96xf32> to vector<18x32xf32>
    %120 = vector.extract_strided_slice %102 {offsets = [0, 64], sizes = [18, 32], strides = [1, 1]} : vector<18x96xf32> to vector<18x32xf32>
    %121 = arith.mulf %110, %120 : vector<18x32xf32>
    %122 = arith.addf %119, %121 : vector<18x32xf32>
    %123 = math.tanh %122 : vector<18x32xf32>
    %cst_46 = arith.constant 1.000000e+00 : f32
    %124 = vector.broadcast %cst_46 : f32 to vector<18x32xf32>
    %125 = arith.subf %124, %118 : vector<18x32xf32>
    %126 = arith.mulf %125, %123 : vector<18x32xf32>
    %127 = arith.mulf %118, %85 : vector<18x32xf32>
    %128 = arith.addf %126, %127 : vector<18x32xf32>
    %c2_47 = arith.constant 2 : index
    %c0_48 = arith.constant 0 : index
    %c0_49 = arith.constant 0 : index
    %129 = vector.load %arg12[%c2_47, %c0_48, %c0_49] : memref<8x18x32xf32, #tpu.memory_space<vmem>>, vector<1x18x32xf32>
    %130 = vector.shape_cast %129 : vector<1x18x32xf32> to vector<18x32xf32>
    %131 = vector.shape_cast %128 : vector<18x32xf32> to vector<1x18x32xf32>
    tpu.vector_store %arg12[%c2_47, %c0_48, %c0_49], %131 {strides = array<i32>} : memref<8x18x32xf32, #tpu.memory_space<vmem>>, vector<1x18x32xf32>,
    %cst_50 = arith.constant dense<0.000000e+00> : vector<18x16xf32>
    %132 = tpu.matmul %128, %4, %cst_50 {dimension_numbers = #tpu.dot_dimension_numbers<[1], [0], [0], [1], [0, 0, 1, 1], [], []>} : vector<18x32xf32>, vector<32x16xf32>, vector<18x16xf32> -> vector<18x16xf32>
    %133 = vector.broadcast %5 : vector<1x16xf32> to vector<18x16xf32>
    %134 = arith.addf %132, %133 : vector<18x16xf32>
    %cst_51 = arith.constant dense<0.000000e+00> : vector<18x1xf32>
    %135 = tpu.matmul %134, %6, %cst_51 {dimension_numbers = #tpu.dot_dimension_numbers<[1], [0], [0], [1], [0, 0, 1, 1], [], []>} : vector<18x16xf32>, vector<16x1xf32>, vector<18x1xf32> -> vector<18x1xf32>
    %136 = vector.broadcast %7 : vector<1x1xf32> to vector<18x1xf32>
    %137 = arith.addf %135, %136 : vector<18x1xf32>
    %c3 = arith.constant 3 : index
    %c0_52 = arith.constant 0 : index
    %c0_53 = arith.constant 0 : index
    %138 = vector.load %arg0[%c3, %c0_52, %c0_53] : memref<8x18x32xf32, #tpu.memory_space<vmem>>, vector<1x18x32xf32>
    %139 = vector.shape_cast %138 : vector<1x18x32xf32> to vector<18x32xf32>
    %cst_54 = arith.constant dense<0.000000e+00> : vector<18x96xf32>
    %140 = tpu.matmul %139, %0, %cst_54 {dimension_numbers = #tpu.dot_dimension_numbers<[1], [0], [0], [1], [0, 0, 1, 1], [], []>} : vector<18x32xf32>, vector<32x96xf32>, vector<18x96xf32> -> vector<18x96xf32>
    %141 = vector.broadcast %2 : vector<1x96xf32> to vector<18x96xf32>
    %142 = arith.addf %140, %141 : vector<18x96xf32>
    %cst_55 = arith.constant dense<0.000000e+00> : vector<18x96xf32>
    %143 = tpu.matmul %128, %1, %cst_55 {dimension_numbers = #tpu.dot_dimension_numbers<[1], [0], [0], [1], [0, 0, 1, 1], [], []>} : vector<18x32xf32>, vector<32x96xf32>, vector<18x96xf32> -> vector<18x96xf32>
    %144 = vector.broadcast %3 : vector<1x96xf32> to vector<18x96xf32>
    %145 = arith.addf %143, %144 : vector<18x96xf32>
    %146 = vector.extract_strided_slice %142 {offsets = [0, 0], sizes = [18, 32], strides = [1, 1]} : vector<18x96xf32> to vector<18x32xf32>
    %147 = vector.extract_strided_slice %145 {offsets = [0, 0], sizes = [18, 32], strides = [1, 1]} : vector<18x96xf32> to vector<18x32xf32>
    %148 = arith.addf %146, %147 : vector<18x32xf32>
    %149 = arith.negf %148 : vector<18x32xf32>
    %150 = math.exp %149 : vector<18x32xf32>
    %cst_56 = arith.constant 1.000000e+00 : f32
    %151 = vector.broadcast %cst_56 : f32 to vector<18x32xf32>
    %152 = arith.addf %151, %150 : vector<18x32xf32>
    %153 = arith.divf %151, %152 : vector<18x32xf32>
    %154 = vector.extract_strided_slice %142 {offsets = [0, 32], sizes = [18, 32], strides = [1, 1]} : vector<18x96xf32> to vector<18x32xf32>
    %155 = vector.extract_strided_slice %145 {offsets = [0, 32], sizes = [18, 32], strides = [1, 1]} : vector<18x96xf32> to vector<18x32xf32>
    %156 = arith.addf %154, %155 : vector<18x32xf32>
    %157 = arith.negf %156 : vector<18x32xf32>
    %158 = math.exp %157 : vector<18x32xf32>
    %cst_57 = arith.constant 1.000000e+00 : f32
    %159 = vector.broadcast %cst_57 : f32 to vector<18x32xf32>
    %160 = arith.addf %159, %158 : vector<18x32xf32>
    %161 = arith.divf %159, %160 : vector<18x32xf32>
    %162 = vector.extract_strided_slice %142 {offsets = [0, 64], sizes = [18, 32], strides = [1, 1]} : vector<18x96xf32> to vector<18x32xf32>
    %163 = vector.extract_strided_slice %145 {offsets = [0, 64], sizes = [18, 32], strides = [1, 1]} : vector<18x96xf32> to vector<18x32xf32>
    %164 = arith.mulf %153, %163 : vector<18x32xf32>
    %165 = arith.addf %162, %164 : vector<18x32xf32>
    %166 = math.tanh %165 : vector<18x32xf32>
    %cst_58 = arith.constant 1.000000e+00 : f32
    %167 = vector.broadcast %cst_58 : f32 to vector<18x32xf32>
    %168 = arith.subf %167, %161 : vector<18x32xf32>
    %169 = arith.mulf %168, %166 : vector<18x32xf32>
    %170 = arith.mulf %161, %128 : vector<18x32xf32>
    %171 = arith.addf %169, %170 : vector<18x32xf32>
    %c3_59 = arith.constant 3 : index
    %c0_60 = arith.constant 0 : index
    %c0_61 = arith.constant 0 : index
    %172 = vector.load %arg12[%c3_59, %c0_60, %c0_61] : memref<8x18x32xf32, #tpu.memory_space<vmem>>, vector<1x18x32xf32>
    %173 = vector.shape_cast %172 : vector<1x18x32xf32> to vector<18x32xf32>
    %174 = vector.shape_cast %171 : vector<18x32xf32> to vector<1x18x32xf32>
    tpu.vector_store %arg12[%c3_59, %c0_60, %c0_61], %174 {strides = array<i32>} : memref<8x18x32xf32, #tpu.memory_space<vmem>>, vector<1x18x32xf32>,
    %cst_62 = arith.constant dense<0.000000e+00> : vector<18x16xf32>
    %175 = tpu.matmul %171, %4, %cst_62 {dimension_numbers = #tpu.dot_dimension_numbers<[1], [0], [0], [1], [0, 0, 1, 1], [], []>} : vector<18x32xf32>, vector<32x16xf32>, vector<18x16xf32> -> vector<18x16xf32>
    %176 = vector.broadcast %5 : vector<1x16xf32> to vector<18x16xf32>
    %177 = arith.addf %175, %176 : vector<18x16xf32>
    %cst_63 = arith.constant dense<0.000000e+00> : vector<18x1xf32>
    %178 = tpu.matmul %177, %6, %cst_63 {dimension_numbers = #tpu.dot_dimension_numbers<[1], [0], [0], [1], [0, 0, 1, 1], [], []>} : vector<18x16xf32>, vector<16x1xf32>, vector<18x1xf32> -> vector<18x1xf32>
    %179 = vector.broadcast %7 : vector<1x1xf32> to vector<18x1xf32>
    %180 = arith.addf %178, %179 : vector<18x1xf32>
    %c4 = arith.constant 4 : index
    %c0_64 = arith.constant 0 : index
    %c0_65 = arith.constant 0 : index
    %181 = vector.load %arg0[%c4, %c0_64, %c0_65] : memref<8x18x32xf32, #tpu.memory_space<vmem>>, vector<1x18x32xf32>
    %182 = vector.shape_cast %181 : vector<1x18x32xf32> to vector<18x32xf32>
    %cst_66 = arith.constant dense<0.000000e+00> : vector<18x96xf32>
    %183 = tpu.matmul %182, %0, %cst_66 {dimension_numbers = #tpu.dot_dimension_numbers<[1], [0], [0], [1], [0, 0, 1, 1], [], []>} : vector<18x32xf32>, vector<32x96xf32>, vector<18x96xf32> -> vector<18x96xf32>
    %184 = vector.broadcast %2 : vector<1x96xf32> to vector<18x96xf32>
    %185 = arith.addf %183, %184 : vector<18x96xf32>
    %cst_67 = arith.constant dense<0.000000e+00> : vector<18x96xf32>
    %186 = tpu.matmul %171, %1, %cst_67 {dimension_numbers = #tpu.dot_dimension_numbers<[1], [0], [0], [1], [0, 0, 1, 1], [], []>} : vector<18x32xf32>, vector<32x96xf32>, vector<18x96xf32> -> vector<18x96xf32>
    %187 = vector.broadcast %3 : vector<1x96xf32> to vector<18x96xf32>
    %188 = arith.addf %186, %187 : vector<18x96xf32>
    %189 = vector.extract_strided_slice %185 {offsets = [0, 0], sizes = [18, 32], strides = [1, 1]} : vector<18x96xf32> to vector<18x32xf32>
    %190 = vector.extract_strided_slice %188 {offsets = [0, 0], sizes = [18, 32], strides = [1, 1]} : vector<18x96xf32> to vector<18x32xf32>
    %191 = arith.addf %189, %190 : vector<18x32xf32>
    %192 = arith.negf %191 : vector<18x32xf32>
    %193 = math.exp %192 : vector<18x32xf32>
    %cst_68 = arith.constant 1.000000e+00 : f32
    %194 = vector.broadcast %cst_68 : f32 to vector<18x32xf32>
    %195 = arith.addf %194, %193 : vector<18x32xf32>
    %196 = arith.divf %194, %195 : vector<18x32xf32>
    %197 = vector.extract_strided_slice %185 {offsets = [0, 32], sizes = [18, 32], strides = [1, 1]} : vector<18x96xf32> to vector<18x32xf32>
    %198 = vector.extract_strided_slice %188 {offsets = [0, 32], sizes = [18, 32], strides = [1, 1]} : vector<18x96xf32> to vector<18x32xf32>
    %199 = arith.addf %197, %198 : vector<18x32xf32>
    %200 = arith.negf %199 : vector<18x32xf32>
    %201 = math.exp %200 : vector<18x32xf32>
    %cst_69 = arith.constant 1.000000e+00 : f32
    %202 = vector.broadcast %cst_69 : f32 to vector<18x32xf32>
    %203 = arith.addf %202, %201 : vector<18x32xf32>
    %204 = arith.divf %202, %203 : vector<18x32xf32>
    %205 = vector.extract_strided_slice %185 {offsets = [0, 64], sizes = [18, 32], strides = [1, 1]} : vector<18x96xf32> to vector<18x32xf32>
    %206 = vector.extract_strided_slice %188 {offsets = [0, 64], sizes = [18, 32], strides = [1, 1]} : vector<18x96xf32> to vector<18x32xf32>
    %207 = arith.mulf %196, %206 : vector<18x32xf32>
    %208 = arith.addf %205, %207 : vector<18x32xf32>
    %209 = math.tanh %208 : vector<18x32xf32>
    %cst_70 = arith.constant 1.000000e+00 : f32
    %210 = vector.broadcast %cst_70 : f32 to vector<18x32xf32>
    %211 = arith.subf %210, %204 : vector<18x32xf32>
    %212 = arith.mulf %211, %209 : vector<18x32xf32>
    %213 = arith.mulf %204, %171 : vector<18x32xf32>
    %214 = arith.addf %212, %213 : vector<18x32xf32>
    %c4_71 = arith.constant 4 : index
    %c0_72 = arith.constant 0 : index
    %c0_73 = arith.constant 0 : index
    %215 = vector.load %arg12[%c4_71, %c0_72, %c0_73] : memref<8x18x32xf32, #tpu.memory_space<vmem>>, vector<1x18x32xf32>
    %216 = vector.shape_cast %215 : vector<1x18x32xf32> to vector<18x32xf32>
    %217 = vector.shape_cast %214 : vector<18x32xf32> to vector<1x18x32xf32>
    tpu.vector_store %arg12[%c4_71, %c0_72, %c0_73], %217 {strides = array<i32>} : memref<8x18x32xf32, #tpu.memory_space<vmem>>, vector<1x18x32xf32>,
    %cst_74 = arith.constant dense<0.000000e+00> : vector<18x16xf32>
    %218 = tpu.matmul %214, %4, %cst_74 {dimension_numbers = #tpu.dot_dimension_numbers<[1], [0], [0], [1], [0, 0, 1, 1], [], []>} : vector<18x32xf32>, vector<32x16xf32>, vector<18x16xf32> -> vector<18x16xf32>
    %219 = vector.broadcast %5 : vector<1x16xf32> to vector<18x16xf32>
    %220 = arith.addf %218, %219 : vector<18x16xf32>
    %cst_75 = arith.constant dense<0.000000e+00> : vector<18x1xf32>
    %221 = tpu.matmul %220, %6, %cst_75 {dimension_numbers = #tpu.dot_dimension_numbers<[1], [0], [0], [1], [0, 0, 1, 1], [], []>} : vector<18x16xf32>, vector<16x1xf32>, vector<18x1xf32> -> vector<18x1xf32>
    %222 = vector.broadcast %7 : vector<1x1xf32> to vector<18x1xf32>
    %223 = arith.addf %221, %222 : vector<18x1xf32>
    %c5 = arith.constant 5 : index
    %c0_76 = arith.constant 0 : index
    %c0_77 = arith.constant 0 : index
    %224 = vector.load %arg0[%c5, %c0_76, %c0_77] : memref<8x18x32xf32, #tpu.memory_space<vmem>>, vector<1x18x32xf32>
    %225 = vector.shape_cast %224 : vector<1x18x32xf32> to vector<18x32xf32>
    %cst_78 = arith.constant dense<0.000000e+00> : vector<18x96xf32>
    %226 = tpu.matmul %225, %0, %cst_78 {dimension_numbers = #tpu.dot_dimension_numbers<[1], [0], [0], [1], [0, 0, 1, 1], [], []>} : vector<18x32xf32>, vector<32x96xf32>, vector<18x96xf32> -> vector<18x96xf32>
    %227 = vector.broadcast %2 : vector<1x96xf32> to vector<18x96xf32>
    %228 = arith.addf %226, %227 : vector<18x96xf32>
    %cst_79 = arith.constant dense<0.000000e+00> : vector<18x96xf32>
    %229 = tpu.matmul %214, %1, %cst_79 {dimension_numbers = #tpu.dot_dimension_numbers<[1], [0], [0], [1], [0, 0, 1, 1], [], []>} : vector<18x32xf32>, vector<32x96xf32>, vector<18x96xf32> -> vector<18x96xf32>
    %230 = vector.broadcast %3 : vector<1x96xf32> to vector<18x96xf32>
    %231 = arith.addf %229, %230 : vector<18x96xf32>
    %232 = vector.extract_strided_slice %228 {offsets = [0, 0], sizes = [18, 32], strides = [1, 1]} : vector<18x96xf32> to vector<18x32xf32>
    %233 = vector.extract_strided_slice %231 {offsets = [0, 0], sizes = [18, 32], strides = [1, 1]} : vector<18x96xf32> to vector<18x32xf32>
    %234 = arith.addf %232, %233 : vector<18x32xf32>
    %235 = arith.negf %234 : vector<18x32xf32>
    %236 = math.exp %235 : vector<18x32xf32>
    %cst_80 = arith.constant 1.000000e+00 : f32
    %237 = vector.broadcast %cst_80 : f32 to vector<18x32xf32>
    %238 = arith.addf %237, %236 : vector<18x32xf32>
    %239 = arith.divf %237, %238 : vector<18x32xf32>
    %240 = vector.extract_strided_slice %228 {offsets = [0, 32], sizes = [18, 32], strides = [1, 1]} : vector<18x96xf32> to vector<18x32xf32>
    %241 = vector.extract_strided_slice %231 {offsets = [0, 32], sizes = [18, 32], strides = [1, 1]} : vector<18x96xf32> to vector<18x32xf32>
    %242 = arith.addf %240, %241 : vector<18x32xf32>
    %243 = arith.negf %242 : vector<18x32xf32>
    %244 = math.exp %243 : vector<18x32xf32>
    %cst_81 = arith.constant 1.000000e+00 : f32
    %245 = vector.broadcast %cst_81 : f32 to vector<18x32xf32>
    %246 = arith.addf %245, %244 : vector<18x32xf32>
    %247 = arith.divf %245, %246 : vector<18x32xf32>
    %248 = vector.extract_strided_slice %228 {offsets = [0, 64], sizes = [18, 32], strides = [1, 1]} : vector<18x96xf32> to vector<18x32xf32>
    %249 = vector.extract_strided_slice %231 {offsets = [0, 64], sizes = [18, 32], strides = [1, 1]} : vector<18x96xf32> to vector<18x32xf32>
    %250 = arith.mulf %239, %249 : vector<18x32xf32>
    %251 = arith.addf %248, %250 : vector<18x32xf32>
    %252 = math.tanh %251 : vector<18x32xf32>
    %cst_82 = arith.constant 1.000000e+00 : f32
    %253 = vector.broadcast %cst_82 : f32 to vector<18x32xf32>
    %254 = arith.subf %253, %247 : vector<18x32xf32>
    %255 = arith.mulf %254, %252 : vector<18x32xf32>
    %256 = arith.mulf %247, %214 : vector<18x32xf32>
    %257 = arith.addf %255, %256 : vector<18x32xf32>
    %c5_83 = arith.constant 5 : index
    %c0_84 = arith.constant 0 : index
    %c0_85 = arith.constant 0 : index
    %258 = vector.load %arg12[%c5_83, %c0_84, %c0_85] : memref<8x18x32xf32, #tpu.memory_space<vmem>>, vector<1x18x32xf32>
    %259 = vector.shape_cast %258 : vector<1x18x32xf32> to vector<18x32xf32>
    %260 = vector.shape_cast %257 : vector<18x32xf32> to vector<1x18x32xf32>
    tpu.vector_store %arg12[%c5_83, %c0_84, %c0_85], %260 {strides = array<i32>} : memref<8x18x32xf32, #tpu.memory_space<vmem>>, vector<1x18x32xf32>,
    %cst_86 = arith.constant dense<0.000000e+00> : vector<18x16xf32>
    %261 = tpu.matmul %257, %4, %cst_86 {dimension_numbers = #tpu.dot_dimension_numbers<[1], [0], [0], [1], [0, 0, 1, 1], [], []>} : vector<18x32xf32>, vector<32x16xf32>, vector<18x16xf32> -> vector<18x16xf32>
    %262 = vector.broadcast %5 : vector<1x16xf32> to vector<18x16xf32>
    %263 = arith.addf %261, %262 : vector<18x16xf32>
    %cst_87 = arith.constant dense<0.000000e+00> : vector<18x1xf32>
    %264 = tpu.matmul %263, %6, %cst_87 {dimension_numbers = #tpu.dot_dimension_numbers<[1], [0], [0], [1], [0, 0, 1, 1], [], []>} : vector<18x16xf32>, vector<16x1xf32>, vector<18x1xf32> -> vector<18x1xf32>
    %265 = vector.broadcast %7 : vector<1x1xf32> to vector<18x1xf32>
    %266 = arith.addf %264, %265 : vector<18x1xf32>
    %c6 = arith.constant 6 : index
    %c0_88 = arith.constant 0 : index
    %c0_89 = arith.constant 0 : index
    %267 = vector.load %arg0[%c6, %c0_88, %c0_89] : memref<8x18x32xf32, #tpu.memory_space<vmem>>, vector<1x18x32xf32>
    %268 = vector.shape_cast %267 : vector<1x18x32xf32> to vector<18x32xf32>
    %cst_90 = arith.constant dense<0.000000e+00> : vector<18x96xf32>
    %269 = tpu.matmul %268, %0, %cst_90 {dimension_numbers = #tpu.dot_dimension_numbers<[1], [0], [0], [1], [0, 0, 1, 1], [], []>} : vector<18x32xf32>, vector<32x96xf32>, vector<18x96xf32> -> vector<18x96xf32>
    %270 = vector.broadcast %2 : vector<1x96xf32> to vector<18x96xf32>
    %271 = arith.addf %269, %270 : vector<18x96xf32>
    %cst_91 = arith.constant dense<0.000000e+00> : vector<18x96xf32>
    %272 = tpu.matmul %257, %1, %cst_91 {dimension_numbers = #tpu.dot_dimension_numbers<[1], [0], [0], [1], [0, 0, 1, 1], [], []>} : vector<18x32xf32>, vector<32x96xf32>, vector<18x96xf32> -> vector<18x96xf32>
    %273 = vector.broadcast %3 : vector<1x96xf32> to vector<18x96xf32>
    %274 = arith.addf %272, %273 : vector<18x96xf32>
    %275 = vector.extract_strided_slice %271 {offsets = [0, 0], sizes = [18, 32], strides = [1, 1]} : vector<18x96xf32> to vector<18x32xf32>
    %276 = vector.extract_strided_slice %274 {offsets = [0, 0], sizes = [18, 32], strides = [1, 1]} : vector<18x96xf32> to vector<18x32xf32>
    %277 = arith.addf %275, %276 : vector<18x32xf32>
    %278 = arith.negf %277 : vector<18x32xf32>
    %279 = math.exp %278 : vector<18x32xf32>
    %cst_92 = arith.constant 1.000000e+00 : f32
    %280 = vector.broadcast %cst_92 : f32 to vector<18x32xf32>
    %281 = arith.addf %280, %279 : vector<18x32xf32>
    %282 = arith.divf %280, %281 : vector<18x32xf32>
    %283 = vector.extract_strided_slice %271 {offsets = [0, 32], sizes = [18, 32], strides = [1, 1]} : vector<18x96xf32> to vector<18x32xf32>
    %284 = vector.extract_strided_slice %274 {offsets = [0, 32], sizes = [18, 32], strides = [1, 1]} : vector<18x96xf32> to vector<18x32xf32>
    %285 = arith.addf %283, %284 : vector<18x32xf32>
    %286 = arith.negf %285 : vector<18x32xf32>
    %287 = math.exp %286 : vector<18x32xf32>
    %cst_93 = arith.constant 1.000000e+00 : f32
    %288 = vector.broadcast %cst_93 : f32 to vector<18x32xf32>
    %289 = arith.addf %288, %287 : vector<18x32xf32>
    %290 = arith.divf %288, %289 : vector<18x32xf32>
    %291 = vector.extract_strided_slice %271 {offsets = [0, 64], sizes = [18, 32], strides = [1, 1]} : vector<18x96xf32> to vector<18x32xf32>
    %292 = vector.extract_strided_slice %274 {offsets = [0, 64], sizes = [18, 32], strides = [1, 1]} : vector<18x96xf32> to vector<18x32xf32>
    %293 = arith.mulf %282, %292 : vector<18x32xf32>
    %294 = arith.addf %291, %293 : vector<18x32xf32>
    %295 = math.tanh %294 : vector<18x32xf32>
    %cst_94 = arith.constant 1.000000e+00 : f32
    %296 = vector.broadcast %cst_94 : f32 to vector<18x32xf32>
    %297 = arith.subf %296, %290 : vector<18x32xf32>
    %298 = arith.mulf %297, %295 : vector<18x32xf32>
    %299 = arith.mulf %290, %257 : vector<18x32xf32>
    %300 = arith.addf %298, %299 : vector<18x32xf32>
    %c6_95 = arith.constant 6 : index
    %c0_96 = arith.constant 0 : index
    %c0_97 = arith.constant 0 : index
    %301 = vector.load %arg12[%c6_95, %c0_96, %c0_97] : memref<8x18x32xf32, #tpu.memory_space<vmem>>, vector<1x18x32xf32>
    %302 = vector.shape_cast %301 : vector<1x18x32xf32> to vector<18x32xf32>
    %303 = vector.shape_cast %300 : vector<18x32xf32> to vector<1x18x32xf32>
    tpu.vector_store %arg12[%c6_95, %c0_96, %c0_97], %303 {strides = array<i32>} : memref<8x18x32xf32, #tpu.memory_space<vmem>>, vector<1x18x32xf32>,
    %cst_98 = arith.constant dense<0.000000e+00> : vector<18x16xf32>
    %304 = tpu.matmul %300, %4, %cst_98 {dimension_numbers = #tpu.dot_dimension_numbers<[1], [0], [0], [1], [0, 0, 1, 1], [], []>} : vector<18x32xf32>, vector<32x16xf32>, vector<18x16xf32> -> vector<18x16xf32>
    %305 = vector.broadcast %5 : vector<1x16xf32> to vector<18x16xf32>
    %306 = arith.addf %304, %305 : vector<18x16xf32>
    %cst_99 = arith.constant dense<0.000000e+00> : vector<18x1xf32>
    %307 = tpu.matmul %306, %6, %cst_99 {dimension_numbers = #tpu.dot_dimension_numbers<[1], [0], [0], [1], [0, 0, 1, 1], [], []>} : vector<18x16xf32>, vector<16x1xf32>, vector<18x1xf32> -> vector<18x1xf32>
    %308 = vector.broadcast %7 : vector<1x1xf32> to vector<18x1xf32>
    %309 = arith.addf %307, %308 : vector<18x1xf32>
    %c7 = arith.constant 7 : index
    %c0_100 = arith.constant 0 : index
    %c0_101 = arith.constant 0 : index
    %310 = vector.load %arg0[%c7, %c0_100, %c0_101] : memref<8x18x32xf32, #tpu.memory_space<vmem>>, vector<1x18x32xf32>
    %311 = vector.shape_cast %310 : vector<1x18x32xf32> to vector<18x32xf32>
    %cst_102 = arith.constant dense<0.000000e+00> : vector<18x96xf32>
    %312 = tpu.matmul %311, %0, %cst_102 {dimension_numbers = #tpu.dot_dimension_numbers<[1], [0], [0], [1], [0, 0, 1, 1], [], []>} : vector<18x32xf32>, vector<32x96xf32>, vector<18x96xf32> -> vector<18x96xf32>
    %313 = vector.broadcast %2 : vector<1x96xf32> to vector<18x96xf32>
    %314 = arith.addf %312, %313 : vector<18x96xf32>
    %cst_103 = arith.constant dense<0.000000e+00> : vector<18x96xf32>
    %315 = tpu.matmul %300, %1, %cst_103 {dimension_numbers = #tpu.dot_dimension_numbers<[1], [0], [0], [1], [0, 0, 1, 1], [], []>} : vector<18x32xf32>, vector<32x96xf32>, vector<18x96xf32> -> vector<18x96xf32>
    %316 = vector.broadcast %3 : vector<1x96xf32> to vector<18x96xf32>
    %317 = arith.addf %315, %316 : vector<18x96xf32>
    %318 = vector.extract_strided_slice %314 {offsets = [0, 0], sizes = [18, 32], strides = [1, 1]} : vector<18x96xf32> to vector<18x32xf32>
    %319 = vector.extract_strided_slice %317 {offsets = [0, 0], sizes = [18, 32], strides = [1, 1]} : vector<18x96xf32> to vector<18x32xf32>
    %320 = arith.addf %318, %319 : vector<18x32xf32>
    %321 = arith.negf %320 : vector<18x32xf32>
    %322 = math.exp %321 : vector<18x32xf32>
    %cst_104 = arith.constant 1.000000e+00 : f32
    %323 = vector.broadcast %cst_104 : f32 to vector<18x32xf32>
    %324 = arith.addf %323, %322 : vector<18x32xf32>
    %325 = arith.divf %323, %324 : vector<18x32xf32>
    %326 = vector.extract_strided_slice %314 {offsets = [0, 32], sizes = [18, 32], strides = [1, 1]} : vector<18x96xf32> to vector<18x32xf32>
    %327 = vector.extract_strided_slice %317 {offsets = [0, 32], sizes = [18, 32], strides = [1, 1]} : vector<18x96xf32> to vector<18x32xf32>
    %328 = arith.addf %326, %327 : vector<18x32xf32>
    %329 = arith.negf %328 : vector<18x32xf32>
    %330 = math.exp %329 : vector<18x32xf32>
    %cst_105 = arith.constant 1.000000e+00 : f32
    %331 = vector.broadcast %cst_105 : f32 to vector<18x32xf32>
    %332 = arith.addf %331, %330 : vector<18x32xf32>
    %333 = arith.divf %331, %332 : vector<18x32xf32>
    %334 = vector.extract_strided_slice %314 {offsets = [0, 64], sizes = [18, 32], strides = [1, 1]} : vector<18x96xf32> to vector<18x32xf32>
    %335 = vector.extract_strided_slice %317 {offsets = [0, 64], sizes = [18, 32], strides = [1, 1]} : vector<18x96xf32> to vector<18x32xf32>
    %336 = arith.mulf %325, %335 : vector<18x32xf32>
    %337 = arith.addf %334, %336 : vector<18x32xf32>
    %338 = math.tanh %337 : vector<18x32xf32>
    %cst_106 = arith.constant 1.000000e+00 : f32
    %339 = vector.broadcast %cst_106 : f32 to vector<18x32xf32>
    %340 = arith.subf %339, %333 : vector<18x32xf32>
    %341 = arith.mulf %340, %338 : vector<18x32xf32>
    %342 = arith.mulf %333, %300 : vector<18x32xf32>
    %343 = arith.addf %341, %342 : vector<18x32xf32>
    %c7_107 = arith.constant 7 : index
    %c0_108 = arith.constant 0 : index
    %c0_109 = arith.constant 0 : index
    %344 = vector.load %arg12[%c7_107, %c0_108, %c0_109] : memref<8x18x32xf32, #tpu.memory_space<vmem>>, vector<1x18x32xf32>
    %345 = vector.shape_cast %344 : vector<1x18x32xf32> to vector<18x32xf32>
    %346 = vector.shape_cast %343 : vector<18x32xf32> to vector<1x18x32xf32>
    tpu.vector_store %arg12[%c7_107, %c0_108, %c0_109], %346 {strides = array<i32>} : memref<8x18x32xf32, #tpu.memory_space<vmem>>, vector<1x18x32xf32>,
    %cst_110 = arith.constant dense<0.000000e+00> : vector<18x16xf32>
    %347 = tpu.matmul %343, %4, %cst_110 {dimension_numbers = #tpu.dot_dimension_numbers<[1], [0], [0], [1], [0, 0, 1, 1], [], []>} : vector<18x32xf32>, vector<32x16xf32>, vector<18x16xf32> -> vector<18x16xf32>
    %348 = vector.broadcast %5 : vector<1x16xf32> to vector<18x16xf32>
    %349 = arith.addf %347, %348 : vector<18x16xf32>
    %cst_111 = arith.constant dense<0.000000e+00> : vector<18x1xf32>
    %350 = tpu.matmul %349, %6, %cst_111 {dimension_numbers = #tpu.dot_dimension_numbers<[1], [0], [0], [1], [0, 0, 1, 1], [], []>} : vector<18x16xf32>, vector<16x1xf32>, vector<18x1xf32> -> vector<18x1xf32>
    %351 = vector.broadcast %7 : vector<1x1xf32> to vector<18x1xf32>
    %352 = arith.addf %350, %351 : vector<18x1xf32>
    %353 = tpu.concatenate %51, %94, %137, %180, %223, %266, %309, %352 in 1 : vector<18x1xf32>, vector<18x1xf32>, vector<18x1xf32>, vector<18x1xf32>, vector<18x1xf32>, vector<18x1xf32>, vector<18x1xf32>, vector<18x1xf32> -> vector<18x8xf32>
    %c0_112 = arith.constant 0 : index
    %c0_113 = arith.constant 0 : index
    %354 = vector.load %arg1[%c0_112, %c0_113] : memref<18x8xf32, #tpu.memory_space<vmem>>, vector<18x8xf32>
    %cst_114 = arith.constant 5.000000e-01 : f32
    %355 = vector.broadcast %cst_114 : f32 to vector<18x8xf32>
    %356 = arith.cmpf ogt, %354, %355 : vector<18x8xf32>
    %cst_115 = arith.constant -1.000000e+09 : f32
    %357 = vector.broadcast %cst_115 : f32 to vector<18x8xf32>
    %358 = arith.select %356, %357, %353 : vector<18x8xi1>, vector<18x8xf32>
    %cst_116 = arith.constant dense<0xFF800000> : vector<18xf32>
    %359 = vector.multi_reduction <maximumf>, %358, %cst_116 [1] : vector<18x8xf32> to vector<18xf32>
    %360 = vector.shape_cast %359 : vector<18xf32> to vector<18x1xf32>
    %361 = vector.broadcast %360 : vector<18x1xf32> to vector<18x8xf32>
    %362 = arith.subf %358, %361 : vector<18x8xf32>
    %363 = math.exp %362 : vector<18x8xf32>
    %cst_117 = arith.constant dense<0.000000e+00> : vector<18xf32>
    %364 = vector.multi_reduction <add>, %363, %cst_117 [1] : vector<18x8xf32> to vector<18xf32>
    %365 = vector.shape_cast %364 : vector<18xf32> to vector<18x1xf32>
    %366 = tpu.reciprocal %365 : vector<18x1xf32> -> vector<18x1xf32>
    %367 = vector.broadcast %366 : vector<18x1xf32> to vector<18x8xf32>
    %368 = arith.mulf %363, %367 : vector<18x8xf32>
    %cst_118 = arith.constant 0.000000e+00 : f32
    %369 = vector.broadcast %cst_118 : f32 to vector<18x32xf32>
    %370 = vector.extract_strided_slice %368 {offsets = [0, 0], sizes = [18, 1], strides = [1, 1]} : vector<18x8xf32> to vector<18x1xf32>
    %371 = vector.broadcast %370 : vector<18x1xf32> to vector<18x32xf32>
    %372 = arith.mulf %371, %42 : vector<18x32xf32>
    %373 = arith.addf %369, %372 : vector<18x32xf32>
    %374 = vector.extract_strided_slice %368 {offsets = [0, 1], sizes = [18, 1], strides = [1, 1]} : vector<18x8xf32> to vector<18x1xf32>
    %375 = vector.broadcast %374 : vector<18x1xf32> to vector<18x32xf32>
    %376 = arith.mulf %375, %85 : vector<18x32xf32>
    %377 = arith.addf %373, %376 : vector<18x32xf32>
    %378 = vector.extract_strided_slice %368 {offsets = [0, 2], sizes = [18, 1], strides = [1, 1]} : vector<18x8xf32> to vector<18x1xf32>
    %379 = vector.broadcast %378 : vector<18x1xf32> to vector<18x32xf32>
    %380 = arith.mulf %379, %128 : vector<18x32xf32>
    %381 = arith.addf %377, %380 : vector<18x32xf32>
    %382 = vector.extract_strided_slice %368 {offsets = [0, 3], sizes = [18, 1], strides = [1, 1]} : vector<18x8xf32> to vector<18x1xf32>
    %383 = vector.broadcast %382 : vector<18x1xf32> to vector<18x32xf32>
    %384 = arith.mulf %383, %171 : vector<18x32xf32>
    %385 = arith.addf %381, %384 : vector<18x32xf32>
    %386 = vector.extract_strided_slice %368 {offsets = [0, 4], sizes = [18, 1], strides = [1, 1]} : vector<18x8xf32> to vector<18x1xf32>
    %387 = vector.broadcast %386 : vector<18x1xf32> to vector<18x32xf32>
    %388 = arith.mulf %387, %214 : vector<18x32xf32>
    %389 = arith.addf %385, %388 : vector<18x32xf32>
    %390 = vector.extract_strided_slice %368 {offsets = [0, 5], sizes = [18, 1], strides = [1, 1]} : vector<18x8xf32> to vector<18x1xf32>
    %391 = vector.broadcast %390 : vector<18x1xf32> to vector<18x32xf32>
    %392 = arith.mulf %391, %257 : vector<18x32xf32>
    %393 = arith.addf %389, %392 : vector<18x32xf32>
    %394 = vector.extract_strided_slice %368 {offsets = [0, 6], sizes = [18, 1], strides = [1, 1]} : vector<18x8xf32> to vector<18x1xf32>
    %395 = vector.broadcast %394 : vector<18x1xf32> to vector<18x32xf32>
    %396 = arith.mulf %395, %300 : vector<18x32xf32>
    %397 = arith.addf %393, %396 : vector<18x32xf32>
    %398 = vector.extract_strided_slice %368 {offsets = [0, 7], sizes = [18, 1], strides = [1, 1]} : vector<18x8xf32> to vector<18x1xf32>
    %399 = vector.broadcast %398 : vector<18x1xf32> to vector<18x32xf32>
    %400 = arith.mulf %399, %343 : vector<18x32xf32>
    %401 = arith.addf %397, %400 : vector<18x32xf32>
    %c0_119 = arith.constant 0 : index
    %c0_120 = arith.constant 0 : index
    %402 = vector.load %arg10[%c0_119, %c0_120] : memref<32x32xf32, #tpu.memory_space<vmem>>, vector<32x32xf32>
    %cst_121 = arith.constant dense<0.000000e+00> : vector<18x32xf32>
    %403 = tpu.matmul %401, %402, %cst_121 {dimension_numbers = #tpu.dot_dimension_numbers<[1], [0], [0], [1], [0, 0, 1, 1], [], []>} : vector<18x32xf32>, vector<32x32xf32>, vector<18x32xf32> -> vector<18x32xf32>
    %c0_122 = arith.constant 0 : index
    %c0_123 = arith.constant 0 : index
    %404 = vector.load %arg11[%c0_122, %c0_123] : memref<1x32xf32, #tpu.memory_space<vmem>>, vector<1x32xf32>
    %405 = vector.broadcast %404 : vector<1x32xf32> to vector<18x32xf32>
    %406 = arith.addf %403, %405 : vector<18x32xf32>
    %c0_124 = arith.constant 0 : index
    %c0_125 = arith.constant 0 : index
    %407 = vector.load %arg13[%c0_124, %c0_125] : memref<18x32xf32, #tpu.memory_space<vmem>>, vector<18x32xf32>
    tpu.vector_store %arg13[%c0_124, %c0_125], %406 {strides = array<i32>} : memref<18x32xf32, #tpu.memory_space<vmem>>, vector<18x32xf32>,
    return
  }
}

module attributes {stable_mosaic.version = 11 : i64} {
  func.func @_score_kernel(%arg0: memref<34x32xf32, #tpu.memory_space<vmem>>, %arg1: memref<32x16xf32, #tpu.memory_space<vmem>>, %arg2: memref<1x16xf32, #tpu.memory_space<vmem>>, %arg3: memref<16x1xf32, #tpu.memory_space<vmem>>, %arg4: memref<1x1xf32, #tpu.memory_space<vmem>>, %arg5: memref<34x1xf32, #tpu.memory_space<vmem>>, %arg6: memref<34x1xf32, #tpu.memory_space<vmem>>) attributes {dimension_semantics = [], scalar_prefetch = 0 : i64, scratch_operands = 0 : i64, tpu.core_type = #tpu.core_type<tc>} {
    %c0 = arith.constant 0 : index
    %c0_0 = arith.constant 0 : index
    %0 = vector.load %arg0[%c0, %c0_0] : memref<34x32xf32, #tpu.memory_space<vmem>>, vector<34x32xf32>
    %c0_1 = arith.constant 0 : index
    %c0_2 = arith.constant 0 : index
    %1 = vector.load %arg1[%c0_1, %c0_2] : memref<32x16xf32, #tpu.memory_space<vmem>>, vector<32x16xf32>
    %cst = arith.constant dense<0.000000e+00> : vector<34x16xf32>
    %2 = tpu.matmul %0, %1, %cst {dimension_numbers = #tpu.dot_dimension_numbers<[1], [0], [0], [1], [0, 0, 1, 1], [], []>} : vector<34x32xf32>, vector<32x16xf32>, vector<34x16xf32> -> vector<34x16xf32>
    %c0_3 = arith.constant 0 : index
    %c0_4 = arith.constant 0 : index
    %3 = vector.load %arg2[%c0_3, %c0_4] : memref<1x16xf32, #tpu.memory_space<vmem>>, vector<1x16xf32>
    %4 = vector.broadcast %3 : vector<1x16xf32> to vector<34x16xf32>
    %5 = arith.addf %2, %4 : vector<34x16xf32>
    %c0_5 = arith.constant 0 : index
    %c0_6 = arith.constant 0 : index
    %6 = vector.load %arg3[%c0_5, %c0_6] : memref<16x1xf32, #tpu.memory_space<vmem>>, vector<16x1xf32>
    %cst_7 = arith.constant dense<0.000000e+00> : vector<34x1xf32>
    %7 = tpu.matmul %5, %6, %cst_7 {dimension_numbers = #tpu.dot_dimension_numbers<[1], [0], [0], [1], [0, 0, 1, 1], [], []>} : vector<34x16xf32>, vector<16x1xf32>, vector<34x1xf32> -> vector<34x1xf32>
    %c0_8 = arith.constant 0 : index
    %c0_9 = arith.constant 0 : index
    %8 = vector.load %arg4[%c0_8, %c0_9] : memref<1x1xf32, #tpu.memory_space<vmem>>, vector<1x1xf32>
    %9 = vector.broadcast %8 : vector<1x1xf32> to vector<34x1xf32>
    %10 = arith.addf %7, %9 : vector<34x1xf32>
    %11 = arith.negf %10 : vector<34x1xf32>
    %12 = math.exp %11 : vector<34x1xf32>
    %cst_10 = arith.constant 1.000000e+00 : f32
    %13 = vector.broadcast %cst_10 : f32 to vector<34x1xf32>
    %14 = arith.addf %13, %12 : vector<34x1xf32>
    %15 = arith.divf %13, %14 : vector<34x1xf32>
    %cst_11 = arith.constant 1.000000e-07 : f32
    %cst_12 = arith.constant 0.99999988 : f32
    %16 = vector.broadcast %cst_11 : f32 to vector<34x1xf32>
    %17 = arith.maximumf %16, %15 : vector<34x1xf32>
    %18 = vector.broadcast %cst_12 : f32 to vector<34x1xf32>
    %19 = arith.minimumf %18, %17 : vector<34x1xf32>
    %20 = math.log %19 : vector<34x1xf32>
    %21 = arith.mulf %19, %20 : vector<34x1xf32>
    %cst_13 = arith.constant 1.000000e+00 : f32
    %22 = vector.broadcast %cst_13 : f32 to vector<34x1xf32>
    %23 = arith.subf %22, %19 : vector<34x1xf32>
    %cst_14 = arith.constant 1.000000e+00 : f32
    %24 = vector.broadcast %cst_14 : f32 to vector<34x1xf32>
    %25 = arith.subf %24, %19 : vector<34x1xf32>
    %26 = math.log %25 : vector<34x1xf32>
    %27 = arith.mulf %23, %26 : vector<34x1xf32>
    %28 = arith.addf %21, %27 : vector<34x1xf32>
    %cst_15 = arith.constant 0.000000e+00 : f32
    %29 = vector.broadcast %cst_15 : f32 to vector<34x1xf32>
    %30 = arith.subf %29, %28 : vector<34x1xf32>
    %cst_16 = arith.constant 1.44269502 : f32
    %31 = vector.broadcast %cst_16 : f32 to vector<34x1xf32>
    %32 = arith.mulf %30, %31 : vector<34x1xf32>
    %c0_17 = arith.constant 0 : index
    %c0_18 = arith.constant 0 : index
    %33 = vector.load %arg5[%c0_17, %c0_18] : memref<34x1xf32, #tpu.memory_space<vmem>>, vector<34x1xf32>
    tpu.vector_store %arg5[%c0_17, %c0_18], %15 {strides = array<i32>} : memref<34x1xf32, #tpu.memory_space<vmem>>, vector<34x1xf32>,
    %c0_19 = arith.constant 0 : index
    %c0_20 = arith.constant 0 : index
    %34 = vector.load %arg6[%c0_19, %c0_20] : memref<34x1xf32, #tpu.memory_space<vmem>>, vector<34x1xf32>
    tpu.vector_store %arg6[%c0_19, %c0_20], %32 {strides = array<i32>} : memref<34x1xf32, #tpu.memory_space<vmem>>, vector<34x1xf32>,
    return
  }
}

module attributes {stable_mosaic.version = 11 : i64} {
  func.func @_ban_kernel(%arg0: memref<2x8x32xf32, #tpu.memory_space<vmem>>, %arg1: memref<2x64xf32, #tpu.memory_space<vmem>>, %arg2: memref<32x32xf32, #tpu.memory_space<vmem>>, %arg3: memref<64x32xf32, #tpu.memory_space<vmem>>, %arg4: memref<32x32xf32, #tpu.memory_space<vmem>>, %arg5: memref<2x32xf32, #tpu.memory_space<vmem>>) attributes {dimension_semantics = [], scalar_prefetch = 0 : i64, scratch_operands = 0 : i64, tpu.core_type = #tpu.core_type<tc>} {
    %c0 = arith.constant 0 : index
    %c0_0 = arith.constant 0 : index
    %0 = vector.load %arg2[%c0, %c0_0] : memref<32x32xf32, #tpu.memory_space<vmem>>, vector<32x32xf32>
    %c0_1 = arith.constant 0 : index
    %c0_2 = arith.constant 0 : index
    %1 = vector.load %arg3[%c0_1, %c0_2] : memref<64x32xf32, #tpu.memory_space<vmem>>, vector<64x32xf32>
    %c0_3 = arith.constant 0 : index
    %c0_4 = arith.constant 0 : index
    %2 = vector.load %arg4[%c0_3, %c0_4] : memref<32x32xf32, #tpu.memory_space<vmem>>, vector<32x32xf32>
    %c0_5 = arith.constant 0 : index
    %c0_6 = arith.constant 0 : index
    %c0_7 = arith.constant 0 : index
    %3 = vector.load %arg0[%c0_5, %c0_6, %c0_7] : memref<2x8x32xf32, #tpu.memory_space<vmem>>, vector<1x8x32xf32>
    %4 = vector.shape_cast %3 : vector<1x8x32xf32> to vector<8x32xf32>
    %cst = arith.constant dense<0.000000e+00> : vector<8x32xf32>
    %5 = tpu.matmul %4, %0, %cst {dimension_numbers = #tpu.dot_dimension_numbers<[1], [0], [0], [1], [0, 0, 1, 1], [], []>} : vector<8x32xf32>, vector<32x32xf32>, vector<8x32xf32> -> vector<8x32xf32>
    %c0_8 = arith.constant 0 : index
    %c0_9 = arith.constant 0 : index
    %6 = vector.load %arg1[%c0_8, %c0_9] : memref<2x64xf32, #tpu.memory_space<vmem>>, vector<1x64xf32>
    %cst_10 = arith.constant dense<0.000000e+00> : vector<1x32xf32>
    %7 = tpu.matmul %6, %1, %cst_10 {dimension_numbers = #tpu.dot_dimension_numbers<[1], [0], [0], [1], [0, 0, 1, 1], [], []>} : vector<1x64xf32>, vector<64x32xf32>, vector<1x32xf32> -> vector<1x32xf32>
    %8 = vector.broadcast %7 : vector<1x32xf32> to vector<8x32xf32>
    %9 = arith.mulf %5, %8 : vector<8x32xf32>
    %cst_11 = arith.constant dense<0.000000e+00> : vector<8xf32>
    %10 = vector.multi_reduction <add>, %9, %cst_11 [1] : vector<8x32xf32> to vector<8xf32>
    %11 = vector.shape_cast %10 : vector<8xf32> to vector<8x1xf32>
    %cst_12 = arith.constant dense<0xFF800000> : vector<1xf32>
    %12 = vector.multi_reduction <maximumf>, %11, %cst_12 [0] : vector<8x1xf32> to vector<1xf32>
    %13 = vector.shape_cast %12 : vector<1xf32> to vector<1x1xf32>
    %14 = vector.broadcast %13 : vector<1x1xf32> to vector<8x1xf32>
    %15 = arith.subf %11, %14 : vector<8x1xf32>
    %16 = math.exp %15 : vector<8x1xf32>
    %cst_13 = arith.constant dense<0.000000e+00> : vector<1xf32>
    %17 = vector.multi_reduction <add>, %16, %cst_13 [0] : vector<8x1xf32> to vector<1xf32>
    %18 = vector.shape_cast %17 : vector<1xf32> to vector<1x1xf32>
    %19 = tpu.reciprocal %18 : vector<1x1xf32> -> vector<1x1xf32>
    %20 = vector.broadcast %19 : vector<1x1xf32> to vector<8x1xf32>
    %21 = arith.mulf %16, %20 : vector<8x1xf32>
    %22 = vector.broadcast %21 : vector<8x1xf32> to vector<8x32xf32>
    %23 = arith.mulf %22, %5 : vector<8x32xf32>
    %cst_14 = arith.constant dense<0.000000e+00> : vector<32xf32>
    %24 = vector.multi_reduction <add>, %23, %cst_14 [0] : vector<8x32xf32> to vector<32xf32>
    %25 = vector.shape_cast %24 : vector<32xf32> to vector<1x32xf32>
    %26 = arith.mulf %25, %7 : vector<1x32xf32>
    %cst_15 = arith.constant dense<0.000000e+00> : vector<1x32xf32>
    %27 = tpu.matmul %26, %2, %cst_15 {dimension_numbers = #tpu.dot_dimension_numbers<[1], [0], [0], [1], [0, 0, 1, 1], [], []>} : vector<1x32xf32>, vector<32x32xf32>, vector<1x32xf32> -> vector<1x32xf32>
    %cst_16 = arith.constant dense<0.000000e+00> : vector<32xf32>
    %28 = vector.multi_reduction <add>, %4, %cst_16 [0] : vector<8x32xf32> to vector<32xf32>
    %29 = vector.shape_cast %28 : vector<32xf32> to vector<1x32xf32>
    %cst_17 = arith.constant 8.000000e+00 : f32
    %30 = vector.broadcast %cst_17 : f32 to vector<1x32xf32>
    %31 = arith.divf %29, %30 : vector<1x32xf32>
    %32 = arith.addf %31, %27 : vector<1x32xf32>
    %c1 = arith.constant 1 : index
    %c0_18 = arith.constant 0 : index
    %c0_19 = arith.constant 0 : index
    %33 = vector.load %arg0[%c1, %c0_18, %c0_19] : memref<2x8x32xf32, #tpu.memory_space<vmem>>, vector<1x8x32xf32>
    %34 = vector.shape_cast %33 : vector<1x8x32xf32> to vector<8x32xf32>
    %cst_20 = arith.constant dense<0.000000e+00> : vector<8x32xf32>
    %35 = tpu.matmul %34, %0, %cst_20 {dimension_numbers = #tpu.dot_dimension_numbers<[1], [0], [0], [1], [0, 0, 1, 1], [], []>} : vector<8x32xf32>, vector<32x32xf32>, vector<8x32xf32> -> vector<8x32xf32>
    %c1_21 = arith.constant 1 : index
    %c0_22 = arith.constant 0 : index
    %36 = vector.load %arg1[%c1_21, %c0_22] : memref<2x64xf32, #tpu.memory_space<vmem>>, vector<1x64xf32>
    %cst_23 = arith.constant dense<0.000000e+00> : vector<1x32xf32>
    %37 = tpu.matmul %36, %1, %cst_23 {dimension_numbers = #tpu.dot_dimension_numbers<[1], [0], [0], [1], [0, 0, 1, 1], [], []>} : vector<1x64xf32>, vector<64x32xf32>, vector<1x32xf32> -> vector<1x32xf32>
    %38 = vector.broadcast %37 : vector<1x32xf32> to vector<8x32xf32>
    %39 = arith.mulf %35, %38 : vector<8x32xf32>
    %cst_24 = arith.constant dense<0.000000e+00> : vector<8xf32>
    %40 = vector.multi_reduction <add>, %39, %cst_24 [1] : vector<8x32xf32> to vector<8xf32>
    %41 = vector.shape_cast %40 : vector<8xf32> to vector<8x1xf32>
    %cst_25 = arith.constant dense<0xFF800000> : vector<1xf32>
    %42 = vector.multi_reduction <maximumf>, %41, %cst_25 [0] : vector<8x1xf32> to vector<1xf32>
    %43 = vector.shape_cast %42 : vector<1xf32> to vector<1x1xf32>
    %44 = vector.broadcast %43 : vector<1x1xf32> to vector<8x1xf32>
    %45 = arith.subf %41, %44 : vector<8x1xf32>
    %46 = math.exp %45 : vector<8x1xf32>
    %cst_26 = arith.constant dense<0.000000e+00> : vector<1xf32>
    %47 = vector.multi_reduction <add>, %46, %cst_26 [0] : vector<8x1xf32> to vector<1xf32>
    %48 = vector.shape_cast %47 : vector<1xf32> to vector<1x1xf32>
    %49 = tpu.reciprocal %48 : vector<1x1xf32> -> vector<1x1xf32>
    %50 = vector.broadcast %49 : vector<1x1xf32> to vector<8x1xf32>
    %51 = arith.mulf %46, %50 : vector<8x1xf32>
    %52 = vector.broadcast %51 : vector<8x1xf32> to vector<8x32xf32>
    %53 = arith.mulf %52, %35 : vector<8x32xf32>
    %cst_27 = arith.constant dense<0.000000e+00> : vector<32xf32>
    %54 = vector.multi_reduction <add>, %53, %cst_27 [0] : vector<8x32xf32> to vector<32xf32>
    %55 = vector.shape_cast %54 : vector<32xf32> to vector<1x32xf32>
    %56 = arith.mulf %55, %37 : vector<1x32xf32>
    %cst_28 = arith.constant dense<0.000000e+00> : vector<1x32xf32>
    %57 = tpu.matmul %56, %2, %cst_28 {dimension_numbers = #tpu.dot_dimension_numbers<[1], [0], [0], [1], [0, 0, 1, 1], [], []>} : vector<1x32xf32>, vector<32x32xf32>, vector<1x32xf32> -> vector<1x32xf32>
    %cst_29 = arith.constant dense<0.000000e+00> : vector<32xf32>
    %58 = vector.multi_reduction <add>, %34, %cst_29 [0] : vector<8x32xf32> to vector<32xf32>
    %59 = vector.shape_cast %58 : vector<32xf32> to vector<1x32xf32>
    %cst_30 = arith.constant 8.000000e+00 : f32
    %60 = vector.broadcast %cst_30 : f32 to vector<1x32xf32>
    %61 = arith.divf %59, %60 : vector<1x32xf32>
    %62 = arith.addf %61, %57 : vector<1x32xf32>
    %63 = tpu.concatenate %32, %62 in 0 : vector<1x32xf32>, vector<1x32xf32> -> vector<2x32xf32>
    %c0_31 = arith.constant 0 : index
    %c0_32 = arith.constant 0 : index
    %64 = vector.load %arg5[%c0_31, %c0_32] : memref<2x32xf32, #tpu.memory_space<vmem>>, vector<2x32xf32>
    tpu.vector_store %arg5[%c0_31, %c0_32], %63 {strides = array<i32>} : memref<2x32xf32, #tpu.memory_space<vmem>>, vector<2x32xf32>,
    return
  }
}

module attributes {stable_mosaic.version = 11 : i64} {
  func.func @_simclr_kernel(%arg0: memref<32x192xf32, #tpu.memory_space<vmem>>, %arg1: memref<192x64xf32, #tpu.memory_space<vmem>>, %arg2: memref<1x64xf32, #tpu.memory_space<vmem>>, %arg3: memref<64x64xf32, #tpu.memory_space<vmem>>, %arg4: memref<1x64xf32, #tpu.memory_space<vmem>>, %arg5: memref<2x64xf32, #tpu.memory_space<vmem>>) attributes {dimension_semantics = [], scalar_prefetch = 0 : i64, scratch_operands = 0 : i64, tpu.core_type = #tpu.core_type<tc>} {
    %c0 = arith.constant 0 : index
    %c0_0 = arith.constant 0 : index
    %0 = vector.load %arg0[%c0, %c0_0] : memref<32x192xf32, #tpu.memory_space<vmem>>, vector<32x192xf32>
    %c0_1 = arith.constant 0 : index
    %c0_2 = arith.constant 0 : index
    %1 = vector.load %arg1[%c0_1, %c0_2] : memref<192x64xf32, #tpu.memory_space<vmem>>, vector<192x64xf32>
    %cst = arith.constant dense<0.000000e+00> : vector<32x64xf32>
    %2 = tpu.matmul %0, %1, %cst {dimension_numbers = #tpu.dot_dimension_numbers<[1], [0], [0], [1], [0, 0, 1, 1], [], []>} : vector<32x192xf32>, vector<192x64xf32>, vector<32x64xf32> -> vector<32x64xf32>
    %c0_3 = arith.constant 0 : index
    %c0_4 = arith.constant 0 : index
    %3 = vector.load %arg2[%c0_3, %c0_4] : memref<1x64xf32, #tpu.memory_space<vmem>>, vector<1x64xf32>
    %4 = vector.broadcast %3 : vector<1x64xf32> to vector<32x64xf32>
    %5 = arith.addf %2, %4 : vector<32x64xf32>
    %cst_5 = arith.constant 0.000000e+00 : f32
    %6 = vector.broadcast %cst_5 : f32 to vector<32x64xf32>
    %7 = arith.maximumf %5, %6 : vector<32x64xf32>
    %8 = vector.extract_strided_slice %7 {offsets = [0, 0], sizes = [16, 64], strides = [1, 1]} : vector<32x64xf32> to vector<16x64xf32>
    %cst_6 = arith.constant dense<0.000000e+00> : vector<64xf32>
    %9 = vector.multi_reduction <add>, %8, %cst_6 [0] : vector<16x64xf32> to vector<64xf32>
    %10 = vector.shape_cast %9 : vector<64xf32> to vector<1x64xf32>
    %cst_7 = arith.constant 1.600000e+01 : f32
    %11 = vector.broadcast %cst_7 : f32 to vector<1x64xf32>
    %12 = arith.divf %10, %11 : vector<1x64xf32>
    %13 = vector.extract_strided_slice %7 {offsets = [16, 0], sizes = [16, 64], strides = [1, 1]} : vector<32x64xf32> to vector<16x64xf32>
    %cst_8 = arith.constant dense<0.000000e+00> : vector<64xf32>
    %14 = vector.multi_reduction <add>, %13, %cst_8 [0] : vector<16x64xf32> to vector<64xf32>
    %15 = vector.shape_cast %14 : vector<64xf32> to vector<1x64xf32>
    %cst_9 = arith.constant 1.600000e+01 : f32
    %16 = vector.broadcast %cst_9 : f32 to vector<1x64xf32>
    %17 = arith.divf %15, %16 : vector<1x64xf32>
    %18 = tpu.concatenate %12, %17 in 0 : vector<1x64xf32>, vector<1x64xf32> -> vector<2x64xf32>
    %c0_10 = arith.constant 0 : index
    %c0_11 = arith.constant 0 : index
    %19 = vector.load %arg3[%c0_10, %c0_11] : memref<64x64xf32, #tpu.memory_space<vmem>>, vector<64x64xf32>
    %cst_12 = arith.constant dense<0.000000e+00> : vector<2x64xf32>
    %20 = tpu.matmul %18, %19, %cst_12 {dimension_numbers = #tpu.dot_dimension_numbers<[1], [0], [0], [1], [0, 0, 1, 1], [], []>} : vector<2x64xf32>, vector<64x64xf32>, vector<2x64xf32> -> vector<2x64xf32>
    %c0_13 = arith.constant 0 : index
    %c0_14 = arith.constant 0 : index
    %21 = vector.load %arg4[%c0_13, %c0_14] : memref<1x64xf32, #tpu.memory_space<vmem>>, vector<1x64xf32>
    %22 = vector.broadcast %21 : vector<1x64xf32> to vector<2x64xf32>
    %23 = arith.addf %20, %22 : vector<2x64xf32>
    %c0_15 = arith.constant 0 : index
    %c0_16 = arith.constant 0 : index
    %24 = vector.load %arg5[%c0_15, %c0_16] : memref<2x64xf32, #tpu.memory_space<vmem>>, vector<2x64xf32>
    tpu.vector_store %arg5[%c0_15, %c0_16], %23 {strides = array<i32>} : memref<2x64xf32, #tpu.memory_space<vmem>>, vector<2x64xf32>,
    return
  }
}

module attributes {stable_mosaic.version = 11 : i64} {
  func.func @_classifier_kernel(%arg0: memref<8x288xf32, #tpu.memory_space<vmem>>, %arg1: memref<288x32xf32, #tpu.memory_space<vmem>>, %arg2: memref<1x32xf32, #tpu.memory_space<vmem>>, %arg3: memref<32x1xf32, #tpu.memory_space<vmem>>, %arg4: memref<1x1xf32, #tpu.memory_space<vmem>>, %arg5: memref<8x1xf32, #tpu.memory_space<vmem>>) attributes {dimension_semantics = [], scalar_prefetch = 0 : i64, scratch_operands = 0 : i64, tpu.core_type = #tpu.core_type<tc>} {
    %c0 = arith.constant 0 : index
    %c0_0 = arith.constant 0 : index
    %0 = vector.load %arg0[%c0, %c0_0] : memref<8x288xf32, #tpu.memory_space<vmem>>, vector<8x288xf32>
    %c0_1 = arith.constant 0 : index
    %c0_2 = arith.constant 0 : index
    %1 = vector.load %arg1[%c0_1, %c0_2] : memref<288x32xf32, #tpu.memory_space<vmem>>, vector<288x32xf32>
    %cst = arith.constant dense<0.000000e+00> : vector<8x32xf32>
    %2 = tpu.matmul %0, %1, %cst {dimension_numbers = #tpu.dot_dimension_numbers<[1], [0], [0], [1], [0, 0, 1, 1], [], []>} : vector<8x288xf32>, vector<288x32xf32>, vector<8x32xf32> -> vector<8x32xf32>
    %c0_3 = arith.constant 0 : index
    %c0_4 = arith.constant 0 : index
    %3 = vector.load %arg2[%c0_3, %c0_4] : memref<1x32xf32, #tpu.memory_space<vmem>>, vector<1x32xf32>
    %4 = vector.broadcast %3 : vector<1x32xf32> to vector<8x32xf32>
    %5 = arith.addf %2, %4 : vector<8x32xf32>
    %cst_5 = arith.constant 0.000000e+00 : f32
    %6 = vector.broadcast %cst_5 : f32 to vector<8x32xf32>
    %7 = arith.maximumf %5, %6 : vector<8x32xf32>
    %c0_6 = arith.constant 0 : index
    %c0_7 = arith.constant 0 : index
    %8 = vector.load %arg3[%c0_6, %c0_7] : memref<32x1xf32, #tpu.memory_space<vmem>>, vector<32x1xf32>
    %cst_8 = arith.constant dense<0.000000e+00> : vector<8x1xf32>
    %9 = tpu.matmul %7, %8, %cst_8 {dimension_numbers = #tpu.dot_dimension_numbers<[1], [0], [0], [1], [0, 0, 1, 1], [], []>} : vector<8x32xf32>, vector<32x1xf32>, vector<8x1xf32> -> vector<8x1xf32>
    %c0_9 = arith.constant 0 : index
    %c0_10 = arith.constant 0 : index
    %10 = vector.load %arg4[%c0_9, %c0_10] : memref<1x1xf32, #tpu.memory_space<vmem>>, vector<1x1xf32>
    %11 = vector.broadcast %10 : vector<1x1xf32> to vector<8x1xf32>
    %12 = arith.addf %9, %11 : vector<8x1xf32>
    %c0_11 = arith.constant 0 : index
    %c0_12 = arith.constant 0 : index
    %13 = vector.load %arg5[%c0_11, %c0_12] : memref<8x1xf32, #tpu.memory_space<vmem>>, vector<8x1xf32>
    tpu.vector_store %arg5[%c0_11, %c0_12], %12 {strides = array<i32>} : memref<8x1xf32, #tpu.memory_space<vmem>>, vector<8x1xf32>,
    return
  }
}

</mosaic_0001>

<bundles_post_ra>
// kernel: net_forward.7
= control target key start
LH: loop header
LB: loop body
LE: loop exit
PB: predicated region body
PF: predicated region fallthrough
CT: control target
= control target key end

     0   :  { %v498_v0 = vmov 0.0|0.0   ;;  %vm499_vm0 = vmmov 0   ;;  %v500_v4 = vmov 0.0   ;;  %vm40_vm1 = vcmask 261120   ;;  %s630_s1 = inlined_call_operand.vmem [shape: f32[32,16], index: 1, kind: input, shape index: {}]   ;;  %s631_s0 = inlined_call_operand.vmem [shape: f32[34,32], index: 0, kind: input, shape index: {}]   ;;  %s632_s3 = inlined_call_operand.vmem [shape: f32[16,1], index: 3, kind: input, shape index: {}]   ;;  %s633_s4 = inlined_call_operand.<no memory space> [shape: f32[1,1], index: 4, kind: input, shape index: {}]   ;;  %s634_s2 = inlined_call_operand.vmem [shape: f32[1,16], index: 2, kind: input, shape index: {}]   ;;  %s635_s5 = inlined_call_operand.vmem [shape: f32[34,1], index: 5, kind: output, shape index: {0}]   ;;  %s636_s6 = inlined_call_operand.vmem [shape: f32[34,1], index: 6, kind: output, shape index: {1}]  }
   0x1   :  { %446 = vmatprep.subr.bf16.mxu0 %v498_v0  ;;  %v29_v1 = vld [vmem:[%s630_s1] sm:$0xff]  ;;  %v30_v2 = vld [vmem:[%s630_s1 + $0x8] sm:$0xff]  ;;  %v31_v3 = vld [vmem:[%s630_s1 + $0x10] sm:$0xff]  ;;  %412 = vmatprep.mubr.msk.f32.mxu0 %vm499_vm0, %v500_v4  ;;  %v12_v16 = vstv %s633_s4  ;;  %vm155_vm2 = vcmask 130048   ;;  %vm351_vm3 = vcmask 7168   ;;  %vm356_vm4 = vcmask 1024  }
   0x2   :  { %v447_v5 = vpack.c.bf16 %v30_v2, %v29_v1  ;;  %v32_v6 = vld [vmem:[%s630_s1 + $0x18] sm:$0xff]  ;;  %452 = vmatprep.subr.bf16.mxu1 %v498_v0  ;;  %431 = vmatprep.mubr.msk.f32.mxu1 %vm499_vm0, %v500_v4  ;;  %v24_v8 = vld [vmem:[%s631_s0] sm:$0xff]  ;;  %v25_v9 = vld [vmem:[%s631_s0 + $0x8] sm:$0xff]  ;;  %13 = vst [vmem:[#allocation2] sm:$0x1] %v12_v16 }
   0x3   :  { %v450_v7 = vpack.c.bf16 %v32_v6, %v31_v3  ;;  %v26_v10 = vld [vmem:[%s631_s0 + $0x10] sm:$0xff]  ;;  %v27_v11 = vld [vmem:[%s631_s0 + $0x18] sm:$0xff]  ;;  %v28_v12 = vld [vmem:[%s631_s0 + $0x20] sm:$0x3] }
   0x4   :  { %448 = vmatpush3.bf16.msra.mxu0 %v447_v5  ;;  %v146_v13 = vld [vmem:[%s632_s3] sm:$0xff]  ;;  %v147_v14 = vld [vmem:[%s632_s3 + $0x8] sm:$0xff] }
   0x5   :  { %449 = vmatprep.subr.bf16.mxu0 %v498_v0  ;;  %v453_v15 = vpack.c.bf16 %v147_v14, %v146_v13  ;;  %v371_v17 = vld [vmem:[%s634_s2] ss:$0 sm:$0xff] }
   0x7   :  { %454 = vmatpush3.bf16.msra.mxu1 %v453_v15 }
   0x8   :  { %451 = vmatpush3.bf16.msra.mxu0 %v450_v7 }
   0x9   :  { %v377_v33 = vld [vmem:[#allocation2] ss:$0 sm:$0xff] }
   0xb   :  { %413 = vmatmul.mubr.msk.f32.vlgmr.msra.gmra.mrb[0].mxu0 %vm40_vm1, %v24_v8 }
   0xc   :  { %415 = vmatprep.mubr.msk.f32.mxu0 %vm499_vm0, %v500_v4 }
   0xf   :  { %416 = vmatmul.mubr.msk.f32.gmra.mrb[2].mxu0 %vm40_vm1, %v25_v9 }
  0x10   :  { %418 = vmatprep.mubr.msk.f32.mxu0 %vm499_vm0, %v500_v4 }
  0x13   :  { %419 = vmatmul.mubr.msk.f32.gmra.mrb[4].mxu0 %vm40_vm1, %v26_v10 }
  0x14   :  { %421 = vmatprep.mubr.msk.f32.mxu0 %vm499_vm0, %v500_v4 }
  0x17   :  { %422 = vmatmul.mubr.msk.f32.gmra.mrb[6].mxu0 %vm40_vm1, %v27_v11 }
  0x18   :  { %424 = vmatprep.mubr.msk.f32.mxu0 %vm499_vm0, %v500_v4 }
  0x1b   :  { %425 = vmatmul.mubr.msk.f32.gmra.mrb[8].mxu0 %vm40_vm1, %v28_v12 }
  0xde   :  { %v122_v18 = vpop.f32.mrb[0].mxu0 }
  0xdf   :  { %v123_v19 = vadd.f32 %v371_v17, %v122_v18  ;;  %v414_v20 = vpop.f32.mrb[1].mxu0 }
  0xe1   :  { %432 = vmatmul.mubr.msk.f32.vlgmr.msra.gmra.mrb[0].mxu1 %vm155_vm2, %v123_v19 }
  0xe2   :  { %v127_v21 = vpop.f32.mrb[2].mxu0  ;;  %434 = vmatprep.mubr.msk.f32.mxu1 %vm499_vm0, %v500_v4 }
  0xe3   :  { %v128_v22 = vadd.f32 %v371_v17, %v127_v21  ;;  %v417_v23 = vpop.f32.mrb[3].mxu0 }
  0xe5   :  { %435 = vmatmul.mubr.msk.f32.gmra.mrb[2].mxu1 %vm155_vm2, %v128_v22 }
  0xe6   :  { %v132_v24 = vpop.f32.mrb[4].mxu0  ;;  %437 = vmatprep.mubr.msk.f32.mxu1 %vm499_vm0, %v500_v4 }
  0xe7   :  { %v133_v25 = vadd.f32 %v371_v17, %v132_v24  ;;  %v420_v26 = vpop.f32.mrb[5].mxu0 }
  0xe9   :  { %438 = vmatmul.mubr.msk.f32.gmra.mrb[4].mxu1 %vm155_vm2, %v133_v25 }
  0xea   :  { %v137_v27 = vpop.f32.mrb[6].mxu0  ;;  %440 = vmatprep.mubr.msk.f32.mxu1 %vm499_vm0, %v500_v4 }
  0xeb   :  { %v138_v28 = vadd.f32 %v371_v17, %v137_v27  ;;  %v423_v29 = vpop.f32.mrb[7].mxu0 }
  0xed   :  { %441 = vmatmul.mubr.msk.f32.gmra.mrb[6].mxu1 %vm155_vm2, %v138_v28 }
  0xee   :  { %v142_v30 = vpop.f32.mrb[8].mxu0  ;;  %443 = vmatprep.mubr.msk.f32.mxu1 %vm499_vm0, %v500_v4 }
  0xef   :  { %v143_v31 = vadd.f32 %v371_v17, %v142_v30  ;;  %v426_v32 = vpop.f32.mrb[9].mxu0 }
  0xf1   :  { %444 = vmatmul.mubr.msk.f32.gmra.mrb[8].mxu1 %vm155_vm2, %v143_v31 }
 0x1b4   :  { %v237_v34 = vpop.f32.mrb[0].mxu1 }
 0x1b5   :  { %v238_v35 = vadd.f32 %v377_v33, %v237_v34  ;;  %v433_v36 = vpop.f32.mrb[1].mxu1 }
 0x1b7   :  { %v383_v37 = vmul.f32 -1.442695, %v238_v35 }
 0x1b8   :  { %v242_v38 = vpop.f32.mrb[2].mxu1 }
 0x1b9   :  { %458 = vpow2.f32 %v383_v37  ;;  %v243_v39 = vadd.f32 %v377_v33, %v242_v38  ;;  %v436_v40 = vpop.f32.mrb[3].mxu1 }
 0x1bb   :  { %v384_v41 = vmul.f32 -1.442695, %v243_v39 }
 0x1bc   :  { %v247_v42 = vpop.f32.mrb[4].mxu1 }
 0x1bd   :  { %460 = vpow2.f32 %v384_v41  ;;  %v248_v43 = vadd.f32 %v377_v33, %v247_v42  ;;  %v439_v44 = vpop.f32.mrb[5].mxu1 }
 0x1bf   :  { %v385_v45 = vmul.f32 -1.442695, %v248_v43 }
 0x1c0   :  { %v252_v46 = vpop.f32.mrb[6].mxu1 }
 0x1c1   :  { %462 = vpow2.f32 %v385_v45  ;;  %v253_v47 = vadd.f32 %v377_v33, %v252_v46  ;;  %v442_v48 = vpop.f32.mrb[7].mxu1 }
 0x1c3   :  { %v459_v49 = vpop.eup %458  ;;  %v386_v50 = vmul.f32 -1.442695, %v253_v47 }
 0x1c4   :  { %v276_v51 = vadd.f32 1.0, %v459_v49  ;;  %v257_v52 = vpop.f32.mrb[8].mxu1 }
 0x1c5   :  { %464 = vpow2.f32 %v386_v50  ;;  %v258_v53 = vadd.f32 %v377_v33, %v257_v52  ;;  %v445_v54 = vpop.f32.mrb[9].mxu1 }
 0x1c6   :  { %466 = vrcp.f32 %v276_v51 }
 0x1c7   :  { %v461_v55 = vpop.eup %460  ;;  %v387_v56 = vmul.f32 -1.442695, %v258_v53 }
 0x1c8   :  { %v277_v57 = vadd.f32 1.0, %v461_v55 }
 0x1c9   :  { %468 = vpow2.f32 %v387_v56 }
 0x1ca   :  { %470 = vrcp.f32 %v277_v57 }
 0x1cb   :  { %v463_v58 = vpop.eup %462 }
 0x1cc   :  { %v278_v59 = vadd.f32 1.0, %v463_v58 }
 0x1ce   :  { %472 = vrcp.f32 %v278_v59 }
 0x1cf   :  { %v465_v60 = vpop.eup %464 }
 0x1d0   :  { %v467_v61 = vpop.eup %466  ;;  %v279_v62 = vadd.f32 1.0, %v465_v60 }
 0x1d1   :  { %v291_v63 = vmax.f32 %v467_v61, 1e-07  ;;  %352 = vst.msk [vmem:[%s635_s5] sm:$0xff] %vm351_vm3, %v467_v61 }
 0x1d2   :  { %474 = vrcp.f32 %v279_v62 }
 0x1d3   :  { %v469_v0 = vpop.eup %468  ;;  %v296_v1 = vmin.f32 %v291_v63, 0.9999999 }
 0x1d4   :  { %v471_v2 = vpop.eup %470  ;;  %v280_v3 = vadd.f32 1.0, %v469_v0 }
 0x1d5   :  { %476 = vlog2.f32 %v296_v1  ;;  %v316_v4 = vsub.f32 1.0, %v296_v1  ;;  %v292_v5 = vmax.f32 %v471_v2, 1e-07  ;;  %353 = vst.msk [vmem:[%s635_s5 + $0x8] sm:$0xff] %vm351_vm3, %v471_v2 }
 0x1d6   :  { %478 = vrcp.f32 %v280_v3 }
 0x1d7   :  { %480 = vlog2.f32 %v316_v4  ;;  %v297_v6 = vmin.f32 %v292_v5, 0.9999999 }
 0x1d8   :  { %v473_v7 = vpop.eup %472 }
 0x1d9   :  { %482 = vlog2.f32 %v297_v6  ;;  %v317_v8 = vsub.f32 1.0, %v297_v6  ;;  %v293_v9 = vmax.f32 %v473_v7, 1e-07  ;;  %354 = vst.msk [vmem:[%s635_s5 + $0x10] sm:$0xff] %vm351_vm3, %v473_v7 }
 0x1db   :  { %484 = vlog2.f32 %v317_v8  ;;  %v298_v10 = vmin.f32 %v293_v9, 0.9999999 }
 0x1dc   :  { %v475_v11 = vpop.eup %474 }
 0x1dd   :  { %486 = vlog2.f32 %v298_v10  ;;  %v318_v12 = vsub.f32 1.0, %v298_v10  ;;  %v294_v13 = vmax.f32 %v475_v11, 1e-07  ;;  %355 = vst.msk [vmem:[%s635_s5 + $0x18] sm:$0xff] %vm351_vm3, %v475_v11 }
 0x1df   :  { %v477_v14 = vpop.eup %476  ;;  %488 = vlog2.f32 %v318_v12  ;;  %v299_v15 = vmin.f32 %v294_v13, 0.9999999 }
 0x1e0   :  { %v479_v16 = vpop.eup %478  ;;  %v302_v17 = vmul.f32 0.6931472, %v477_v14 }
 0x1e1   :  { %v481_v18 = vpop.eup %480  ;;  %490 = vlog2.f32 %v299_v15  ;;  %v319_v19 = vsub.f32 1.0, %v299_v15  ;;  %v295_v20 = vmax.f32 %v479_v16, 1e-07  ;;  %357 = vst.msk [vmem:[%s635_s5 + $0x20] sm:$0x3] %vm356_vm4, %v479_v16 }
 0x1e2   :  { %v322_v21 = vmul.f32 0.6931472, %v481_v18  ;;  %v311_v24 = vmul.f32 %v302_v17, %v296_v1 }
 0x1e3   :  { %v483_v22 = vpop.eup %482  ;;  %492 = vlog2.f32 %v319_v19  ;;  %v300_v23 = vmin.f32 %v295_v20, 0.9999999 }
 0x1e4   :  { %v331_v25 = vmul.f32 %v322_v21, %v316_v4  ;;  %v304_v26 = vmul.f32 0.6931472, %v483_v22 }
 0x1e5   :  { %v485_v27 = vpop.eup %484  ;;  %494 = vlog2.f32 %v300_v23  ;;  %v320_v28 = vsub.f32 1.0, %v300_v23 }
 0x1e6   :  { %v336_v29 = vadd.f32 %v331_v25, %v311_v24  ;;  %v324_v30 = vmul.f32 0.6931472, %v485_v27  ;;  %v312_v33 = vmul.f32 %v304_v26, %v297_v6 }
 0x1e7   :  { %v487_v31 = vpop.eup %486  ;;  %496 = vlog2.f32 %v320_v28 }
 0x1e8   :  { %v341_v32 = vsub.f32 0.0, %v336_v29  ;;  %v332_v34 = vmul.f32 %v324_v30, %v317_v8  ;;  %v306_v35 = vmul.f32 0.6931472, %v487_v31 }
 0x1e9   :  { %v489_v36 = vpop.eup %488 }
 0x1ea   :  { %v346_v37 = vmul.f32 1.442695, %v341_v32  ;;  %v337_v38 = vadd.f32 %v332_v34, %v312_v33  ;;  %v326_v39 = vmul.f32 0.6931472, %v489_v36  ;;  %v313_v42 = vmul.f32 %v306_v35, %v298_v10 }
 0x1eb   :  { %v491_v40 = vpop.eup %490 }
 0x1ec   :  { %358 = vst.msk [vmem:[%s636_s6] sm:$0xff] %vm351_vm3, %v346_v37  ;;  %v342_v41 = vsub.f32 0.0, %v337_v38  ;;  %v333_v43 = vmul.f32 %v326_v39, %v318_v12  ;;  %v308_v44 = vmul.f32 0.6931472, %v491_v40 }
 0x1ed   :  { %v493_v45 = vpop.eup %492 }
 0x1ee   :  { %v347_v46 = vmul.f32 1.442695, %v342_v41  ;;  %v338_v47 = vadd.f32 %v333_v43, %v313_v42  ;;  %v328_v48 = vmul.f32 0.6931472, %v493_v45  ;;  %v314_v51 = vmul.f32 %v308_v44, %v299_v15 }
 0x1ef   :  { %v495_v49 = vpop.eup %494 }
 0x1f0   :  { %359 = vst.msk [vmem:[%s636_s6 + $0x8] sm:$0xff] %vm351_vm3, %v347_v46  ;;  %v343_v50 = vsub.f32 0.0, %v338_v47  ;;  %v334_v52 = vmul.f32 %v328_v48, %v319_v19  ;;  %v310_v53 = vmul.f32 0.6931472, %v495_v49 }
 0x1f1   :  { %v497_v54 = vpop.eup %496 }
 0x1f2   :  { %v348_v55 = vmul.f32 1.442695, %v343_v50  ;;  %v339_v56 = vadd.f32 %v334_v52, %v314_v51  ;;  %v330_v57 = vmul.f32 0.6931472, %v497_v54  ;;  %v315_v59 = vmul.f32 %v310_v53, %v300_v23 }
 0x1f4   :  { %360 = vst.msk [vmem:[%s636_s6 + $0x10] sm:$0xff] %vm351_vm3, %v348_v55  ;;  %v344_v58 = vsub.f32 0.0, %v339_v56  ;;  %v335_v60 = vmul.f32 %v330_v57, %v320_v28 }
 0x1f6   :  { %v349_v61 = vmul.f32 1.442695, %v344_v58  ;;  %v340_v62 = vadd.f32 %v335_v60, %v315_v59 }
 0x1f8   :  { %361 = vst.msk [vmem:[%s636_s6 + $0x18] sm:$0xff] %vm351_vm3, %v349_v61  ;;  %v345_v63 = vsub.f32 0.0, %v340_v62 }
 0x1fa   :  { %v350_v0 = vmul.f32 1.442695, %v345_v63 }
 0x1fc   :  { %362 = vst.msk [vmem:[%s636_s6 + $0x20] sm:$0x3] %vm356_vm4, %v350_v0 }

// kernel: net_forward.5
= control target key start
LH: loop header
LB: loop body
LE: loop exit
PB: predicated region body
PF: predicated region fallthrough
CT: control target
= control target key end

     0   :  { %v6561_v0 = vmov 0.0|0.0   ;;  %vm5340_vm0 = vmmov 0   ;;  %v6563_v4 = vmov 0.0   ;;  %vm72_vm1 = vcmask 261120   ;;  %s5342_s30 = smov 64   ;;  %s5343_s16 = smov 96   ;;  %s6547_s2 = inlined_call_operand.vmem [shape: f32[32,96], index: 2, kind: input, shape index: {}]   ;;  %s6548_s3 = inlined_call_operand.vmem [shape: f32[32,96], index: 3, kind: input, shape index: {}]   ;;  %s6549_s0 = inlined_call_operand.vmem [shape: f32[8,18,32], index: 0, kind: input, shape index: {}]   ;;  %s6550_s5 = inlined_call_operand.vmem [shape: f32[1,96], index: 5, kind: input, shape index: {}, may-alias: {4,5}]   ;;  %s6551_s4 = inlined_call_operand.vmem [shape: f32[1,96], index: 4, kind: input, shape index: {}, may-alias: {4,5}]   ;;  %s6552_s6 = inlined_call_operand.vmem [shape: f32[32,16], index: 6, kind: input, shape index: {}]   ;;  %s6553_s8 = inlined_call_operand.vmem [shape: f32[16,1], index: 8, kind: input, shape index: {}]   ;;  %s6554_s12 = inlined_call_operand.vmem [shape: f32[8,18,32], index: 12, kind: output, shape index: {0}]   ;;  %s6555_s9 = inlined_call_operand.<no memory space> [shape: f32[1,1], index: 9, kind: input, shape index: {}]   ;;  %s6556_s7 = inlined_call_operand.vmem [shape: f32[1,16], index: 7, kind: input, shape index: {}]   ;;  %s6557_s1 = inlined_call_operand.vmem [shape: f32[18,8], index: 1, kind: input, shape index: {}]   ;;  %s6558_s10 = inlined_call_operand.vmem [shape: f32[32,32], index: 10, kind: input, shape index: {}]   ;;  %s6559_s11 = inlined_call_operand.vmem [shape: f32[1,32], index: 11, kind: input, shape index: {}]   ;;  %s6560_s13 = inlined_call_operand.vmem [shape: f32[18,32], index: 13, kind: output, shape index: {1}]  }
   0x1   :  { %5132 = vmatprep.subr.bf16.mxu1 %v6561_v0  ;;  %v45_v1 = vld [vmem:[%s6547_s2] sm:$0xff]  ;;  %v46_v2 = vld [vmem:[%s6547_s2 + $0x8] sm:$0xff]  ;;  %v47_v3 = vld [vmem:[%s6547_s2 + $0x10] sm:$0xff]  ;;  %4443 = vmatprep.mubr.msk.f32.mxu1 %vm5340_vm0, %v6563_v4  ;;  %vm343_vm2 = vcmask 254976   ;;  %vm443_vm3 = vcmask 130048   ;;  %s5346_s18 = smov 3  }
   0x2   :  { %v5441_v5 = vpack.c.bf16 %v46_v2, %v45_v1  ;;  %v48_v6 = vld [vmem:[%s6547_s2 + $0x18] sm:$0xff]  ;;  %4958 = vmatprep.subr.bf16.mxu0 %v6561_v0  ;;  %4437 = vmatprep.mubr.msk.f32.mxu0 %vm5340_vm0, %v6563_v4  ;;  %v49_v8 = vld [vmem:[%s6548_s3] sm:$0xff]  ;;  %v50_v9 = vld [vmem:[%s6548_s3 + $0x8] sm:$0xff]  ;;  %s5347_s19 = smov 4   ;;  %s5348_s2 = smov 5   ;;  %vm3711_vm4 = vcmask 7168  }
   0x3   :  { %v5450_v7 = vpack.c.bf16 %v48_v6, %v47_v3  ;;  %v65_v10 = vld [vmem:[%s6549_s0 + $0x10] sm:$0x3]  ;;  %v5465_v11 = vpack.c.bf16 %v50_v9, %v49_v8  ;;  %v63_v12 = vld [vmem:[%s6549_s0] sm:$0xff]  ;;  %v52_v14 = vld [vmem:[%s6548_s3 + $0x18] sm:$0xff]  ;;  %s5349_s20 = smov 6   ;;  %vm3715_vm5 = vcmask 15360  }
   0x4   :  { %5134 = vmatpush3.bf16.msra.mxu1 %v5441_v5  ;;  %4960 = vmatpush3.bf16.msra.mxu0 %v5441_v5  ;;  %v51_v13 = vld [vmem:[%s6548_s3 + $0x10] sm:$0xff]  ;;  %v64_v16 = vld [vmem:[%s6549_s0 + $0x8] sm:$0xff]  ;;  %v5509_v23 = vld [vmem:[%s6550_s5] ss:$0 sm:$0xff]  ;;  %vm3719_vm6 = vcmask 23552   ;;  %vm3723_vm7 = vcmask 31744  }
   0x5   :  { %5133 = vmatprep.subr.bf16.mxu1 %v6561_v0  ;;  %4961 = vmatprep.subr.bf16.mxu0 %v6561_v0  ;;  %v5482_v15 = vpack.c.bf16 %v52_v14, %v51_v13  ;;  %v5520_v33 = vld [vmem:[%s6551_s4] ss:$0 sm:$0xff]  ;;  %v56_v3 = vld [vmem:[%s6552_s6 + $0x8] sm:$0xff]  ;;  %v57_v6 = vld [vmem:[%s6552_s6 + $0x10] sm:$0xff]  ;;  %vm3727_vm8 = vcmask 39936   ;;  %vm3731_vm9 = vcmask 48128  }
   0x6   :  { %v55_v2 = vld [vmem:[%s6552_s6] sm:$0xff]  ;;  %v58_v9 = vld [vmem:[%s6552_s6 + $0x18] sm:$0xff]  ;;  %vm3735_vm10 = vcmask 56320   ;;  %vm3748_vm12 = vcmask 64512   ;;  %vm3755_vm15 = vcmask 58368  }
   0x7   :  { %v5538_v8 = vpack.c.bf16 %v56_v3, %v55_v2 }
   0x8   :  { %5135 = vmatpush3.bf16.msra.mxu1 %v5450_v7  ;;  %4963 = vmatpush3.bf16.msra.mxu0 %v5450_v7 }
   0x9   :  { %4964 = vmatprep.subr.bf16.mxu1 %v6561_v0  ;;  %4970 = vmatprep.subr.bf16.mxu0 %v6561_v0 }
   0xb   :  { %4444 = vmatmul.mubr.msk.f32.vlgmr.msra.gmra.mrb[0].mxu1 %vm72_vm1, %v65_v10  ;;  %4438 = vmatmul.mubr.msk.f32.vlgmr.msra.gmra.mrb[0].mxu0 %vm72_vm1, %v63_v12  ;;  %v5544_v12 = vpack.c.bf16 %v58_v9, %v57_v6 }
   0xc   :  { %4966 = vmatpush3.bf16.msra.mxu1 %v5465_v11  ;;  %4454 = vmatprep.mubr.msk.f32.mxu1 %vm5340_vm0, %v6563_v4 }
   0xd   :  { %4967 = vmatprep.subr.bf16.mxu1 %v6561_v0  ;;  %4440 = vmatprep.mubr.msk.f32.mxu0 %vm5340_vm0, %v6563_v4 }
   0xe   :  { %4972 = vmatpush3.bf16.msra.mxu0 %v5538_v8 }
   0xf   :  { %4441 = vmatmul.mubr.msk.f32.gmra.mrb[2].mxu0 %vm72_vm1, %v64_v16  ;;  %4973 = vmatprep.subr.bf16.mxu0 %v6561_v0 }
  0x10   :  { %4969 = vmatpush3.bf16.msra.mxu1 %v5482_v15  ;;  %4471 = vmatprep.mubr.msk.f32.mxu0 %vm5340_vm0, %v6563_v4 }
  0x11   :  { %4976 = vmatprep.subr.bf16.mxu1 %v6561_v0 }
  0x12   :  { %4975 = vmatpush3.bf16.msra.mxu0 %v5544_v12 }
  0x13   :  { %4455 = vmatmul.mubr.f32.vlgmr.msra.gmra.mrb[2].mxu1 %v6563_v4  ;;  %4979 = vmatprep.subr.bf16.mxu0 %v6561_v0 }
  0x14   :  { %4457 = vmatprep.mubr.msk.f32.mxu1 %vm5340_vm0, %v6563_v4 }
  0x17   :  { %4458 = vmatmul.mubr.f32.gmra.mrb[4].mxu1 %v6563_v4 }
  0x18   :  { %4460 = vmatprep.mubr.msk.f32.mxu1 %vm5340_vm0, %v6563_v4 }
  0x1b   :  { %4461 = vmatmul.mubr.f32.gmra.mrb[6].mxu1 %v6563_v4 }
  0x1c   :  { %4484 = vmatprep.mubr.msk.f32.mxu1 %vm5340_vm0, %v6563_v4 }
  0xde   :  { %v158_v17 = vpop.f32.mrb[0].mxu1  ;;  %v148_v18 = vpop.f32.mrb[0].mxu0 }
  0xdf   :  { %v4445_v19 = vpop.f32.mrb[1].mxu1  ;;  %v4439_v20 = vpop.f32.mrb[1].mxu0  ;;  %v149_v34 = vadd.f32 %v5520_v33, %v148_v18  ;;  %v159_v39 = vadd.f32 %v5520_v33, %v158_v17 }
  0xe0   :  { %v60_v19 = vld [vmem:[%s6553_s8] sm:$0xff]  ;;  %v61_v20 = vld [vmem:[%s6553_s8 + $0x8] sm:$0xff] }
  0xe2   :  { %v153_v21 = vpop.f32.mrb[2].mxu0 }
  0xe3   :  { %v4442_v22 = vpop.f32.mrb[3].mxu0  ;;  %v154_v36 = vadd.f32 %v5520_v33, %v153_v21  ;;  %v5557_v21 = vpack.c.bf16 %v61_v20, %v60_v19 }
  0xe5   :  { %4978 = vmatpush3.bf16.msra.mxu1 %v5557_v21 }
  0xe6   :  { %v237_v24 = vpop.f32.mrb[2].mxu1  ;;  %4985 = vmatprep.subr.bf16.mxu1 %v6561_v0 }
  0xe7   :  { %v238_v25 = vadd.f32 %v5509_v23, %v237_v24  ;;  %v4456_v26 = vpop.f32.mrb[3].mxu1 }
  0xe9   :  { %275 = vrot.lane.b32.xlu0 %v238_v25, %s5342_s30  ;;  %v251_v35 = vadd.f32 %v238_v25, %v149_v34 }
  0xea   :  { %v242_v27 = vpop.f32.mrb[4].mxu1 }
  0xeb   :  { %v243_v28 = vadd.f32 %v5509_v23, %v242_v27  ;;  %v4459_v29 = vpop.f32.mrb[5].mxu1  ;;  %v4052_v37 = vmul.f32 -1.442695, %v251_v35 }
  0xed   :  { %277 = vrot.lane.b32.xlu0 %v243_v28, %s5342_s30  ;;  %v252_v38 = vadd.f32 %v243_v28, %v154_v36  ;;  %5180 = vpow2.f32 %v4052_v37 }
  0xee   :  { %v247_v30 = vpop.f32.mrb[6].mxu1 }
  0xef   :  { %v248_v31 = vadd.f32 %v5509_v23, %v247_v30  ;;  %v4462_v32 = vpop.f32.mrb[7].mxu1  ;;  %v4053_v40 = vmul.f32 -1.442695, %v252_v38  ;;  %v4063_v38 = vld [vmem:[%s6549_s0 + $0x18] sm:$0xff] }
  0xf1   :  { %279 = vrot.lane.b32.xlu1 %v248_v31, %s5342_s30  ;;  %v253_v41 = vadd.f32 %v248_v31, %v159_v39  ;;  %5182 = vpow2.f32 %v4053_v40  ;;  %v4065_v40 = vld [vmem:[%s6549_s0 + $0x28] sm:$0x3] }
  0xf3   :  { %v4054_v42 = vmul.f32 -1.442695, %v253_v41  ;;  %v19_v41 = vstv %s6555_s9 }
  0xf4   :  { %20 = vst [vmem:[#allocation2] sm:$0x1] %v19_v41 }
  0xf5   :  { %5184 = vpow2.f32 %v4054_v42  ;;  %v5626_v42 = vld [vmem:[%s6556_s7] ss:$0 sm:$0xff] }
  0xf7   :  { %v5181_v43 = vpop.eup %5180 }
  0xf8   :  { %v263_v44 = vadd.f32 1.0, %v5181_v43 }
  0xfa   :  { %5186 = vrcp.f32 %v263_v44 }
  0xfb   :  { %v5183_v45 = vpop.eup %5182 }
  0xfc   :  { %v264_v46 = vadd.f32 1.0, %v5183_v45 }
  0xfe   :  { %5188 = vrcp.f32 %v264_v46 }
  0xff   :  { %v5185_v47 = vpop.eup %5184 }
 0x100   :  { %v265_v48 = vadd.f32 1.0, %v5185_v47 }
 0x102   :  { %5190 = vrcp.f32 %v265_v48 }
 0x104   :  { %v5187_v49 = vpop.eup %5186 }
 0x105   :  { %v305_v14 = vsub.f32 1.0, %v5187_v49  ;;  %v323_v17 = vmul.f32 0.0, %v5187_v49 }
 0x108   :  { %v5189_v52 = vpop.eup %5188 }
 0x109   :  { %v306_v24 = vsub.f32 1.0, %v5189_v52  ;;  %v324_v26 = vmul.f32 0.0, %v5189_v52 }
 0x10c   :  { %v5191_v55 = vpop.eup %5190 }
 0x10d   :  { %v307_v29 = vsub.f32 1.0, %v5191_v55  ;;  %v325_v31 = vmul.f32 0.0, %v5191_v55 }
 0x15b   :  { %v276_v50 = vpop.permute.xlu0 %275 }
 0x15c   :  { %v284_v51 = vmul.f32 %v5187_v49, %v276_v50 }
 0x15e   :  { %290 = vrot.lane.b32.xlu1 %v284_v51, %s5342_s30 }
 0x15f   :  { %v278_v53 = vpop.permute.xlu0 %277 }
 0x160   :  { %v285_v54 = vmul.f32 %v5189_v52, %v278_v53 }
 0x162   :  { %292 = vrot.lane.b32.xlu0 %v285_v54, %s5342_s30 }
 0x163   :  { %v280_v56 = vpop.permute.xlu1 %279 }
 0x164   :  { %v286_v57 = vmul.f32 %v5191_v55, %v280_v56 }
 0x166   :  { %294 = vrot.lane.b32.xlu1 %v286_v57, %s5342_s30 }
 0x1d0   :  { %v291_v58 = vpop.permute.xlu1 %290 }
 0x1d1   :  { %v299_v59 = vadd.f32 %v291_v58, %v149_v34 }
 0x1d3   :  { %5192 = vtanh.f32 %v299_v59 }
 0x1d4   :  { %v293_v60 = vpop.permute.xlu0 %292 }
 0x1d5   :  { %v300_v61 = vadd.f32 %v293_v60, %v154_v36 }
 0x1d7   :  { %5194 = vtanh.f32 %v300_v61 }
 0x1d8   :  { %v295_v62 = vpop.permute.xlu1 %294 }
 0x1d9   :  { %v301_v63 = vadd.f32 %v295_v62, %v159_v39  ;;  %v4064_v39 = vld [vmem:[%s6549_s0 + $0x20] sm:$0xff] }
 0x1db   :  { %5196 = vtanh.f32 %v301_v63 }
 0x1dd   :  { %v5193_v1 = vpop.eup %5192 }
 0x1de   :  { %311 = vrot.lane.b32.xlu0 %v5193_v1, %s5343_s16 }
 0x1e1   :  { %v5195_v10 = vpop.eup %5194 }
 0x1e2   :  { %313 = vrot.lane.b32.xlu1 %v5195_v10, %s5343_s16 }
 0x1e5   :  { %v5197_v13 = vpop.eup %5196 }
 0x1e6   :  { %315 = vrot.lane.b32.xlu0 %v5197_v13, %s5343_s16 }
 0x250   :  { %v312_v16 = vpop.permute.xlu0 %311 }
 0x251   :  { %v320_v18 = vmul.f32 %v312_v16, %v305_v14 }
 0x253   :  { %v5559_v22 = vadd.f32 %v323_v17, %v320_v18 }
 0x254   :  { %v314_v25 = vpop.permute.xlu1 %313 }
 0x255   :  { %v321_v27 = vmul.f32 %v314_v25, %v306_v24  ;;  %332 = vrot.lane.b32.xlu1 %v5559_v22, %s5343_s16 }
 0x257   :  { %v5565_v28 = vadd.f32 %v324_v26, %v321_v27 }
 0x258   :  { %v316_v30 = vpop.permute.xlu0 %315 }
 0x259   :  { %v322_v32 = vmul.f32 %v316_v30, %v307_v29  ;;  %334 = vrot.lane.b32.xlu0 %v5565_v28, %s5343_s16 }
 0x25b   :  { %v5569_v34 = vadd.f32 %v325_v31, %v322_v32 }
 0x25d   :  { %336 = vrot.lane.b32.xlu1 %v5569_v34, %s5343_s16 }
 0x2c7   :  { %v333_v35 = vpop.permute.xlu1 %332 }
 0x2c8   :  { %341 = vst.msk [vmem:[%s6554_s12] sm:$0xff] %vm72_vm1, %v333_v35  ;;  %4472 = vmatmul.mubr.msk.f32.vlgmr.msra.gmra.mrb[4].mxu0 %vm72_vm1, %v333_v35 }
 0x2c9   :  { %4474 = vmatprep.mubr.msk.f32.mxu0 %vm5340_vm0, %v6563_v4  ;;  %4981 = vmatpush3.bf16.msra.mxu0 %v5441_v5 }
 0x2ca   :  { %4982 = vmatprep.subr.bf16.mxu0 %v6561_v0 }
 0x2cb   :  { %v335_v36 = vpop.permute.xlu0 %334 }
 0x2cc   :  { %342 = vst.msk [vmem:[%s6554_s12 + $0x8] sm:$0xff] %vm72_vm1, %v335_v36  ;;  %4475 = vmatmul.mubr.msk.f32.gmra.mrb[6].mxu0 %vm72_vm1, %v335_v36 }
 0x2cd   :  { %4477 = vmatprep.mubr.msk.f32.mxu0 %vm5340_vm0, %v6563_v4  ;;  %4984 = vmatpush3.bf16.msra.mxu0 %v5450_v7 }
 0x2ce   :  { %4991 = vmatprep.subr.bf16.mxu0 %v6561_v0 }
 0x2cf   :  { %v337_v37 = vpop.permute.xlu1 %336 }
 0x2d0   :  { %344 = vst.msk [vmem:[%s6554_s12 + $0x10] sm:$0x3] %vm343_vm2, %v337_v37  ;;  %4478 = vmatmul.mubr.msk.f32.gmra.mrb[8].mxu0 %vm72_vm1, %v337_v37 }
 0x2d1   :  { %4501 = vmatprep.mubr.msk.f32.mxu0 %vm5340_vm0, %v6563_v4 }
 0x2d4   :  { %4502 = vmatmul.mubr.msk.f32.vlgmr.msra.gmra.mrb[10].mxu0 %vm72_vm1, %v4063_v38 }
 0x2d5   :  { %4504 = vmatprep.mubr.msk.f32.mxu0 %vm5340_vm0, %v6563_v4  ;;  %4993 = vmatpush3.bf16.msra.mxu0 %v5538_v8 }
 0x2d6   :  { %4994 = vmatprep.subr.bf16.mxu0 %v6561_v0 }
 0x2d8   :  { %4505 = vmatmul.mubr.msk.f32.gmra.mrb[12].mxu0 %vm72_vm1, %v4064_v39 }
 0x2d9   :  { %4507 = vmatprep.mubr.msk.f32.mxu0 %vm5340_vm0, %v6563_v4  ;;  %4996 = vmatpush3.bf16.msra.mxu0 %v5544_v12 }
 0x2da   :  { %5000 = vmatprep.subr.bf16.mxu0 %v6561_v0 }
 0x2dc   :  { %4508 = vmatmul.mubr.msk.f32.gmra.mrb[14].mxu0 %vm72_vm1, %v4065_v40 }
 0x2dd   :  { %4535 = vmatprep.mubr.msk.f32.mxu0 %vm5340_vm0, %v6563_v4 }
 0x39b   :  { %v423_v43 = vpop.f32.mrb[4].mxu0 }
 0x39c   :  { %v424_v44 = vadd.f32 %v5626_v42, %v423_v43  ;;  %v4473_v45 = vpop.f32.mrb[5].mxu0 }
 0x39e   :  { %4485 = vmatmul.mubr.msk.f32.vlgmr.msra.gmra.mrb[8].mxu1 %vm443_vm3, %v424_v44 }
 0x39f   :  { %4987 = vmatpush3.bf16.msra.mxu1 %v5465_v11  ;;  %v428_v46 = vpop.f32.mrb[6].mxu0  ;;  %4487 = vmatprep.mubr.msk.f32.mxu1 %vm5340_vm0, %v6563_v4 }
 0x3a0   :  { %v429_v47 = vadd.f32 %v5626_v42, %v428_v46  ;;  %v4476_v48 = vpop.f32.mrb[7].mxu0  ;;  %4988 = vmatprep.subr.bf16.mxu1 %v6561_v0 }
 0x3a2   :  { %4488 = vmatmul.mubr.msk.f32.gmra.mrb[10].mxu1 %vm443_vm3, %v429_v47 }
 0x3a3   :  { %v433_v49 = vpop.f32.mrb[8].mxu0  ;;  %4990 = vmatpush3.bf16.msra.mxu1 %v5482_v15  ;;  %4490 = vmatprep.mubr.msk.f32.mxu1 %vm5340_vm0, %v6563_v4 }
 0x3a4   :  { %v434_v50 = vadd.f32 %v5626_v42, %v433_v49  ;;  %v4479_v51 = vpop.f32.mrb[9].mxu0  ;;  %4997 = vmatprep.subr.bf16.mxu1 %v6561_v0 }
 0x3a6   :  { %4491 = vmatmul.mubr.msk.f32.gmra.mrb[12].mxu1 %vm443_vm3, %v434_v50 }
 0x3a7   :  { %4518 = vmatprep.mubr.msk.f32.mxu1 %vm5340_vm0, %v6563_v4  ;;  %v612_v52 = vpop.f32.mrb[10].mxu0 }
 0x3a8   :  { %v4503_v53 = vpop.f32.mrb[11].mxu0  ;;  %v613_v17 = vadd.f32 %v5520_v33, %v612_v52 }
 0x3aa   :  { %4519 = vmatmul.mubr.msk.f32.vlgmr.msra.gmra.mrb[14].mxu1 %vm72_vm1, %v333_v35 }
 0x3ab   :  { %4521 = vmatprep.mubr.msk.f32.mxu1 %vm5340_vm0, %v6563_v4  ;;  %4999 = vmatpush3.bf16.msra.mxu1 %v5557_v21  ;;  %v617_v54 = vpop.f32.mrb[12].mxu0 }
 0x3ac   :  { %5006 = vmatprep.subr.bf16.mxu1 %v6561_v0  ;;  %v4506_v55 = vpop.f32.mrb[13].mxu0  ;;  %v618_v19 = vadd.f32 %v5520_v33, %v617_v54 }
 0x3ae   :  { %4522 = vmatmul.mubr.msk.f32.gmra.mrb[16].mxu1 %vm72_vm1, %v335_v36 }
 0x3af   :  { %4524 = vmatprep.mubr.msk.f32.mxu1 %vm5340_vm0, %v6563_v4  ;;  %v622_v56 = vpop.f32.mrb[14].mxu0 }
 0x3b0   :  { %v4509_v57 = vpop.f32.mrb[15].mxu0  ;;  %v623_v25 = vadd.f32 %v5520_v33, %v622_v56 }
 0x3b2   :  { %4525 = vmatmul.mubr.msk.f32.gmra.mrb[18].mxu1 %vm72_vm1, %v337_v37 }
 0x3b3   :  { %4548 = vmatprep.mubr.msk.f32.mxu1 %vm5340_vm0, %v6563_v4 }
 0x471   :  { %v5655_v58 = vpop.f32.mrb[8].mxu1 }
 0x472   :  { %v4486_v59 = vpop.f32.mrb[9].mxu1 }
 0x475   :  { %v5657_v60 = vpop.f32.mrb[10].mxu1 }
 0x476   :  { %v4489_v61 = vpop.f32.mrb[11].mxu1 }
 0x479   :  { %v5659_v62 = vpop.f32.mrb[12].mxu1 }
 0x47a   :  { %v4492_v63 = vpop.f32.mrb[13].mxu1 }
 0x47d   :  { %v692_v1 = vpop.f32.mrb[14].mxu1 }
 0x47e   :  { %v693_v2 = vadd.f32 %v5509_v23, %v692_v1  ;;  %v4520_v3 = vpop.f32.mrb[15].mxu1 }
 0x480   :  { %730 = vrot.lane.b32.xlu0 %v693_v2, %s5342_s30  ;;  %v706_v18 = vadd.f32 %v693_v2, %v613_v17 }
 0x481   :  { %v697_v6 = vpop.f32.mrb[16].mxu1 }
 0x482   :  { %v698_v9 = vadd.f32 %v5509_v23, %v697_v6  ;;  %v4523_v10 = vpop.f32.mrb[17].mxu1  ;;  %v4072_v20 = vmul.f32 -1.442695, %v706_v18 }
 0x484   :  { %732 = vrot.lane.b32.xlu1 %v698_v9, %s5342_s30  ;;  %v707_v24 = vadd.f32 %v698_v9, %v618_v19  ;;  %5198 = vpow2.f32 %v4072_v20 }
 0x485   :  { %v702_v13 = vpop.f32.mrb[18].mxu1 }
 0x486   :  { %v703_v14 = vadd.f32 %v5509_v23, %v702_v13  ;;  %v4526_v16 = vpop.f32.mrb[19].mxu1  ;;  %v4073_v26 = vmul.f32 -1.442695, %v707_v24 }
 0x488   :  { %734 = vrot.lane.b32.xlu0 %v703_v14, %s5342_s30  ;;  %v708_v27 = vadd.f32 %v703_v14, %v623_v25  ;;  %5200 = vpow2.f32 %v4073_v26  ;;  %v4085_v26 = vld [vmem:[%s6549_s0 + $0x38] sm:$0xff] }
 0x48a   :  { %v4074_v29 = vmul.f32 -1.442695, %v708_v27  ;;  %v4086_v27 = vld [vmem:[%s6549_s0 + $0x40] sm:$0x3] }
 0x48c   :  { %5202 = vpow2.f32 %v4074_v29 }
 0x48e   :  { %v5199_v30 = vpop.eup %5198 }
 0x48f   :  { %v718_v31 = vadd.f32 1.0, %v5199_v30 }
 0x491   :  { %5204 = vrcp.f32 %v718_v31 }
 0x492   :  { %v5201_v32 = vpop.eup %5200 }
 0x493   :  { %v719_v35 = vadd.f32 1.0, %v5201_v32 }
 0x495   :  { %5206 = vrcp.f32 %v719_v35 }
 0x496   :  { %v5203_v36 = vpop.eup %5202 }
 0x497   :  { %v720_v37 = vadd.f32 1.0, %v5203_v36 }
 0x499   :  { %5208 = vrcp.f32 %v720_v37 }
 0x49b   :  { %v5205_v38 = vpop.eup %5204 }
 0x49c   :  { %v760_v57 = vsub.f32 1.0, %v5205_v38  ;;  %v778_v61 = vmul.f32 %v5205_v38, %v5559_v22 }
 0x49f   :  { %v5207_v41 = vpop.eup %5206 }
 0x4a0   :  { %v761_v2 = vsub.f32 1.0, %v5207_v41  ;;  %v779_v6 = vmul.f32 %v5207_v41, %v5565_v28 }
 0x4a3   :  { %v5209_v45 = vpop.eup %5208 }
 0x4a4   :  { %v762_v13 = vsub.f32 1.0, %v5209_v45  ;;  %v780_v16 = vmul.f32 %v5209_v45, %v5569_v34 }
 0x4f2   :  { %v731_v39 = vpop.permute.xlu0 %730 }
 0x4f3   :  { %v739_v40 = vmul.f32 %v5205_v38, %v731_v39 }
 0x4f5   :  { %745 = vrot.lane.b32.xlu1 %v739_v40, %s5342_s30 }
 0x4f6   :  { %v733_v43 = vpop.permute.xlu1 %732 }
 0x4f7   :  { %v740_v44 = vmul.f32 %v5207_v41, %v733_v43 }
 0x4f9   :  { %747 = vrot.lane.b32.xlu0 %v740_v44, %s5342_s30 }
 0x4fa   :  { %v735_v46 = vpop.permute.xlu0 %734 }
 0x4fb   :  { %v741_v47 = vmul.f32 %v5209_v45, %v735_v46 }
 0x4fd   :  { %749 = vrot.lane.b32.xlu1 %v741_v47, %s5342_s30 }
 0x567   :  { %v746_v48 = vpop.permute.xlu1 %745 }
 0x568   :  { %v754_v49 = vadd.f32 %v746_v48, %v613_v17 }
 0x56a   :  { %5210 = vtanh.f32 %v754_v49 }
 0x56b   :  { %v748_v50 = vpop.permute.xlu0 %747 }
 0x56c   :  { %v755_v51 = vadd.f32 %v748_v50, %v618_v19 }
 0x56e   :  { %5212 = vtanh.f32 %v755_v51 }
 0x56f   :  { %v750_v52 = vpop.permute.xlu1 %749 }
 0x570   :  { %v756_v53 = vadd.f32 %v750_v52, %v623_v25  ;;  %v4084_v25 = vld [vmem:[%s6549_s0 + $0x30] sm:$0xff] }
 0x572   :  { %5214 = vtanh.f32 %v756_v53 }
 0x574   :  { %v5211_v54 = vpop.eup %5210 }
 0x575   :  { %766 = vrot.lane.b32.xlu0 %v5211_v54, %s5343_s16 }
 0x578   :  { %v5213_v55 = vpop.eup %5212 }
 0x579   :  { %768 = vrot.lane.b32.xlu1 %v5213_v55, %s5343_s16 }
 0x57c   :  { %v5215_v56 = vpop.eup %5214 }
 0x57d   :  { %770 = vrot.lane.b32.xlu0 %v5215_v56, %s5343_s16 }
 0x5e7   :  { %v767_v59 = vpop.permute.xlu0 %766 }
 0x5e8   :  { %v775_v63 = vmul.f32 %v767_v59, %v760_v57 }
 0x5ea   :  { %v5677_v1 = vadd.f32 %v778_v61, %v775_v63 }
 0x5eb   :  { %v769_v3 = vpop.permute.xlu1 %768 }
 0x5ec   :  { %v776_v9 = vmul.f32 %v769_v3, %v761_v2  ;;  %787 = vrot.lane.b32.xlu1 %v5677_v1, %s5343_s16 }
 0x5ee   :  { %v5682_v10 = vadd.f32 %v779_v6, %v776_v9 }
 0x5ef   :  { %v771_v14 = vpop.permute.xlu0 %770 }
 0x5f0   :  { %v777_v17 = vmul.f32 %v771_v14, %v762_v13  ;;  %789 = vrot.lane.b32.xlu0 %v5682_v10, %s5343_s16 }
 0x5f2   :  { %v5687_v18 = vadd.f32 %v780_v16, %v777_v17 }
 0x5f4   :  { %791 = vrot.lane.b32.xlu1 %v5687_v18, %s5343_s16 }
 0x65e   :  { %v788_v19 = vpop.permute.xlu1 %787 }
 0x65f   :  { %4075 = vst.msk [vmem:[%s6554_s12 + $0x18] sm:$0xff] %vm72_vm1, %v788_v19  ;;  %4536 = vmatmul.mubr.msk.f32.vlgmr.msra.gmra.mrb[16].mxu0 %vm72_vm1, %v788_v19 }
 0x660   :  { %4538 = vmatprep.mubr.msk.f32.mxu0 %vm5340_vm0, %v6563_v4  ;;  %5002 = vmatpush3.bf16.msra.mxu0 %v5441_v5 }
 0x661   :  { %5003 = vmatprep.subr.bf16.mxu0 %v6561_v0 }
 0x662   :  { %v790_v20 = vpop.permute.xlu0 %789 }
 0x663   :  { %4076 = vst.msk [vmem:[%s6554_s12 + $0x20] sm:$0xff] %vm72_vm1, %v790_v20  ;;  %4539 = vmatmul.mubr.msk.f32.gmra.mrb[18].mxu0 %vm72_vm1, %v790_v20 }
 0x664   :  { %4541 = vmatprep.mubr.msk.f32.mxu0 %vm5340_vm0, %v6563_v4  ;;  %5005 = vmatpush3.bf16.msra.mxu0 %v5450_v7 }
 0x665   :  { %5012 = vmatprep.subr.bf16.mxu0 %v6561_v0 }
 0x666   :  { %v792_v24 = vpop.permute.xlu1 %791 }
 0x667   :  { %4077 = vst.msk [vmem:[%s6554_s12 + $0x28] sm:$0x3] %vm343_vm2, %v792_v24  ;;  %4542 = vmatmul.mubr.msk.f32.gmra.mrb[20].mxu0 %vm72_vm1, %v792_v24 }
 0x668   :  { %4565 = vmatprep.mubr.msk.f32.mxu0 %vm5340_vm0, %v6563_v4 }
 0x66b   :  { %4566 = vmatmul.mubr.msk.f32.vlgmr.msra.gmra.mrb[22].mxu0 %vm72_vm1, %v4084_v25 }
 0x66c   :  { %4568 = vmatprep.mubr.msk.f32.mxu0 %vm5340_vm0, %v6563_v4  ;;  %5014 = vmatpush3.bf16.msra.mxu0 %v5538_v8 }
 0x66d   :  { %5015 = vmatprep.subr.bf16.mxu0 %v6561_v0 }
 0x66f   :  { %4569 = vmatmul.mubr.msk.f32.gmra.mrb[24].mxu0 %vm72_vm1, %v4085_v26 }
 0x670   :  { %4571 = vmatprep.mubr.msk.f32.mxu0 %vm5340_vm0, %v6563_v4  ;;  %5017 = vmatpush3.bf16.msra.mxu0 %v5544_v12 }
 0x671   :  { %5021 = vmatprep.subr.bf16.mxu0 %v6561_v0 }
 0x673   :  { %4572 = vmatmul.mubr.msk.f32.gmra.mrb[26].mxu0 %vm72_vm1, %v4086_v27 }
 0x674   :  { %4599 = vmatprep.mubr.msk.f32.mxu0 %vm5340_vm0, %v6563_v4 }
 0x732   :  { %v872_v29 = vpop.f32.mrb[16].mxu0 }
 0x733   :  { %v873_v30 = vadd.f32 %v5626_v42, %v872_v29  ;;  %v4537_v31 = vpop.f32.mrb[17].mxu0 }
 0x735   :  { %4549 = vmatmul.mubr.msk.f32.vlgmr.msra.gmra.mrb[20].mxu1 %vm443_vm3, %v873_v30 }
 0x736   :  { %5008 = vmatpush3.bf16.msra.mxu1 %v5465_v11  ;;  %v877_v32 = vpop.f32.mrb[18].mxu0  ;;  %4551 = vmatprep.mubr.msk.f32.mxu1 %vm5340_vm0, %v6563_v4 }
 0x737   :  { %v878_v35 = vadd.f32 %v5626_v42, %v877_v32  ;;  %v4540_v36 = vpop.f32.mrb[19].mxu0  ;;  %5009 = vmatprep.subr.bf16.mxu1 %v6561_v0 }
 0x739   :  { %4552 = vmatmul.mubr.msk.f32.gmra.mrb[22].mxu1 %vm443_vm3, %v878_v35 }
 0x73a   :  { %v882_v37 = vpop.f32.mrb[20].mxu0  ;;  %5011 = vmatpush3.bf16.msra.mxu1 %v5482_v15  ;;  %4554 = vmatprep.mubr.msk.f32.mxu1 %vm5340_vm0, %v6563_v4 }
 0x73b   :  { %v883_v38 = vadd.f32 %v5626_v42, %v882_v37  ;;  %v4543_v39 = vpop.f32.mrb[21].mxu0  ;;  %5018 = vmatprep.subr.bf16.mxu1 %v6561_v0 }
 0x73d   :  { %4555 = vmatmul.mubr.msk.f32.gmra.mrb[24].mxu1 %vm443_vm3, %v883_v38 }
 0x73e   :  { %4582 = vmatprep.mubr.msk.f32.mxu1 %vm5340_vm0, %v6563_v4  ;;  %v1054_v40 = vpop.f32.mrb[22].mxu0 }
 0x73f   :  { %v4567_v41 = vpop.f32.mrb[23].mxu0  ;;  %v1055_v3 = vadd.f32 %v5520_v33, %v1054_v40 }
 0x741   :  { %4583 = vmatmul.mubr.msk.f32.vlgmr.msra.gmra.mrb[26].mxu1 %vm72_vm1, %v788_v19 }
 0x742   :  { %4585 = vmatprep.mubr.msk.f32.mxu1 %vm5340_vm0, %v6563_v4  ;;  %5020 = vmatpush3.bf16.msra.mxu1 %v5557_v21  ;;  %v1059_v43 = vpop.f32.mrb[24].mxu0 }
 0x743   :  { %5027 = vmatprep.subr.bf16.mxu1 %v6561_v0  ;;  %v4570_v44 = vpop.f32.mrb[25].mxu0  ;;  %v1060_v9 = vadd.f32 %v5520_v33, %v1059_v43 }
 0x745   :  { %4586 = vmatmul.mubr.msk.f32.gmra.mrb[28].mxu1 %vm72_vm1, %v790_v20 }
 0x746   :  { %4588 = vmatprep.mubr.msk.f32.mxu1 %vm5340_vm0, %v6563_v4  ;;  %v1064_v45 = vpop.f32.mrb[26].mxu0 }
 0x747   :  { %v4573_v46 = vpop.f32.mrb[27].mxu0  ;;  %v1065_v16 = vadd.f32 %v5520_v33, %v1064_v45 }
 0x749   :  { %4589 = vmatmul.mubr.msk.f32.gmra.mrb[30].mxu1 %vm72_vm1, %v792_v24 }
 0x74a   :  { %4612 = vmatprep.mubr.msk.f32.mxu1 %vm5340_vm0, %v6563_v4 }
 0x808   :  { %v5765_v47 = vpop.f32.mrb[20].mxu1 }
 0x809   :  { %v4550_v48 = vpop.f32.mrb[21].mxu1 }
 0x80c   :  { %v5767_v49 = vpop.f32.mrb[22].mxu1 }
 0x80d   :  { %v4553_v50 = vpop.f32.mrb[23].mxu1 }
 0x810   :  { %v5769_v51 = vpop.f32.mrb[24].mxu1 }
 0x811   :  { %v4556_v52 = vpop.f32.mrb[25].mxu1 }
 0x814   :  { %v1134_v53 = vpop.f32.mrb[26].mxu1 }
 0x815   :  { %v1135_v54 = vadd.f32 %v5509_v23, %v1134_v53  ;;  %v4584_v55 = vpop.f32.mrb[27].mxu1 }
 0x817   :  { %1172 = vrot.lane.b32.xlu0 %v1135_v54, %s5342_s30  ;;  %v1148_v6 = vadd.f32 %v1135_v54, %v1055_v3 }
 0x818   :  { %v1139_v56 = vpop.f32.mrb[28].mxu1 }
 0x819   :  { %v1140_v57 = vadd.f32 %v5509_v23, %v1139_v56  ;;  %v4587_v59 = vpop.f32.mrb[29].mxu1  ;;  %v4093_v13 = vmul.f32 -1.442695, %v1148_v6 }
 0x81b   :  { %1174 = vrot.lane.b32.xlu1 %v1140_v57, %s5342_s30  ;;  %v1149_v14 = vadd.f32 %v1140_v57, %v1060_v9  ;;  %5216 = vpow2.f32 %v4093_v13 }
 0x81c   :  { %v1144_v61 = vpop.f32.mrb[30].mxu1 }
 0x81d   :  { %v1145_v63 = vadd.f32 %v5509_v23, %v1144_v61  ;;  %v4590_v2 = vpop.f32.mrb[31].mxu1  ;;  %v4094_v17 = vmul.f32 -1.442695, %v1149_v14 }
 0x81f   :  { %1176 = vrot.lane.b32.xlu0 %v1145_v63, %s5342_s30  ;;  %v1150_v19 = vadd.f32 %v1145_v63, %v1065_v16  ;;  %5218 = vpow2.f32 %v4094_v17 }
 0x821   :  { %v4095_v20 = vmul.f32 -1.442695, %v1150_v19 }
 0x823   :  { %5220 = vpow2.f32 %v4095_v20 }
 0x825   :  { %v5217_v24 = vpop.eup %5216 }
 0x826   :  { %v1160_v25 = vadd.f32 1.0, %v5217_v24 }
 0x828   :  { %5222 = vrcp.f32 %v1160_v25 }
 0x829   :  { %v5219_v26 = vpop.eup %5218 }
 0x82a   :  { %v1161_v27 = vadd.f32 1.0, %v5219_v26  ;;  %v4105_v26 = vld [vmem:[%s6549_s0 + $0x48] sm:$0xff] }
 0x82c   :  { %5224 = vrcp.f32 %v1161_v27  ;;  %v4106_v27 = vld [vmem:[%s6549_s0 + $0x50] sm:$0xff] }
 0x82d   :  { %v5221_v29 = vpop.eup %5220 }
 0x82e   :  { %v1162_v30 = vadd.f32 1.0, %v5221_v29  ;;  %v4107_v29 = vld [vmem:[%s6549_s0 + $0x58] sm:$0x3] }
 0x830   :  { %5226 = vrcp.f32 %v1162_v30 }
 0x832   :  { %v5223_v31 = vpop.eup %5222 }
 0x833   :  { %v1202_v55 = vsub.f32 1.0, %v5223_v31  ;;  %v1220_v57 = vmul.f32 %v5223_v31, %v5677_v1 }
 0x836   :  { %v5225_v36 = vpop.eup %5224 }
 0x837   :  { %v1203_v63 = vsub.f32 1.0, %v5225_v36 }
 0x83a   :  { %v5227_v39 = vpop.eup %5226 }
 0x83b   :  { %v1204_v13 = vsub.f32 1.0, %v5227_v39 }
 0x889   :  { %v1173_v32 = vpop.permute.xlu0 %1172 }
 0x88a   :  { %v1181_v35 = vmul.f32 %v5223_v31, %v1173_v32 }
 0x88c   :  { %1187 = vrot.lane.b32.xlu1 %v1181_v35, %s5342_s30 }
 0x88d   :  { %v1175_v37 = vpop.permute.xlu1 %1174 }
 0x88e   :  { %v1182_v38 = vmul.f32 %v5225_v36, %v1175_v37 }
 0x890   :  { %1189 = vrot.lane.b32.xlu0 %v1182_v38, %s5342_s30 }
 0x891   :  { %v1177_v40 = vpop.permute.xlu0 %1176 }
 0x892   :  { %v1183_v41 = vmul.f32 %v5227_v39, %v1177_v40 }
 0x894   :  { %1191 = vrot.lane.b32.xlu1 %v1183_v41, %s5342_s30 }
 0x8fe   :  { %v1188_v43 = vpop.permute.xlu1 %1187 }
 0x8ff   :  { %v1196_v44 = vadd.f32 %v1188_v43, %v1055_v3  ;;  %v1221_v3 = vmul.f32 %v5225_v36, %v5682_v10 }
 0x901   :  { %5228 = vtanh.f32 %v1196_v44 }
 0x902   :  { %v1190_v45 = vpop.permute.xlu0 %1189 }
 0x903   :  { %v1197_v46 = vadd.f32 %v1190_v45, %v1060_v9 }
 0x905   :  { %5230 = vtanh.f32 %v1197_v46 }
 0x906   :  { %v1192_v48 = vpop.permute.xlu1 %1191 }
 0x907   :  { %v1198_v50 = vadd.f32 %v1192_v48, %v1065_v16  ;;  %v1222_v16 = vmul.f32 %v5227_v39, %v5687_v18 }
 0x909   :  { %5232 = vtanh.f32 %v1198_v50 }
 0x90b   :  { %v5229_v52 = vpop.eup %5228 }
 0x90c   :  { %1208 = vrot.lane.b32.xlu0 %v5229_v52, %s5343_s16 }
 0x90f   :  { %v5231_v53 = vpop.eup %5230 }
 0x910   :  { %1210 = vrot.lane.b32.xlu1 %v5231_v53, %s5343_s16 }
 0x913   :  { %v5233_v54 = vpop.eup %5232 }
 0x914   :  { %1212 = vrot.lane.b32.xlu0 %v5233_v54, %s5343_s16 }
 0x97e   :  { %v1209_v56 = vpop.permute.xlu0 %1208 }
 0x97f   :  { %v1217_v59 = vmul.f32 %v1209_v56, %v1202_v55 }
 0x981   :  { %v5787_v61 = vadd.f32 %v1220_v57, %v1217_v59 }
 0x982   :  { %v1211_v2 = vpop.permute.xlu1 %1210 }
 0x983   :  { %v1218_v6 = vmul.f32 %v1211_v2, %v1203_v63  ;;  %1229 = vrot.lane.b32.xlu1 %v5787_v61, %s5343_s16 }
 0x985   :  { %v5792_v9 = vadd.f32 %v1221_v3, %v1218_v6 }
 0x986   :  { %v1213_v14 = vpop.permute.xlu0 %1212 }
 0x987   :  { %v1219_v17 = vmul.f32 %v1213_v14, %v1204_v13  ;;  %1231 = vrot.lane.b32.xlu0 %v5792_v9, %s5343_s16 }
 0x989   :  { %v5797_v19 = vadd.f32 %v1222_v16, %v1219_v17 }
 0x98b   :  { %1233 = vrot.lane.b32.xlu1 %v5797_v19, %s5343_s16 }
 0x9f5   :  { %v1230_v20 = vpop.permute.xlu1 %1229 }
 0x9f6   :  { %4096 = vst.msk [vmem:[%s6554_s12 + $0x30] sm:$0xff] %vm72_vm1, %v1230_v20  ;;  %4600 = vmatmul.mubr.msk.f32.vlgmr.msra.gmra.mrb[28].mxu0 %vm72_vm1, %v1230_v20 }
 0x9f7   :  { %4602 = vmatprep.mubr.msk.f32.mxu0 %vm5340_vm0, %v6563_v4  ;;  %5023 = vmatpush3.bf16.msra.mxu0 %v5441_v5 }
 0x9f8   :  { %5024 = vmatprep.subr.bf16.mxu0 %v6561_v0 }
 0x9f9   :  { %v1232_v24 = vpop.permute.xlu0 %1231 }
 0x9fa   :  { %4097 = vst.msk [vmem:[%s6554_s12 + $0x38] sm:$0xff] %vm72_vm1, %v1232_v24  ;;  %4603 = vmatmul.mubr.msk.f32.gmra.mrb[30].mxu0 %vm72_vm1, %v1232_v24 }
 0x9fb   :  { %4605 = vmatprep.mubr.msk.f32.mxu0 %vm5340_vm0, %v6563_v4  ;;  %5026 = vmatpush3.bf16.msra.mxu0 %v5450_v7 }
 0x9fc   :  { %5033 = vmatprep.subr.bf16.mxu0 %v6561_v0 }
 0x9fd   :  { %v1234_v25 = vpop.permute.xlu1 %1233 }
 0x9fe   :  { %4098 = vst.msk [vmem:[%s6554_s12 + $0x40] sm:$0x3] %vm343_vm2, %v1234_v25  ;;  %4606 = vmatmul.mubr.msk.f32.gmra.mrb[32].mxu0 %vm72_vm1, %v1234_v25 }
 0x9ff   :  { %4629 = vmatprep.mubr.msk.f32.mxu0 %vm5340_vm0, %v6563_v4 }
 0xa02   :  { %4630 = vmatmul.mubr.msk.f32.vlgmr.msra.gmra.mrb[34].mxu0 %vm72_vm1, %v4105_v26 }
 0xa03   :  { %4632 = vmatprep.mubr.msk.f32.mxu0 %vm5340_vm0, %v6563_v4  ;;  %5035 = vmatpush3.bf16.msra.mxu0 %v5538_v8 }
 0xa04   :  { %5036 = vmatprep.subr.bf16.mxu0 %v6561_v0 }
 0xa06   :  { %4633 = vmatmul.mubr.msk.f32.gmra.mrb[36].mxu0 %vm72_vm1, %v4106_v27 }
 0xa07   :  { %4635 = vmatprep.mubr.msk.f32.mxu0 %vm5340_vm0, %v6563_v4  ;;  %5038 = vmatpush3.bf16.msra.mxu0 %v5544_v12 }
 0xa08   :  { %5042 = vmatprep.subr.bf16.mxu0 %v6561_v0 }
 0xa0a   :  { %4636 = vmatmul.mubr.msk.f32.gmra.mrb[38].mxu0 %vm72_vm1, %v4107_v29 }
 0xa0b   :  { %4663 = vmatprep.mubr.msk.f32.mxu0 %vm5340_vm0, %v6563_v4 }
 0xac9   :  { %v1314_v30 = vpop.f32.mrb[28].mxu0 }
 0xaca   :  { %v1315_v31 = vadd.f32 %v5626_v42, %v1314_v30  ;;  %v4601_v32 = vpop.f32.mrb[29].mxu0 }
 0xacc   :  { %4613 = vmatmul.mubr.msk.f32.vlgmr.msra.gmra.mrb[32].mxu1 %vm443_vm3, %v1315_v31 }
 0xacd   :  { %5029 = vmatpush3.bf16.msra.mxu1 %v5465_v11  ;;  %v1319_v35 = vpop.f32.mrb[30].mxu0  ;;  %4615 = vmatprep.mubr.msk.f32.mxu1 %vm5340_vm0, %v6563_v4 }
 0xace   :  { %v1320_v36 = vadd.f32 %v5626_v42, %v1319_v35  ;;  %v4604_v37 = vpop.f32.mrb[31].mxu0  ;;  %5030 = vmatprep.subr.bf16.mxu1 %v6561_v0 }
 0xad0   :  { %4616 = vmatmul.mubr.msk.f32.gmra.mrb[34].mxu1 %vm443_vm3, %v1320_v36 }
 0xad1   :  { %v1324_v38 = vpop.f32.mrb[32].mxu0  ;;  %5032 = vmatpush3.bf16.msra.mxu1 %v5482_v15  ;;  %4618 = vmatprep.mubr.msk.f32.mxu1 %vm5340_vm0, %v6563_v4 }
 0xad2   :  { %v1325_v39 = vadd.f32 %v5626_v42, %v1324_v38  ;;  %v4607_v40 = vpop.f32.mrb[33].mxu0  ;;  %5039 = vmatprep.subr.bf16.mxu1 %v6561_v0 }
 0xad4   :  { %4619 = vmatmul.mubr.msk.f32.gmra.mrb[36].mxu1 %vm443_vm3, %v1325_v39 }
 0xad5   :  { %4646 = vmatprep.mubr.msk.f32.mxu1 %vm5340_vm0, %v6563_v4  ;;  %v1496_v41 = vpop.f32.mrb[34].mxu0 }
 0xad6   :  { %v4631_v43 = vpop.f32.mrb[35].mxu0  ;;  %v1497_v17 = vadd.f32 %v5520_v33, %v1496_v41 }
 0xad8   :  { %4647 = vmatmul.mubr.msk.f32.vlgmr.msra.gmra.mrb[38].mxu1 %vm72_vm1, %v1230_v20 }
 0xad9   :  { %4649 = vmatprep.mubr.msk.f32.mxu1 %vm5340_vm0, %v6563_v4  ;;  %5041 = vmatpush3.bf16.msra.mxu1 %v5557_v21  ;;  %v1501_v44 = vpop.f32.mrb[36].mxu0 }
 0xada   :  { %5048 = vmatprep.subr.bf16.mxu1 %v6561_v0  ;;  %v4634_v45 = vpop.f32.mrb[37].mxu0 }
 0xadc   :  { %4650 = vmatmul.mubr.msk.f32.gmra.mrb[40].mxu1 %vm72_vm1, %v1232_v24  ;;  %v1502_v24 = vadd.f32 %v5520_v33, %v1501_v44 }
 0xadd   :  { %4652 = vmatprep.mubr.msk.f32.mxu1 %vm5340_vm0, %v6563_v4  ;;  %v1506_v46 = vpop.f32.mrb[38].mxu0 }
 0xade   :  { %v4637_v48 = vpop.f32.mrb[39].mxu0  ;;  %v1507_v27 = vadd.f32 %v5520_v33, %v1506_v46 }
 0xae0   :  { %4653 = vmatmul.mubr.msk.f32.gmra.mrb[42].mxu1 %vm72_vm1, %v1234_v25 }
 0xae1   :  { %4676 = vmatprep.mubr.msk.f32.mxu1 %vm5340_vm0, %v6563_v4 }
 0xb9f   :  { %v5875_v50 = vpop.f32.mrb[32].mxu1 }
 0xba0   :  { %v4614_v52 = vpop.f32.mrb[33].mxu1 }
 0xba3   :  { %v5877_v53 = vpop.f32.mrb[34].mxu1 }
 0xba4   :  { %v4617_v54 = vpop.f32.mrb[35].mxu1 }
 0xba7   :  { %v5879_v55 = vpop.f32.mrb[36].mxu1 }
 0xba8   :  { %v4620_v56 = vpop.f32.mrb[37].mxu1 }
 0xbab   :  { %v1576_v57 = vpop.f32.mrb[38].mxu1 }
 0xbac   :  { %v1577_v59 = vadd.f32 %v5509_v23, %v1576_v57  ;;  %v4648_v63 = vpop.f32.mrb[39].mxu1 }
 0xbae   :  { %1614 = vrot.lane.b32.xlu0 %v1577_v59, %s5342_s30  ;;  %v1590_v20 = vadd.f32 %v1577_v59, %v1497_v17 }
 0xbaf   :  { %v1581_v2 = vpop.f32.mrb[40].mxu1 }
 0xbb0   :  { %v1582_v3 = vadd.f32 %v5509_v23, %v1581_v2  ;;  %v4651_v6 = vpop.f32.mrb[41].mxu1  ;;  %v4114_v25 = vmul.f32 -1.442695, %v1590_v20 }
 0xbb2   :  { %1616 = vrot.lane.b32.xlu1 %v1582_v3, %s5342_s30  ;;  %v1591_v26 = vadd.f32 %v1582_v3, %v1502_v24  ;;  %5234 = vpow2.f32 %v4114_v25 }
 0xbb3   :  { %v1586_v13 = vpop.f32.mrb[42].mxu1 }
 0xbb4   :  { %v1587_v14 = vadd.f32 %v5509_v23, %v1586_v13  ;;  %v4654_v16 = vpop.f32.mrb[43].mxu1  ;;  %v4115_v29 = vmul.f32 -1.442695, %v1591_v26 }
 0xbb6   :  { %1618 = vrot.lane.b32.xlu0 %v1587_v14, %s5342_s30  ;;  %v1592_v30 = vadd.f32 %v1587_v14, %v1507_v27  ;;  %5236 = vpow2.f32 %v4115_v29 }
 0xbb8   :  { %v4116_v31 = vmul.f32 -1.442695, %v1592_v30 }
 0xbba   :  { %5238 = vpow2.f32 %v4116_v31 }
 0xbbc   :  { %v5235_v32 = vpop.eup %5234 }
 0xbbd   :  { %v1602_v23 = vadd.f32 1.0, %v5235_v32 }
 0xbbf   :  { %5240 = vrcp.f32 %v1602_v23 }
 0xbc0   :  { %v5237_v35 = vpop.eup %5236 }
 0xbc1   :  { %v1603_v36 = vadd.f32 1.0, %v5237_v35 }
 0xbc3   :  { %5242 = vrcp.f32 %v1603_v36 }
 0xbc4   :  { %v5239_v37 = vpop.eup %5238 }
 0xbc5   :  { %v1604_v38 = vadd.f32 1.0, %v5239_v37 }
 0xbc7   :  { %5244 = vrcp.f32 %v1604_v38 }
 0xbc9   :  { %v5241_v39 = vpop.eup %5240 }
 0xbca   :  { %v1644_v13 = vsub.f32 1.0, %v5241_v39  ;;  %v1662_v16 = vmul.f32 %v5241_v39, %v5787_v61 }
 0xbcd   :  { %v5243_v33 = vpop.eup %5242 }
 0xbce   :  { %v1663_v26 = vmul.f32 %v5243_v33, %v5792_v9 }
 0xbd1   :  { %v5245_v45 = vpop.eup %5244 }
 0xbd2   :  { %v1646_v30 = vsub.f32 1.0, %v5245_v45  ;;  %v1664_v32 = vmul.f32 %v5245_v45, %v5797_v19 }
 0xc20   :  { %v1615_v40 = vpop.permute.xlu0 %1614 }
 0xc21   :  { %v1623_v41 = vmul.f32 %v5241_v39, %v1615_v40  ;;  %v4126_v39 = vld [vmem:[%s6549_s0 + $0x60] sm:$0xff]  ;;  %v4127_v40 = vld [vmem:[%s6549_s0 + $0x68] sm:$0xff] }
 0xc23   :  { %1629 = vrot.lane.b32.xlu1 %v1623_v41, %s5342_s30  ;;  %v4128_v41 = vld [vmem:[%s6549_s0 + $0x70] sm:$0x3] }
 0xc24   :  { %v1617_v43 = vpop.permute.xlu1 %1616 }
 0xc25   :  { %v1624_v44 = vmul.f32 %v5243_v33, %v1617_v43 }
 0xc27   :  { %1631 = vrot.lane.b32.xlu0 %v1624_v44, %s5342_s30 }
 0xc28   :  { %v1619_v46 = vpop.permute.xlu0 %1618 }
 0xc29   :  { %v1625_v48 = vmul.f32 %v5245_v45, %v1619_v46 }
 0xc2b   :  { %1633 = vrot.lane.b32.xlu1 %v1625_v48, %s5342_s30 }
 0xc95   :  { %v1630_v52 = vpop.permute.xlu1 %1629 }
 0xc96   :  { %v1638_v54 = vadd.f32 %v1630_v52, %v1497_v17 }
 0xc98   :  { %5246 = vtanh.f32 %v1638_v54 }
 0xc99   :  { %v1632_v56 = vpop.permute.xlu0 %1631 }
 0xc9a   :  { %v1639_v57 = vadd.f32 %v1632_v56, %v1502_v24  ;;  %v1645_v24 = vsub.f32 1.0, %v5243_v33 }
 0xc9c   :  { %5248 = vtanh.f32 %v1639_v57 }
 0xc9d   :  { %v1634_v59 = vpop.permute.xlu1 %1633 }
 0xc9e   :  { %v1640_v63 = vadd.f32 %v1634_v59, %v1507_v27 }
 0xca0   :  { %5250 = vtanh.f32 %v1640_v63 }
 0xca2   :  { %v5247_v2 = vpop.eup %5246 }
 0xca3   :  { %1650 = vrot.lane.b32.xlu0 %v5247_v2, %s5343_s16 }
 0xca6   :  { %v5249_v3 = vpop.eup %5248 }
 0xca7   :  { %1652 = vrot.lane.b32.xlu1 %v5249_v3, %s5343_s16 }
 0xcaa   :  { %v5251_v6 = vpop.eup %5250 }
 0xcab   :  { %1654 = vrot.lane.b32.xlu0 %v5251_v6, %s5343_s16 }
 0xd15   :  { %v1651_v14 = vpop.permute.xlu0 %1650 }
 0xd16   :  { %v1659_v17 = vmul.f32 %v1651_v14, %v1644_v13 }
 0xd18   :  { %v5897_v20 = vadd.f32 %v1662_v16, %v1659_v17 }
 0xd19   :  { %v1653_v25 = vpop.permute.xlu1 %1652 }
 0xd1a   :  { %v1660_v27 = vmul.f32 %v1653_v25, %v1645_v24  ;;  %1671 = vrot.lane.b32.xlu1 %v5897_v20, %s5343_s16 }
 0xd1c   :  { %v5902_v29 = vadd.f32 %v1663_v26, %v1660_v27  ;;  %v5994_v26 = vld [vmem:[%s6550_s5] ss:$0 sm:$0xff] }
 0xd1d   :  { %v1655_v31 = vpop.permute.xlu0 %1654 }
 0xd1e   :  { %v1661_v23 = vmul.f32 %v1655_v31, %v1646_v30  ;;  %1673 = vrot.lane.b32.xlu0 %v5902_v29, %s5343_s16 }
 0xd20   :  { %v5907_v35 = vadd.f32 %v1664_v32, %v1661_v23 }
 0xd22   :  { %6567 = vst [vmem:[#allocation3_spill] sm:$0xff] %v5907_v35  ;;  %1675 = vrot.lane.b32.xlu1 %v5907_v35, %s5343_s16 }
 0xd8c   :  { %v1672_v36 = vpop.permute.xlu1 %1671 }
 0xd8d   :  { %4117 = vst.msk [vmem:[%s6554_s12 + $0x48] sm:$0xff] %vm72_vm1, %v1672_v36  ;;  %4664 = vmatmul.mubr.msk.f32.vlgmr.msra.gmra.mrb[40].mxu0 %vm72_vm1, %v1672_v36 }
 0xd8e   :  { %4666 = vmatprep.mubr.msk.f32.mxu0 %vm5340_vm0, %v6563_v4  ;;  %5044 = vmatpush3.bf16.msra.mxu0 %v5441_v5 }
 0xd8f   :  { %5045 = vmatprep.subr.bf16.mxu0 %v6561_v0 }
 0xd90   :  { %v1674_v37 = vpop.permute.xlu0 %1673 }
 0xd91   :  { %4118 = vst.msk [vmem:[%s6554_s12 + $0x50] sm:$0xff] %vm72_vm1, %v1674_v37  ;;  %4667 = vmatmul.mubr.msk.f32.gmra.mrb[42].mxu0 %vm72_vm1, %v1674_v37 }
 0xd92   :  { %4669 = vmatprep.mubr.msk.f32.mxu0 %vm5340_vm0, %v6563_v4  ;;  %5047 = vmatpush3.bf16.msra.mxu0 %v5450_v7 }
 0xd93   :  { %5054 = vmatprep.subr.bf16.mxu0 %v6561_v0 }
 0xd94   :  { %v1676_v38 = vpop.permute.xlu1 %1675 }
 0xd95   :  { %4119 = vst.msk [vmem:[%s6554_s12 + $0x58] sm:$0x3] %vm343_vm2, %v1676_v38  ;;  %4670 = vmatmul.mubr.msk.f32.gmra.mrb[44].mxu0 %vm72_vm1, %v1676_v38 }
 0xd96   :  { %4693 = vmatprep.mubr.msk.f32.mxu0 %vm5340_vm0, %v6563_v4 }
 0xd99   :  { %4694 = vmatmul.mubr.msk.f32.vlgmr.msra.gmra.mrb[46].mxu0 %vm72_vm1, %v4126_v39  ;;  %v6005_v39 = vld [vmem:[%s6551_s4] ss:$0 sm:$0xff] }
 0xd9a   :  { %4696 = vmatprep.mubr.msk.f32.mxu0 %vm5340_vm0, %v6563_v4  ;;  %5056 = vmatpush3.bf16.msra.mxu0 %v5538_v8 }
 0xd9b   :  { %5057 = vmatprep.subr.bf16.mxu0 %v6561_v0 }
 0xd9d   :  { %4697 = vmatmul.mubr.msk.f32.gmra.mrb[48].mxu0 %vm72_vm1, %v4127_v40 }
 0xd9e   :  { %4699 = vmatprep.mubr.msk.f32.mxu0 %vm5340_vm0, %v6563_v4  ;;  %5059 = vmatpush3.bf16.msra.mxu0 %v5544_v12 }
 0xd9f   :  { %5063 = vmatprep.subr.bf16.mxu0 %v6561_v0 }
 0xda1   :  { %4700 = vmatmul.mubr.msk.f32.gmra.mrb[50].mxu0 %vm72_vm1, %v4128_v41 }
 0xda2   :  { %4727 = vmatprep.mubr.msk.f32.mxu0 %vm5340_vm0, %v6563_v4 }
 0xe60   :  { %v1756_v33 = vpop.f32.mrb[40].mxu0 }
 0xe61   :  { %v1757_v43 = vadd.f32 %v5626_v42, %v1756_v33  ;;  %v4665_v44 = vpop.f32.mrb[41].mxu0 }
 0xe63   :  { %4677 = vmatmul.mubr.msk.f32.vlgmr.msra.gmra.mrb[44].mxu1 %vm443_vm3, %v1757_v43 }
 0xe64   :  { %5050 = vmatpush3.bf16.msra.mxu1 %v5465_v11  ;;  %v1761_v45 = vpop.f32.mrb[42].mxu0  ;;  %4679 = vmatprep.mubr.msk.f32.mxu1 %vm5340_vm0, %v6563_v4 }
 0xe65   :  { %v1762_v46 = vadd.f32 %v5626_v42, %v1761_v45  ;;  %v4668_v48 = vpop.f32.mrb[43].mxu0  ;;  %5051 = vmatprep.subr.bf16.mxu1 %v6561_v0 }
 0xe67   :  { %4680 = vmatmul.mubr.msk.f32.gmra.mrb[46].mxu1 %vm443_vm3, %v1762_v46 }
 0xe68   :  { %v1766_v52 = vpop.f32.mrb[44].mxu0  ;;  %5053 = vmatpush3.bf16.msra.mxu1 %v5482_v15  ;;  %4682 = vmatprep.mubr.msk.f32.mxu1 %vm5340_vm0, %v6563_v4 }
 0xe69   :  { %v1767_v54 = vadd.f32 %v5626_v42, %v1766_v52  ;;  %v4671_v56 = vpop.f32.mrb[45].mxu0  ;;  %5060 = vmatprep.subr.bf16.mxu1 %v6561_v0 }
 0xe6b   :  { %4683 = vmatmul.mubr.msk.f32.gmra.mrb[48].mxu1 %vm443_vm3, %v1767_v54 }
 0xe6c   :  { %4710 = vmatprep.mubr.msk.f32.mxu1 %vm5340_vm0, %v6563_v4  ;;  %v1938_v42 = vpop.f32.mrb[46].mxu0 }
 0xe6d   :  { %v4695_v57 = vpop.f32.mrb[47].mxu0  ;;  %v1939_v40 = vadd.f32 %v6005_v39, %v1938_v42 }
 0xe6f   :  { %4711 = vmatmul.mubr.msk.f32.vlgmr.msra.gmra.mrb[50].mxu1 %vm72_vm1, %v1672_v36 }
 0xe70   :  { %4713 = vmatprep.mubr.msk.f32.mxu1 %vm5340_vm0, %v6563_v4  ;;  %5062 = vmatpush3.bf16.msra.mxu1 %v5557_v21  ;;  %v1943_v59 = vpop.f32.mrb[48].mxu0 }
 0xe71   :  { %5069 = vmatprep.subr.bf16.mxu1 %v6561_v0  ;;  %v4698_v63 = vpop.f32.mrb[49].mxu0  ;;  %v1944_v33 = vadd.f32 %v6005_v39, %v1943_v59 }
 0xe73   :  { %4714 = vmatmul.mubr.msk.f32.gmra.mrb[52].mxu1 %vm72_vm1, %v1674_v37 }
 0xe74   :  { %4716 = vmatprep.mubr.msk.f32.mxu1 %vm5340_vm0, %v6563_v4  ;;  %v1948_v2 = vpop.f32.mrb[50].mxu0 }
 0xe75   :  { %v4701_v3 = vpop.f32.mrb[51].mxu0  ;;  %v1949_v45 = vadd.f32 %v6005_v39, %v1948_v2 }
 0xe77   :  { %4717 = vmatmul.mubr.msk.f32.gmra.mrb[54].mxu1 %vm72_vm1, %v1676_v38 }
 0xe78   :  { %4740 = vmatprep.mubr.msk.f32.mxu1 %vm5340_vm0, %v6563_v4 }
 0xf36   :  { %v5985_v6 = vpop.f32.mrb[44].mxu1 }
 0xf37   :  { %v4678_v13 = vpop.f32.mrb[45].mxu1 }
 0xf3a   :  { %v5987_v14 = vpop.f32.mrb[46].mxu1 }
 0xf3b   :  { %v4681_v16 = vpop.f32.mrb[47].mxu1 }
 0xf3e   :  { %v5989_v17 = vpop.f32.mrb[48].mxu1 }
 0xf3f   :  { %v4684_v24 = vpop.f32.mrb[49].mxu1 }
 0xf42   :  { %v2018_v25 = vpop.f32.mrb[50].mxu1 }
 0xf43   :  { %v2019_v27 = vadd.f32 %v5994_v26, %v2018_v25  ;;  %v4712_v30 = vpop.f32.mrb[51].mxu1 }
 0xf45   :  { %2056 = vrot.lane.b32.xlu0 %v2019_v27, %s5342_s30  ;;  %v2032_v41 = vadd.f32 %v2019_v27, %v1939_v40 }
 0xf46   :  { %v2023_v31 = vpop.f32.mrb[52].mxu1 }
 0xf47   :  { %v2024_v32 = vadd.f32 %v5994_v26, %v2023_v31  ;;  %v4715_v23 = vpop.f32.mrb[53].mxu1  ;;  %v4135_v43 = vmul.f32 -1.442695, %v2032_v41 }
 0xf49   :  { %2058 = vrot.lane.b32.xlu1 %v2024_v32, %s5342_s30  ;;  %v2033_v44 = vadd.f32 %v2024_v32, %v1944_v33  ;;  %5252 = vpow2.f32 %v4135_v43 }
 0xf4a   :  { %v2028_v36 = vpop.f32.mrb[54].mxu1 }
 0xf4b   :  { %v2029_v37 = vadd.f32 %v5994_v26, %v2028_v36  ;;  %v4718_v38 = vpop.f32.mrb[55].mxu1  ;;  %v4136_v46 = vmul.f32 -1.442695, %v2033_v44 }
 0xf4d   :  { %2060 = vrot.lane.b32.xlu0 %v2029_v37, %s5342_s30  ;;  %v2034_v48 = vadd.f32 %v2029_v37, %v1949_v45  ;;  %5254 = vpow2.f32 %v4136_v46 }
 0xf4f   :  { %v4137_v52 = vmul.f32 -1.442695, %v2034_v48 }
 0xf51   :  { %5256 = vpow2.f32 %v4137_v52 }
 0xf53   :  { %v5253_v54 = vpop.eup %5252 }
 0xf54   :  { %v2044_v56 = vadd.f32 1.0, %v5253_v54 }
 0xf56   :  { %5258 = vrcp.f32 %v2044_v56 }
 0xf57   :  { %v5255_v57 = vpop.eup %5254 }
 0xf58   :  { %v2045_v63 = vadd.f32 1.0, %v5255_v57 }
 0xf5a   :  { %5260 = vrcp.f32 %v2045_v63 }
 0xf5b   :  { %v5257_v3 = vpop.eup %5256 }
 0xf5c   :  { %v2046_v42 = vadd.f32 1.0, %v5257_v3 }
 0xf5e   :  { %5262 = vrcp.f32 %v2046_v42 }
 0xf60   :  { %v5259_v59 = vpop.eup %5258 }
 0xf61   :  { %v2086_v48 = vsub.f32 1.0, %v5259_v59 }
 0xf64   :  { %v5261_v2 = vpop.eup %5260 }
 0xf68   :  { %v5263_v27 = vpop.eup %5262 }
 0xf69   :  { %v2088_v42 = vsub.f32 1.0, %v5263_v27 }
 0xfb7   :  { %v2057_v13 = vpop.permute.xlu0 %2056 }
 0xfb8   :  { %v2065_v16 = vmul.f32 %v5259_v59, %v2057_v13 }
 0xfba   :  { %2071 = vrot.lane.b32.xlu1 %v2065_v16, %s5342_s30  ;;  %v2106_v16 = vmul.f32 %v5263_v27, %v5907_v35 }
 0xfbb   :  { %v2059_v24 = vpop.permute.xlu1 %2058 }
 0xfbc   :  { %v2066_v25 = vmul.f32 %v5261_v2, %v2059_v24 }
 0xfbe   :  { %2073 = vrot.lane.b32.xlu0 %v2066_v25, %s5342_s30 }
 0xfbf   :  { %v2061_v30 = vpop.permute.xlu0 %2060 }
 0xfc0   :  { %v2067_v31 = vmul.f32 %v5263_v27, %v2061_v30  ;;  %v4147_v30 = vld [vmem:[%s6549_s0 + $0x78] sm:$0xff] }
 0xfc2   :  { %2075 = vrot.lane.b32.xlu1 %v2067_v31, %s5342_s30  ;;  %v4148_v31 = vld [vmem:[%s6549_s0 + $0x80] sm:$0xff] }
0x102c   :  { %v2072_v32 = vpop.permute.xlu1 %2071 }
0x102d   :  { %v2080_v23 = vadd.f32 %v2072_v32, %v1939_v40  ;;  %v2104_v40 = vmul.f32 %v5259_v59, %v5897_v20  ;;  %v4149_v32 = vld [vmem:[%s6549_s0 + $0x88] sm:$0x3] }
0x102f   :  { %5264 = vtanh.f32 %v2080_v23 }
0x1030   :  { %v2074_v36 = vpop.permute.xlu0 %2073 }
0x1031   :  { %v2081_v37 = vadd.f32 %v2074_v36, %v1944_v33  ;;  %v2087_v33 = vsub.f32 1.0, %v5261_v2  ;;  %v6081_v36 = vld [vmem:[%s6556_s7] ss:$0 sm:$0xff] }
0x1033   :  { %5266 = vtanh.f32 %v2081_v37 }
0x1034   :  { %v2076_v38 = vpop.permute.xlu1 %2075 }
0x1035   :  { %v2082_v41 = vadd.f32 %v2076_v38, %v1949_v45  ;;  %v2105_v45 = vmul.f32 %v5261_v2, %v5902_v29 }
0x1037   :  { %5268 = vtanh.f32 %v2082_v41 }
0x1039   :  { %v5265_v43 = vpop.eup %5264 }
0x103a   :  { %2092 = vrot.lane.b32.xlu0 %v5265_v43, %s5343_s16 }
0x103d   :  { %v5267_v44 = vpop.eup %5266 }
0x103e   :  { %2094 = vrot.lane.b32.xlu1 %v5267_v44, %s5343_s16 }
0x1041   :  { %v5269_v46 = vpop.eup %5268 }
0x1042   :  { %2096 = vrot.lane.b32.xlu0 %v5269_v46, %s5343_s16 }
0x10ac   :  { %v2093_v52 = vpop.permute.xlu0 %2092 }
0x10ad   :  { %v2101_v54 = vmul.f32 %v2093_v52, %v2086_v48 }
0x10af   :  { %v6017_v56 = vadd.f32 %v2104_v40, %v2101_v54 }
0x10b0   :  { %v2095_v57 = vpop.permute.xlu1 %2094 }
0x10b1   :  { %v2102_v63 = vmul.f32 %v2095_v57, %v2087_v33  ;;  %2113 = vrot.lane.b32.xlu1 %v6017_v56, %s5343_s16 }
0x10b3   :  { %v6022_v3 = vadd.f32 %v2105_v45, %v2102_v63 }
0x10b4   :  { %v2097_v13 = vpop.permute.xlu0 %2096 }
0x10b5   :  { %v2103_v24 = vmul.f32 %v2097_v13, %v2088_v42  ;;  %2115 = vrot.lane.b32.xlu0 %v6022_v3, %s5343_s16 }
0x10b7   :  { %v6027_v59 = vadd.f32 %v2106_v16, %v2103_v24 }
0x10b9   :  { %6568 = vst [vmem:[#allocation4_spill] sm:$0xff] %v6027_v59  ;;  %2117 = vrot.lane.b32.xlu1 %v6027_v59, %s5343_s16 }
0x1123   :  { %v2114_v2 = vpop.permute.xlu1 %2113 }
0x1124   :  { %4138 = vst.msk [vmem:[%s6554_s12 + $0x60] sm:$0xff] %vm72_vm1, %v2114_v2  ;;  %4728 = vmatmul.mubr.msk.f32.vlgmr.msra.gmra.mrb[52].mxu0 %vm72_vm1, %v2114_v2 }
0x1125   :  { %4730 = vmatprep.mubr.msk.f32.mxu0 %vm5340_vm0, %v6563_v4  ;;  %5065 = vmatpush3.bf16.msra.mxu0 %v5441_v5 }
0x1126   :  { %5066 = vmatprep.subr.bf16.mxu0 %v6561_v0 }
0x1127   :  { %v2116_v25 = vpop.permute.xlu0 %2115 }
0x1128   :  { %4139 = vst.msk [vmem:[%s6554_s12 + $0x68] sm:$0xff] %vm72_vm1, %v2116_v25  ;;  %4731 = vmatmul.mubr.msk.f32.gmra.mrb[54].mxu0 %vm72_vm1, %v2116_v25 }
0x1129   :  { %4733 = vmatprep.mubr.msk.f32.mxu0 %vm5340_vm0, %v6563_v4  ;;  %5068 = vmatpush3.bf16.msra.mxu0 %v5450_v7 }
0x112a   :  { %5075 = vmatprep.subr.bf16.mxu0 %v6561_v0 }
0x112b   :  { %v2118_v27 = vpop.permute.xlu1 %2117 }
0x112c   :  { %4140 = vst.msk [vmem:[%s6554_s12 + $0x70] sm:$0x3] %vm343_vm2, %v2118_v27  ;;  %4734 = vmatmul.mubr.msk.f32.gmra.mrb[56].mxu0 %vm72_vm1, %v2118_v27 }
0x112d   :  { %4757 = vmatprep.mubr.msk.f32.mxu0 %vm5340_vm0, %v6563_v4 }
0x1130   :  { %4758 = vmatmul.mubr.msk.f32.vlgmr.msra.gmra.mrb[58].mxu0 %vm72_vm1, %v4147_v30 }
0x1131   :  { %4760 = vmatprep.mubr.msk.f32.mxu0 %vm5340_vm0, %v6563_v4  ;;  %5077 = vmatpush3.bf16.msra.mxu0 %v5538_v8 }
0x1132   :  { %5078 = vmatprep.subr.bf16.mxu0 %v6561_v0 }
0x1134   :  { %4761 = vmatmul.mubr.msk.f32.gmra.mrb[60].mxu0 %vm72_vm1, %v4148_v31 }
0x1135   :  { %4763 = vmatprep.mubr.msk.f32.mxu0 %vm5340_vm0, %v6563_v4  ;;  %5080 = vmatpush3.bf16.msra.mxu0 %v5544_v12 }
0x1136   :  { %5084 = vmatprep.subr.bf16.mxu0 %v6561_v0 }
0x1138   :  { %4764 = vmatmul.mubr.msk.f32.gmra.mrb[62].mxu0 %vm72_vm1, %v4149_v32 }
0x1139   :  { %4791 = vmatprep.mubr.msk.f32.mxu0 %vm5340_vm0, %v6563_v4 }
0x11f7   :  { %v2198_v23 = vpop.f32.mrb[52].mxu0 }
0x11f8   :  { %v2199_v37 = vadd.f32 %v6081_v36, %v2198_v23  ;;  %v4729_v38 = vpop.f32.mrb[53].mxu0 }
0x11fa   :  { %4741 = vmatmul.mubr.msk.f32.vlgmr.msra.gmra.mrb[56].mxu1 %vm443_vm3, %v2199_v37 }
0x11fb   :  { %5071 = vmatpush3.bf16.msra.mxu1 %v5465_v11  ;;  %v2203_v41 = vpop.f32.mrb[54].mxu0  ;;  %4743 = vmatprep.mubr.msk.f32.mxu1 %vm5340_vm0, %v6563_v4 }
0x11fc   :  { %v2204_v43 = vadd.f32 %v6081_v36, %v2203_v41  ;;  %v4732_v44 = vpop.f32.mrb[55].mxu0  ;;  %5072 = vmatprep.subr.bf16.mxu1 %v6561_v0 }
0x11fe   :  { %4744 = vmatmul.mubr.msk.f32.gmra.mrb[58].mxu1 %vm443_vm3, %v2204_v43 }
0x11ff   :  { %v2208_v46 = vpop.f32.mrb[56].mxu0  ;;  %5074 = vmatpush3.bf16.msra.mxu1 %v5482_v15  ;;  %4746 = vmatprep.mubr.msk.f32.mxu1 %vm5340_vm0, %v6563_v4 }
0x1200   :  { %v2209_v48 = vadd.f32 %v6081_v36, %v2208_v46  ;;  %v4735_v52 = vpop.f32.mrb[57].mxu0  ;;  %5081 = vmatprep.subr.bf16.mxu1 %v6561_v0 }
0x1202   :  { %4747 = vmatmul.mubr.msk.f32.gmra.mrb[60].mxu1 %vm443_vm3, %v2209_v48 }
0x1203   :  { %4774 = vmatprep.mubr.msk.f32.mxu1 %vm5340_vm0, %v6563_v4  ;;  %v2380_v40 = vpop.f32.mrb[58].mxu0 }
0x1204   :  { %v4759_v54 = vpop.f32.mrb[59].mxu0  ;;  %v2381_v44 = vadd.f32 %v6005_v39, %v2380_v40 }
0x1206   :  { %4775 = vmatmul.mubr.msk.f32.vlgmr.msra.gmra.mrb[62].mxu1 %vm72_vm1, %v2114_v2 }
0x1207   :  { %4777 = vmatprep.mubr.msk.f32.mxu1 %vm5340_vm0, %v6563_v4  ;;  %5083 = vmatpush3.bf16.msra.mxu1 %v5557_v21  ;;  %v2385_v33 = vpop.f32.mrb[60].mxu0 }
0x1208   :  { %5090 = vmatprep.subr.bf16.mxu1 %v6561_v0  ;;  %v4762_v57 = vpop.f32.mrb[61].mxu0  ;;  %v2386_v48 = vadd.f32 %v6005_v39, %v2385_v33 }
0x120a   :  { %4778 = vmatmul.mubr.msk.f32.gmra.mrb[64].mxu1 %vm72_vm1, %v2116_v25 }
0x120b   :  { %4780 = vmatprep.mubr.msk.f32.mxu1 %vm5340_vm0, %v6563_v4  ;;  %v2390_v45 = vpop.f32.mrb[62].mxu0 }
0x120c   :  { %v4765_v63 = vpop.f32.mrb[63].mxu0  ;;  %v2391_v57 = vadd.f32 %v6005_v39, %v2390_v45 }
0x120e   :  { %4781 = vmatmul.mubr.msk.f32.gmra.mrb[66].mxu1 %vm72_vm1, %v2118_v27 }
0x120f   :  { %4804 = vmatprep.mubr.msk.f32.mxu1 %vm5340_vm0, %v6563_v4 }
0x12cd   :  { %v6110_v42 = vpop.f32.mrb[56].mxu1 }
0x12ce   :  { %v4742_v13 = vpop.f32.mrb[57].mxu1 }
0x12d1   :  { %v6112_v16 = vpop.f32.mrb[58].mxu1 }
0x12d2   :  { %v4745_v24 = vpop.f32.mrb[59].mxu1 }
0x12d5   :  { %v6114_v2 = vpop.f32.mrb[60].mxu1 }
0x12d6   :  { %v4748_v25 = vpop.f32.mrb[61].mxu1 }
0x12d9   :  { %v2460_v30 = vpop.f32.mrb[62].mxu1 }
0x12da   :  { %v2461_v27 = vadd.f32 %v5994_v26, %v2460_v30  ;;  %v4776_v31 = vpop.f32.mrb[63].mxu1 }
0x12dc   :  { %2498 = vrot.lane.b32.xlu0 %v2461_v27, %s5342_s30  ;;  %v2474_v46 = vadd.f32 %v2461_v27, %v2381_v44 }
0x12dd   :  { %v2465_v32 = vpop.f32.mrb[64].mxu1 }
0x12de   :  { %v2466_v23 = vadd.f32 %v5994_v26, %v2465_v32  ;;  %v4779_v37 = vpop.f32.mrb[65].mxu1  ;;  %v4156_v52 = vmul.f32 -1.442695, %v2474_v46 }
0x12e0   :  { %2500 = vrot.lane.b32.xlu1 %v2466_v23, %s5342_s30  ;;  %v2475_v54 = vadd.f32 %v2466_v23, %v2386_v48  ;;  %5270 = vpow2.f32 %v4156_v52 }
0x12e1   :  { %v2470_v38 = vpop.f32.mrb[66].mxu1 }
0x12e2   :  { %v2471_v41 = vadd.f32 %v5994_v26, %v2470_v38  ;;  %v4782_v43 = vpop.f32.mrb[67].mxu1  ;;  %v4157_v63 = vmul.f32 -1.442695, %v2475_v54 }
0x12e4   :  { %2502 = vrot.lane.b32.xlu0 %v2471_v41, %s5342_s30  ;;  %v2476_v13 = vadd.f32 %v2471_v41, %v2391_v57  ;;  %5272 = vpow2.f32 %v4157_v63 }
0x12e6   :  { %v4158_v24 = vmul.f32 -1.442695, %v2476_v13 }
0x12e8   :  { %5274 = vpow2.f32 %v4158_v24 }
0x12ea   :  { %v5271_v25 = vpop.eup %5270 }
0x12eb   :  { %v2486_v30 = vadd.f32 1.0, %v5271_v25 }
0x12ed   :  { %5276 = vrcp.f32 %v2486_v30 }
0x12ee   :  { %v5273_v31 = vpop.eup %5272 }
0x12ef   :  { %v2487_v32 = vadd.f32 1.0, %v5273_v31 }
0x12f1   :  { %5278 = vrcp.f32 %v2487_v32 }
0x12f2   :  { %v5275_v37 = vpop.eup %5274 }
0x12f3   :  { %v2488_v40 = vadd.f32 1.0, %v5275_v37 }
0x12f5   :  { %5280 = vrcp.f32 %v2488_v40 }
0x12f7   :  { %v5277_v33 = vpop.eup %5276 }
0x12f8   :  { %v2528_v40 = vsub.f32 1.0, %v5277_v33 }
0x12fb   :  { %v5279_v45 = vpop.eup %5278 }
0x12ff   :  { %v5281_v43 = vpop.eup %5280 }
0x134e   :  { %v2499_v27 = vpop.permute.xlu0 %2498 }
0x134f   :  { %v2507_v23 = vmul.f32 %v5277_v33, %v2499_v27 }
0x1351   :  { %2513 = vrot.lane.b32.xlu1 %v2507_v23, %s5342_s30 }
0x1352   :  { %v2501_v38 = vpop.permute.xlu1 %2500 }
0x1353   :  { %v2508_v41 = vmul.f32 %v5279_v45, %v2501_v38 }
0x1355   :  { %2515 = vrot.lane.b32.xlu0 %v2508_v41, %s5342_s30 }
0x1356   :  { %v2503_v46 = vpop.permute.xlu0 %2502 }
0x1357   :  { %v2509_v52 = vmul.f32 %v5281_v43, %v2503_v46 }
0x1359   :  { %2517 = vrot.lane.b32.xlu1 %v2509_v52, %s5342_s30 }
0x13c3   :  { %v2514_v54 = vpop.permute.xlu1 %2513 }
0x13c4   :  { %v2522_v63 = vadd.f32 %v2514_v54, %v2381_v44  ;;  %v2546_v44 = vmul.f32 %v5277_v33, %v6017_v56  ;;  %v2530_v54 = vsub.f32 1.0, %v5281_v43 }
0x13c6   :  { %5282 = vtanh.f32 %v2522_v63 }
0x13c7   :  { %v2516_v13 = vpop.permute.xlu0 %2515 }
0x13c8   :  { %v2523_v24 = vadd.f32 %v2516_v13, %v2386_v48  ;;  %v2529_v48 = vsub.f32 1.0, %v5279_v45  ;;  %v2548_v13 = vmul.f32 %v5281_v43, %v6027_v59 }
0x13ca   :  { %5284 = vtanh.f32 %v2523_v24 }
0x13cb   :  { %v2518_v25 = vpop.permute.xlu1 %2517 }
0x13cc   :  { %v2524_v30 = vadd.f32 %v2518_v25, %v2391_v57  ;;  %v2547_v57 = vmul.f32 %v5279_v45, %v6022_v3 }
0x13ce   :  { %5286 = vtanh.f32 %v2524_v30  ;;  %v4168_v30 = vld [vmem:[%s6549_s0 + $0x90] sm:$0xff] }
0x13d0   :  { %v5283_v31 = vpop.eup %5282 }
0x13d1   :  { %2534 = vrot.lane.b32.xlu0 %v5283_v31, %s5343_s16  ;;  %v4169_v31 = vld [vmem:[%s6549_s0 + $0x98] sm:$0xff] }
0x13d4   :  { %v5285_v32 = vpop.eup %5284 }
0x13d5   :  { %2536 = vrot.lane.b32.xlu1 %v5285_v32, %s5343_s16  ;;  %v4170_v32 = vld [vmem:[%s6549_s0 + $0xa0] sm:$0x3] }
0x13d8   :  { %v5287_v37 = vpop.eup %5286 }
0x13d9   :  { %2538 = vrot.lane.b32.xlu0 %v5287_v37, %s5343_s16 }
0x1443   :  { %v2535_v27 = vpop.permute.xlu0 %2534 }
0x1444   :  { %v2543_v23 = vmul.f32 %v2535_v27, %v2528_v40 }
0x1446   :  { %v6132_v38 = vadd.f32 %v2546_v44, %v2543_v23 }
0x1447   :  { %v2537_v41 = vpop.permute.xlu1 %2536 }
0x1448   :  { %v2544_v46 = vmul.f32 %v2537_v41, %v2529_v48  ;;  %2555 = vrot.lane.b32.xlu1 %v6132_v38, %s5343_s16 }
0x144a   :  { %v6137_v52 = vadd.f32 %v2547_v57, %v2544_v46 }
0x144b   :  { %v2539_v63 = vpop.permute.xlu0 %2538 }
0x144c   :  { %v2545_v24 = vmul.f32 %v2539_v63, %v2530_v54  ;;  %2557 = vrot.lane.b32.xlu0 %v6137_v52, %s5343_s16 }
0x144e   :  { %v6142_v33 = vadd.f32 %v2548_v13, %v2545_v24 }
0x1450   :  { %2559 = vrot.lane.b32.xlu1 %v6142_v33, %s5343_s16 }
0x14ba   :  { %v2556_v45 = vpop.permute.xlu1 %2555 }
0x14bb   :  { %4159 = vst.msk [vmem:[%s6554_s12 + $0x78] sm:$0xff] %vm72_vm1, %v2556_v45  ;;  %4792 = vmatmul.mubr.msk.f32.vlgmr.msra.gmra.mrb[64].mxu0 %vm72_vm1, %v2556_v45 }
0x14bc   :  { %4794 = vmatprep.mubr.msk.f32.mxu0 %vm5340_vm0, %v6563_v4  ;;  %5086 = vmatpush3.bf16.msra.mxu0 %v5441_v5 }
0x14bd   :  { %5087 = vmatprep.subr.bf16.mxu0 %v6561_v0 }
0x14be   :  { %v2558_v43 = vpop.permute.xlu0 %2557 }
0x14bf   :  { %4160 = vst.msk [vmem:[%s6554_s12 + $0x80] sm:$0xff] %vm72_vm1, %v2558_v43  ;;  %4795 = vmatmul.mubr.msk.f32.gmra.mrb[66].mxu0 %vm72_vm1, %v2558_v43 }
0x14c0   :  { %4797 = vmatprep.mubr.msk.f32.mxu0 %vm5340_vm0, %v6563_v4  ;;  %5089 = vmatpush3.bf16.msra.mxu0 %v5450_v7 }
0x14c1   :  { %5096 = vmatprep.subr.bf16.mxu0 %v6561_v0 }
0x14c2   :  { %v2560_v25 = vpop.permute.xlu1 %2559 }
0x14c3   :  { %4161 = vst.msk [vmem:[%s6554_s12 + $0x88] sm:$0x3] %vm343_vm2, %v2560_v25  ;;  %4798 = vmatmul.mubr.msk.f32.gmra.mrb[68].mxu0 %vm72_vm1, %v2560_v25 }
0x14c4   :  { %4821 = vmatprep.mubr.msk.f32.mxu0 %vm5340_vm0, %v6563_v4 }
0x14c7   :  { %4822 = vmatmul.mubr.msk.f32.vlgmr.msra.gmra.mrb[70].mxu0 %vm72_vm1, %v4168_v30 }
0x14c8   :  { %4824 = vmatprep.mubr.msk.f32.mxu0 %vm5340_vm0, %v6563_v4  ;;  %5098 = vmatpush3.bf16.msra.mxu0 %v5538_v8 }
0x14c9   :  { %5099 = vmatprep.subr.bf16.mxu0 %v6561_v0 }
0x14cb   :  { %4825 = vmatmul.mubr.msk.f32.gmra.mrb[72].mxu0 %vm72_vm1, %v4169_v31 }
0x14cc   :  { %4827 = vmatprep.mubr.msk.f32.mxu0 %vm5340_vm0, %v6563_v4  ;;  %5101 = vmatpush3.bf16.msra.mxu0 %v5544_v12 }
0x14cd   :  { %5105 = vmatprep.subr.bf16.mxu0 %v6561_v0 }
0x14cf   :  { %4828 = vmatmul.mubr.msk.f32.gmra.mrb[74].mxu0 %vm72_vm1, %v4170_v32 }
0x14d0   :  { %4855 = vmatprep.mubr.msk.f32.mxu0 %vm5340_vm0, %v6563_v4 }
0x158e   :  { %v2640_v37 = vpop.f32.mrb[64].mxu0 }
0x158f   :  { %v2641_v40 = vadd.f32 %v6081_v36, %v2640_v37  ;;  %v4793_v27 = vpop.f32.mrb[65].mxu0 }
0x1591   :  { %4805 = vmatmul.mubr.msk.f32.vlgmr.msra.gmra.mrb[68].mxu1 %vm443_vm3, %v2641_v40 }
0x1592   :  { %5092 = vmatpush3.bf16.msra.mxu1 %v5465_v11  ;;  %v2645_v44 = vpop.f32.mrb[66].mxu0  ;;  %4807 = vmatprep.mubr.msk.f32.mxu1 %vm5340_vm0, %v6563_v4 }
0x1593   :  { %v2646_v23 = vadd.f32 %v6081_v36, %v2645_v44  ;;  %v4796_v48 = vpop.f32.mrb[67].mxu0  ;;  %5093 = vmatprep.subr.bf16.mxu1 %v6561_v0 }
0x1595   :  { %4808 = vmatmul.mubr.msk.f32.gmra.mrb[70].mxu1 %vm443_vm3, %v2646_v23 }
0x1596   :  { %v2650_v41 = vpop.f32.mrb[68].mxu0  ;;  %5095 = vmatpush3.bf16.msra.mxu1 %v5482_v15  ;;  %4810 = vmatprep.mubr.msk.f32.mxu1 %vm5340_vm0, %v6563_v4 }
0x1597   :  { %v2651_v57 = vadd.f32 %v6081_v36, %v2650_v41  ;;  %v4799_v46 = vpop.f32.mrb[69].mxu0  ;;  %5102 = vmatprep.subr.bf16.mxu1 %v6561_v0 }
0x1599   :  { %4811 = vmatmul.mubr.msk.f32.gmra.mrb[72].mxu1 %vm443_vm3, %v2651_v57 }
0x159a   :  { %4838 = vmatprep.mubr.msk.f32.mxu1 %vm5340_vm0, %v6563_v4  ;;  %v2822_v54 = vpop.f32.mrb[70].mxu0 }
0x159b   :  { %v4823_v63 = vpop.f32.mrb[71].mxu0 }
0x159d   :  { %4839 = vmatmul.mubr.msk.f32.vlgmr.msra.gmra.mrb[74].mxu1 %vm72_vm1, %v2556_v45 }
0x159e   :  { %4841 = vmatprep.mubr.msk.f32.mxu1 %vm5340_vm0, %v6563_v4  ;;  %5104 = vmatpush3.bf16.msra.mxu1 %v5557_v21  ;;  %v2827_v13 = vpop.f32.mrb[72].mxu0 }
0x159f   :  { %5111 = vmatprep.subr.bf16.mxu1 %v6561_v0  ;;  %v4826_v24 = vpop.f32.mrb[73].mxu0 }
0x15a1   :  { %4842 = vmatmul.mubr.msk.f32.gmra.mrb[76].mxu1 %vm72_vm1, %v2558_v43 }
0x15a2   :  { %4844 = vmatprep.mubr.msk.f32.mxu1 %vm5340_vm0, %v6563_v4  ;;  %v2832_v45 = vpop.f32.mrb[74].mxu0 }
0x15a3   :  { %v4829_v30 = vpop.f32.mrb[75].mxu0 }
0x15a4   :  { %v2823_v30 = vadd.f32 %v6005_v39, %v2822_v54 }
0x15a5   :  { %4845 = vmatmul.mubr.msk.f32.gmra.mrb[78].mxu1 %vm72_vm1, %v2560_v25 }
0x15a6   :  { %4868 = vmatprep.mubr.msk.f32.mxu1 %vm5340_vm0, %v6563_v4 }
0x1664   :  { %v6220_v31 = vpop.f32.mrb[68].mxu1 }
0x1665   :  { %v4806_v32 = vpop.f32.mrb[69].mxu1 }
0x1668   :  { %v6222_v37 = vpop.f32.mrb[70].mxu1 }
0x1669   :  { %v4809_v43 = vpop.f32.mrb[71].mxu1 }
0x166a   :  { %v2828_v43 = vadd.f32 %v6005_v39, %v2827_v13 }
0x166c   :  { %v6224_v40 = vpop.f32.mrb[72].mxu1 }
0x166d   :  { %v4812_v27 = vpop.f32.mrb[73].mxu1 }
0x1670   :  { %v2902_v44 = vpop.f32.mrb[74].mxu1 }
0x1671   :  { %v2903_v25 = vadd.f32 %v5994_v26, %v2902_v44  ;;  %v4840_v23 = vpop.f32.mrb[75].mxu1 }
0x1672   :  { %v2833_v23 = vadd.f32 %v6005_v39, %v2832_v45 }
0x1673   :  { %2940 = vrot.lane.b32.xlu0 %v2903_v25, %s5342_s30  ;;  %v2916_v32 = vadd.f32 %v2903_v25, %v2823_v30 }
0x1674   :  { %v2907_v48 = vpop.f32.mrb[76].mxu1 }
0x1675   :  { %v2908_v41 = vadd.f32 %v5994_v26, %v2907_v48  ;;  %v4843_v57 = vpop.f32.mrb[77].mxu1  ;;  %v4177_v27 = vmul.f32 -1.442695, %v2916_v32 }
0x1677   :  { %2942 = vrot.lane.b32.xlu1 %v2908_v41, %s5342_s30  ;;  %v2917_v44 = vadd.f32 %v2908_v41, %v2828_v43  ;;  %5288 = vpow2.f32 %v4177_v27 }
0x1678   :  { %v2912_v46 = vpop.f32.mrb[78].mxu1 }
0x1679   :  { %v2913_v63 = vadd.f32 %v5994_v26, %v2912_v46  ;;  %v4846_v24 = vpop.f32.mrb[79].mxu1  ;;  %v4178_v48 = vmul.f32 -1.442695, %v2917_v44 }
0x167b   :  { %2944 = vrot.lane.b32.xlu0 %v2913_v63, %s5342_s30  ;;  %v2918_v57 = vadd.f32 %v2913_v63, %v2833_v23  ;;  %5290 = vpow2.f32 %v4178_v48 }
0x167d   :  { %v4179_v0 = vmul.f32 -1.442695, %v2918_v57 }
0x167f   :  { %5292 = vpow2.f32 %v4179_v0 }
0x1681   :  { %v5289_v4 = vpop.eup %5288 }
0x1682   :  { %v2928_v46 = vadd.f32 1.0, %v5289_v4 }
0x1684   :  { %5294 = vrcp.f32 %v2928_v46 }
0x1685   :  { %v5291_v24 = vpop.eup %5290 }
0x1686   :  { %v2929_v59 = vadd.f32 1.0, %v5291_v24 }
0x1688   :  { %5296 = vrcp.f32 %v2929_v59 }
0x1689   :  { %v5293_v35 = vpop.eup %5292 }
0x168a   :  { %v2930_v54 = vadd.f32 1.0, %v5293_v35 }
0x168c   :  { %5298 = vrcp.f32 %v2930_v54 }
0x168e   :  { %v5295_v13 = vpop.eup %5294 }
0x1692   :  { %v5297_v45 = vpop.eup %5296 }
0x1696   :  { %v5299_v0 = vpop.eup %5298 }
0x16e5   :  { %v2941_v25 = vpop.permute.xlu0 %2940 }
0x16e6   :  { %v2949_v41 = vmul.f32 %v5295_v13, %v2941_v25 }
0x16e8   :  { %2955 = vrot.lane.b32.xlu1 %v2949_v41, %s5342_s30  ;;  %v2970_v41 = vsub.f32 1.0, %v5295_v13 }
0x16e9   :  { %v2943_v32 = vpop.permute.xlu1 %2942 }
0x16ea   :  { %v2950_v63 = vmul.f32 %v5297_v45, %v2943_v32 }
0x16ec   :  { %2957 = vrot.lane.b32.xlu0 %v2950_v63, %s5342_s30 }
0x16ed   :  { %v2945_v27 = vpop.permute.xlu0 %2944 }
0x16ee   :  { %v2951_v4 = vmul.f32 %v5299_v0, %v2945_v27 }
0x16f0   :  { %2959 = vrot.lane.b32.xlu1 %v2951_v4, %s5342_s30 }
0x175a   :  { %v2956_v44 = vpop.permute.xlu1 %2955 }
0x175b   :  { %v2964_v48 = vadd.f32 %v2956_v44, %v2823_v30  ;;  %v2988_v30 = vmul.f32 %v5295_v13, %v6132_v38 }
0x175d   :  { %5300 = vtanh.f32 %v2964_v48 }
0x175e   :  { %v2958_v35 = vpop.permute.xlu0 %2957 }
0x175f   :  { %v2965_v59 = vadd.f32 %v2958_v35, %v2828_v43  ;;  %v2971_v43 = vsub.f32 1.0, %v5297_v45  ;;  %v2972_v35 = vsub.f32 1.0, %v5299_v0 }
0x1761   :  { %5302 = vtanh.f32 %v2965_v59 }
0x1762   :  { %v2960_v57 = vpop.permute.xlu1 %2959 }
0x1763   :  { %v2966_v46 = vadd.f32 %v2960_v57, %v2833_v23  ;;  %v2989_v23 = vmul.f32 %v5297_v45, %v6137_v52  ;;  %v2990_v57 = vmul.f32 %v5299_v0, %v6142_v33  ;;  %v6570_v0 = vmov 0.0|0.0  }
0x1765   :  { %5304 = vtanh.f32 %v2966_v46 }
0x1767   :  { %v5301_v24 = vpop.eup %5300 }
0x1768   :  { %2976 = vrot.lane.b32.xlu0 %v5301_v24, %s5343_s16  ;;  %v6569_v24 = vmov 0.0  }
0x176b   :  { %v5303_v54 = vpop.eup %5302 }
0x176c   :  { %2978 = vrot.lane.b32.xlu1 %v5303_v54, %s5343_s16 }
0x176f   :  { %v5305_v25 = vpop.eup %5304 }
0x1770   :  { %2980 = vrot.lane.b32.xlu0 %v5305_v25, %s5343_s16 }
0x17da   :  { %v2977_v32 = vpop.permute.xlu0 %2976 }
0x17db   :  { %v2985_v63 = vmul.f32 %v2977_v32, %v2970_v41  ;;  %v4191_v41 = vld [vmem:[%s6549_s0 + $0xb8] sm:$0x3] }
0x17dd   :  { %v6242_v27 = vadd.f32 %v2988_v30, %v2985_v63 }
0x17de   :  { %v2979_v4 = vpop.permute.xlu1 %2978 }
0x17df   :  { %v2986_v44 = vmul.f32 %v2979_v4, %v2971_v43  ;;  %2997 = vrot.lane.b32.xlu1 %v6242_v27, %s5343_s16 }
0x17e1   :  { %v6247_v48 = vadd.f32 %v2989_v23, %v2986_v44 }
0x17e2   :  { %v2981_v59 = vpop.permute.xlu0 %2980 }
0x17e3   :  { %v2987_v46 = vmul.f32 %v2981_v59, %v2972_v35  ;;  %2999 = vrot.lane.b32.xlu0 %v6247_v48, %s5343_s16 }
0x17e5   :  { %v6252_v13 = vadd.f32 %v2990_v57, %v2987_v46 }
0x17e7   :  { %3001 = vrot.lane.b32.xlu1 %v6252_v13, %s5343_s16 }
0x1851   :  { %v2998_v45 = vpop.permute.xlu1 %2997 }
0x1852   :  { %4180 = vst.msk [vmem:[%s6554_s12 + $0x90] sm:$0xff] %vm72_vm1, %v2998_v45  ;;  %4856 = vmatmul.mubr.msk.f32.vlgmr.msra.gmra.mrb[76].mxu0 %vm72_vm1, %v2998_v45 }
0x1853   :  { %4858 = vmatprep.mubr.msk.f32.mxu0 %vm5340_vm0, %v6569_v24  ;;  %5107 = vmatpush3.bf16.msra.mxu0 %v5441_v5  ;;  %v4189_v5 = vld [vmem:[%s6549_s0 + $0xa8] sm:$0xff] }
0x1854   :  { %5108 = vmatprep.subr.bf16.mxu0 %v6570_v0 }
0x1855   :  { %v3000_v54 = vpop.permute.xlu0 %2999 }
0x1856   :  { %4181 = vst.msk [vmem:[%s6554_s12 + $0x98] sm:$0xff] %vm72_vm1, %v3000_v54  ;;  %4859 = vmatmul.mubr.msk.f32.gmra.mrb[78].mxu0 %vm72_vm1, %v3000_v54 }
0x1857   :  { %4861 = vmatprep.mubr.msk.f32.mxu0 %vm5340_vm0, %v6569_v24  ;;  %5110 = vmatpush3.bf16.msra.mxu0 %v5450_v7  ;;  %v4190_v7 = vld [vmem:[%s6549_s0 + $0xb0] sm:$0xff]  ;;  %s5344_s0 = smov 1  }
0x1858   :  { %5117 = vmatprep.subr.bf16.mxu0 %v6570_v0 }
0x1859   :  { %v3002_v25 = vpop.permute.xlu1 %3001 }
0x185a   :  { %4182 = vst.msk [vmem:[%s6554_s12 + $0xa0] sm:$0x3] %vm343_vm2, %v3002_v25  ;;  %4862 = vmatmul.mubr.msk.f32.gmra.mrb[80].mxu0 %vm72_vm1, %v3002_v25 }
0x185b   :  { %4885 = vmatprep.mubr.msk.f32.mxu0 %vm5340_vm0, %v6569_v24 }
0x185e   :  { %4886 = vmatmul.mubr.msk.f32.vlgmr.msra.gmra.mrb[82].mxu0 %vm72_vm1, %v4189_v5 }
0x185f   :  { %4888 = vmatprep.mubr.msk.f32.mxu0 %vm5340_vm0, %v6569_v24  ;;  %5119 = vmatpush3.bf16.msra.mxu0 %v5538_v8 }
0x1860   :  { %5120 = vmatprep.subr.bf16.mxu0 %v6570_v0 }
0x1862   :  { %4889 = vmatmul.mubr.msk.f32.gmra.mrb[84].mxu0 %vm72_vm1, %v4190_v7 }
0x1863   :  { %4891 = vmatprep.mubr.msk.f32.mxu0 %vm5340_vm0, %v6569_v24  ;;  %5122 = vmatpush3.bf16.msra.mxu0 %v5544_v12 }
0x1864   :  { %5126 = vmatprep.subr.bf16.mxu0 %v6570_v0 }
0x1866   :  { %4892 = vmatmul.mubr.msk.f32.gmra.mrb[86].mxu0 %vm72_vm1, %v4191_v41 }
0x1867   :  { %4919 = vmatprep.mubr.msk.f32.mxu0 %vm5340_vm0, %v6569_v24 }
0x1925   :  { %v3082_v8 = vpop.f32.mrb[76].mxu0 }
0x1926   :  { %v3083_v32 = vadd.f32 %v6081_v36, %v3082_v8  ;;  %v4857_v30 = vpop.f32.mrb[77].mxu0 }
0x1928   :  { %4869 = vmatmul.mubr.msk.f32.vlgmr.msra.gmra.mrb[80].mxu1 %vm443_vm3, %v3083_v32 }
0x1929   :  { %5113 = vmatpush3.bf16.msra.mxu1 %v5465_v11  ;;  %v3087_v12 = vpop.f32.mrb[78].mxu0  ;;  %4871 = vmatprep.mubr.msk.f32.mxu1 %vm5340_vm0, %v6569_v24 }
0x192a   :  { %v3088_v63 = vadd.f32 %v6081_v36, %v3087_v12  ;;  %v4860_v43 = vpop.f32.mrb[79].mxu0  ;;  %5114 = vmatprep.subr.bf16.mxu1 %v6570_v0 }
0x192c   :  { %4872 = vmatmul.mubr.msk.f32.gmra.mrb[82].mxu1 %vm443_vm3, %v3088_v63 }
0x192d   :  { %v3092_v4 = vpop.f32.mrb[80].mxu0  ;;  %5116 = vmatpush3.bf16.msra.mxu1 %v5482_v15  ;;  %4874 = vmatprep.mubr.msk.f32.mxu1 %vm5340_vm0, %v6569_v24 }
0x192e   :  { %v3093_v23 = vadd.f32 %v6081_v36, %v3092_v4  ;;  %v4863_v11 = vpop.f32.mrb[81].mxu0  ;;  %5123 = vmatprep.subr.bf16.mxu1 %v6570_v0 }
0x1930   :  { %4875 = vmatmul.mubr.msk.f32.gmra.mrb[84].mxu1 %vm443_vm3, %v3093_v23 }
0x1931   :  { %4902 = vmatprep.mubr.msk.f32.mxu1 %vm5340_vm0, %v6569_v24  ;;  %v3264_v15 = vpop.f32.mrb[82].mxu0 }
0x1932   :  { %v4887_v44 = vpop.f32.mrb[83].mxu0  ;;  %v3265_v11 = vadd.f32 %v6005_v39, %v3264_v15 }
0x1934   :  { %4903 = vmatmul.mubr.msk.f32.vlgmr.msra.gmra.mrb[86].mxu1 %vm72_vm1, %v2998_v45 }
0x1935   :  { %4905 = vmatprep.mubr.msk.f32.mxu1 %vm5340_vm0, %v6569_v24  ;;  %5125 = vmatpush3.bf16.msra.mxu1 %v5557_v21  ;;  %v3269_v35 = vpop.f32.mrb[84].mxu0 }
0x1936   :  { %v4890_v59 = vpop.f32.mrb[85].mxu0 }
0x1937   :  { %v3270_v59 = vadd.f32 %v6005_v39, %v3269_v35 }
0x1938   :  { %4906 = vmatmul.mubr.msk.f32.gmra.mrb[88].mxu1 %vm72_vm1, %v3000_v54 }
0x1939   :  { %4908 = vmatprep.mubr.msk.f32.mxu1 %vm5340_vm0, %v6569_v24  ;;  %v3274_v57 = vpop.f32.mrb[86].mxu0 }
0x193a   :  { %v4893_v46 = vpop.f32.mrb[87].mxu0 }
0x193c   :  { %4909 = vmatmul.mubr.msk.f32.gmra.mrb[90].mxu1 %vm72_vm1, %v3002_v25 }
0x193d   :  { %4932 = vmatprep.mubr.msk.f32.mxu1 %vm5340_vm0, %v6569_v24 }
0x19fb   :  { %v6329_v45 = vpop.f32.mrb[80].mxu1 }
0x19fc   :  { %v4870_v5 = vpop.f32.mrb[81].mxu1 }
0x19ff   :  { %v6331_v21 = vpop.f32.mrb[82].mxu1 }
0x1a00   :  { %v4873_v54 = vpop.f32.mrb[83].mxu1 }
0x1a01   :  { %v3275_v54 = vadd.f32 %v6005_v39, %v3274_v57 }
0x1a03   :  { %v6333_v7 = vpop.f32.mrb[84].mxu1 }
0x1a04   :  { %v4876_v41 = vpop.f32.mrb[85].mxu1 }
0x1a07   :  { %v3344_v8 = vpop.f32.mrb[86].mxu1 }
0x1a08   :  { %v3345_v25 = vadd.f32 %v5994_v26, %v3344_v8  ;;  %v4904_v32 = vpop.f32.mrb[87].mxu1 }
0x1a0a   :  { %3382 = vrot.lane.b32.xlu0 %v3345_v25, %s5342_s30  ;;  %v3358_v44 = vadd.f32 %v3345_v25, %v3265_v11 }
0x1a0b   :  { %v3349_v30 = vpop.f32.mrb[88].mxu1 }
0x1a0c   :  { %v3350_v12 = vadd.f32 %v5994_v26, %v3349_v30  ;;  %v4907_v63 = vpop.f32.mrb[89].mxu1  ;;  %v4198_v46 = vmul.f32 -1.442695, %v3358_v44 }
0x1a0e   :  { %3384 = vrot.lane.b32.xlu1 %v3350_v12, %s5342_s30  ;;  %v3359_v5 = vadd.f32 %v3350_v12, %v3270_v59  ;;  %5306 = vpow2.f32 %v4198_v46 }
0x1a0f   :  { %v3354_v43 = vpop.f32.mrb[90].mxu1 }
0x1a10   :  { %v3355_v4 = vadd.f32 %v5994_v26, %v3354_v43  ;;  %v4910_v23 = vpop.f32.mrb[91].mxu1  ;;  %v4199_v41 = vmul.f32 -1.442695, %v3359_v5 }
0x1a12   :  { %3386 = vrot.lane.b32.xlu0 %v3355_v4, %s5342_s30  ;;  %v3360_v8 = vadd.f32 %v3355_v4, %v3275_v54  ;;  %5308 = vpow2.f32 %v4199_v41 }
0x1a14   :  { %v4200_v32 = vmul.f32 -1.442695, %v3360_v8 }
0x1a16   :  { %5310 = vpow2.f32 %v4200_v32 }
0x1a18   :  { %v5307_v30 = vpop.eup %5306 }
0x1a19   :  { %v3370_v26 = vadd.f32 1.0, %v5307_v30 }
0x1a1b   :  { %5312 = vrcp.f32 %v3370_v26 }
0x1a1c   :  { %v5309_v63 = vpop.eup %5308 }
0x1a1d   :  { %v3371_v43 = vadd.f32 1.0, %v5309_v63 }
0x1a1f   :  { %5314 = vrcp.f32 %v3371_v43 }
0x1a20   :  { %v5311_v23 = vpop.eup %5310 }
0x1a21   :  { %v3372_v15 = vadd.f32 1.0, %v5311_v23 }
0x1a23   :  { %5316 = vrcp.f32 %v3372_v15 }
0x1a25   :  { %v5313_v35 = vpop.eup %5312 }
0x1a29   :  { %v5315_v39 = vpop.eup %5314 }
0x1a2d   :  { %v5317_v44 = vpop.eup %5316 }
0x1a7c   :  { %v3383_v25 = vpop.permute.xlu0 %3382 }
0x1a7d   :  { %v3391_v12 = vmul.f32 %v5313_v35, %v3383_v25  ;;  %v3412_v25 = vsub.f32 1.0, %v5313_v35 }
0x1a7f   :  { %3397 = vrot.lane.b32.xlu1 %v3391_v12, %s5342_s30 }
0x1a80   :  { %v3385_v57 = vpop.permute.xlu1 %3384 }
0x1a81   :  { %v3392_v4 = vmul.f32 %v5315_v39, %v3385_v57 }
0x1a83   :  { %3399 = vrot.lane.b32.xlu0 %v3392_v4, %s5342_s30 }
0x1a84   :  { %v3387_v46 = vpop.permute.xlu0 %3386 }
0x1a85   :  { %v3393_v5 = vmul.f32 %v5317_v44, %v3387_v46 }
0x1a87   :  { %3401 = vrot.lane.b32.xlu1 %v3393_v5, %s5342_s30  ;;  %s5345_s30 = smov 2  }
0x1af1   :  { %v3398_v41 = vpop.permute.xlu1 %3397 }
0x1af2   :  { %v3406_v8 = vadd.f32 %v3398_v41, %v3265_v11  ;;  %v3430_v11 = vmul.f32 %v5313_v35, %v6242_v27  ;;  %v6361_v35 = vld [vmem:[#allocation2] ss:$0 sm:$0xff] }
0x1af4   :  { %5318 = vtanh.f32 %v3406_v8  ;;  %v3414_v8 = vsub.f32 1.0, %v5317_v44 }
0x1af5   :  { %v3400_v32 = vpop.permute.xlu0 %3399 }
0x1af6   :  { %v3407_v30 = vadd.f32 %v3400_v32, %v3270_v59  ;;  %v3413_v59 = vsub.f32 1.0, %v5315_v39 }
0x1af8   :  { %5320 = vtanh.f32 %v3407_v30  ;;  %v3432_v30 = vmul.f32 %v5317_v44, %v6252_v13  ;;  %v1846_v44 = vadd.f32 %v6361_v35, %v5985_v6  ;;  %v2730_v6 = vadd.f32 %v6361_v35, %v6220_v31 }
0x1af9   :  { %v3402_v26 = vpop.permute.xlu1 %3401  ;;  %v1414_v31 = vadd.f32 %v6361_v35, %v5879_v55 }
0x1afa   :  { %v3408_v63 = vadd.f32 %v3402_v26, %v3275_v54  ;;  %v3431_v54 = vmul.f32 %v5315_v39, %v6247_v48 }
0x1afc   :  { %5322 = vtanh.f32 %v3408_v63  ;;  %v962_v63 = vadd.f32 %v6361_v35, %v5765_v47  ;;  %v967_v47 = vadd.f32 %v6361_v35, %v5767_v49  ;;  %v3172_v49 = vadd.f32 %v6361_v35, %v6329_v45 }
0x1afd   :  { %v1856_v45 = vadd.f32 %v6361_v35, %v5989_v17 }
0x1afe   :  { %v5319_v43 = vpop.eup %5318 }
0x1aff   :  { %3418 = vrot.lane.b32.xlu0 %v5319_v43, %s5343_s16  ;;  %v1404_v43 = vadd.f32 %v6361_v35, %v5875_v50  ;;  %v1409_v50 = vadd.f32 %v6361_v35, %v5877_v53  ;;  %v2293_v53 = vadd.f32 %v6361_v35, %v6112_v16  ;;  %v2740_v16 = vadd.f32 %v6361_v35, %v6224_v40 }
0x1b02   :  { %v5321_v23 = vpop.eup %5320 }
0x1b03   :  { %3420 = vrot.lane.b32.xlu1 %v5321_v23, %s5343_s16  ;;  %v2288_v23 = vadd.f32 %v6361_v35, %v6110_v42  ;;  %v972_v42 = vadd.f32 %v6361_v35, %v5769_v51  ;;  %v3177_v51 = vadd.f32 %v6361_v35, %v6331_v21 }
0x1b06   :  { %v5323_v15 = vpop.eup %5322 }
0x1b07   :  { %3422 = vrot.lane.b32.xlu0 %v5323_v15, %s5343_s16  ;;  %v1851_v15 = vadd.f32 %v6361_v35, %v5987_v14  ;;  %v2735_v14 = vadd.f32 %v6361_v35, %v6222_v37 }
0x1b71   :  { %v3419_v12 = vpop.permute.xlu0 %3418 }
0x1b72   :  { %v3427_v57 = vmul.f32 %v3419_v12, %v3412_v25 }
0x1b74   :  { %v6351_v4 = vadd.f32 %v3430_v11, %v3427_v57 }
0x1b75   :  { %v3421_v46 = vpop.permute.xlu1 %3420 }
0x1b76   :  { %v3428_v5 = vmul.f32 %v3421_v46, %v3413_v59  ;;  %3439 = vrot.lane.b32.xlu1 %v6351_v4, %s5343_s16 }
0x1b78   :  { %v6356_v41 = vadd.f32 %v3431_v54, %v3428_v5 }
0x1b79   :  { %v3423_v32 = vpop.permute.xlu0 %3422 }
0x1b7a   :  { %v3429_v26 = vmul.f32 %v3423_v32, %v3414_v8  ;;  %3441 = vrot.lane.b32.xlu0 %v6356_v41, %s5343_s16 }
0x1b7c   :  { %v6365_v39 = vadd.f32 %v3432_v30, %v3429_v26  ;;  %v2298_v26 = vadd.f32 %v6361_v35, %v6114_v2 }
0x1b7e   :  { %3443 = vrot.lane.b32.xlu1 %v6365_v39, %s5343_s16  ;;  %3630 = vrot.lane.b32.xlu0 %v962_v63, %s5344_s0 }
0x1b82   :  { %3642 = vrot.lane.b32.xlu1 %v1404_v43, %s5345_s30  ;;  %3654 = vrot.lane.b32.xlu0 %v1846_v44, %s5346_s18  ;;  %v3182_v44 = vadd.f32 %v6361_v35, %v6333_v7 }
0x1b86   :  { %3666 = vrot.lane.b32.xlu1 %v2288_v23, %s5347_s19  ;;  %3632 = vrot.lane.b32.xlu0 %v967_v47, %s5344_s0 }
0x1b8a   :  { %3678 = vrot.lane.b32.xlu1 %v2730_v6, %s5348_s2  ;;  %3644 = vrot.lane.b32.xlu0 %v1409_v50, %s5345_s30 }
0x1b8e   :  { %3690 = vrot.lane.b32.xlu1 %v3172_v49, %s5349_s20  ;;  %3656 = vrot.lane.b32.xlu0 %v1851_v15, %s5346_s18 }
0x1b92   :  { %3634 = vrot.lane.b32.xlu1 %v972_v42, %s5344_s0  ;;  %3668 = vrot.lane.b32.xlu0 %v2293_v53, %s5347_s19 }
0x1b96   :  { %3646 = vrot.lane.b32.xlu1 %v1414_v31, %s5345_s30  ;;  %3680 = vrot.lane.b32.xlu0 %v2735_v14, %s5348_s2 }
0x1b9a   :  { %3658 = vrot.lane.b32.xlu1 %v1856_v45, %s5346_s18  ;;  %3692 = vrot.lane.b32.xlu0 %v3177_v51, %s5349_s20 }
0x1b9e   :  { %3682 = vrot.lane.b32.xlu0 %v2740_v16, %s5348_s2 }
0x1be8   :  { %v3440_v25 = vpop.permute.xlu1 %3439 }
0x1be9   :  { %4201 = vst.msk [vmem:[%s6554_s12 + $0xa8] sm:$0xff] %vm72_vm1, %v3440_v25  ;;  %4920 = vmatmul.mubr.msk.f32.vlgmr.msra.gmra.mrb[88].mxu0 %vm72_vm1, %v3440_v25  ;;  %v520_v25 = vadd.f32 %v6361_v35, %v5655_v58 }
0x1bea   :  { %4922 = vmatprep.mubr.msk.f32.mxu0 %vm5340_vm0, %v6569_v24 }
0x1bec   :  { %v3442_v55 = vpop.permute.xlu0 %3441 }
0x1bed   :  { %4202 = vst.msk [vmem:[%s6554_s12 + $0xb0] sm:$0xff] %vm72_vm1, %v3442_v55  ;;  %4923 = vmatmul.mubr.msk.f32.gmra.mrb[90].mxu0 %vm72_vm1, %v3442_v55 }
0x1bee   :  { %4925 = vmatprep.mubr.msk.f32.mxu0 %vm5340_vm0, %v6569_v24 }
0x1bf0   :  { %v3444_v17 = vpop.permute.xlu1 %3443  ;;  %v3631_v50 = vpop.permute.xlu0 %3630 }
0x1bf1   :  { %4203 = vst.msk [vmem:[%s6554_s12 + $0xb8] sm:$0x3] %vm343_vm2, %v3444_v17  ;;  %4926 = vmatmul.mubr.msk.f32.gmra.mrb[92].mxu0 %vm72_vm1, %v3444_v17  ;;  %s5350_s12 = smov 7   ;;  %v3712_v55 = vsel %vm3711_vm4, %v520_v25, %v3631_v50 }
0x1bf2   :  { %4949 = vmatprep.mubr.msk.f32.mxu0 %vm5340_vm0, %v6569_v24 }
0x1bf4   :  { %v3655_v6 = vpop.permute.xlu0 %3654  ;;  %v3643_v15 = vpop.permute.xlu1 %3642 }
0x1bf5   :  { %v3716_v17 = vsel %vm3715_vm5, %v3712_v55, %v3643_v15 }
0x1bf8   :  { %v3633_v2 = vpop.permute.xlu0 %3632  ;;  %v3667_v49 = vpop.permute.xlu1 %3666 }
0x1bfc   :  { %v3645_v42 = vpop.permute.xlu0 %3644  ;;  %v3679_v53 = vpop.permute.xlu1 %3678 }
0x1c00   :  { %v3657_v31 = vpop.permute.xlu0 %3656  ;;  %v3691_v14 = vpop.permute.xlu1 %3690 }
0x1c04   :  { %v3669_v45 = vpop.permute.xlu0 %3668  ;;  %v3635_v51 = vpop.permute.xlu1 %3634 }
0x1c08   :  { %v3681_v16 = vpop.permute.xlu0 %3680  ;;  %v3647_v7 = vpop.permute.xlu1 %3646 }
0x1cbc   :  { %v3524_v37 = vpop.f32.mrb[88].mxu0 }
0x1cbd   :  { %v3525_v40 = vadd.f32 %v6081_v36, %v3524_v37  ;;  %v4921_v21 = vpop.f32.mrb[89].mxu0  ;;  %v3693_v37 = vpop.permute.xlu0 %3692 }
0x1cbe   :  { %v3739_v21 = vld [vmem:[%s6557_s1] sm:$0xff] }
0x1cbf   :  { %4933 = vmatmul.mubr.msk.f32.vlgmr.msra.gmra.mrb[92].mxu1 %vm443_vm3, %v3525_v40  ;;  %v3659_v40 = vpop.permute.xlu1 %3658  ;;  %vm3742_vm11 = vcmp.gt.f32.partialorder %v3739_v21, 0.5 }
0x1cc0   :  { %v3529_v12 = vpop.f32.mrb[90].mxu0  ;;  %4935 = vmatprep.mubr.msk.f32.mxu1 %vm5340_vm0, %v6569_v24 }
0x1cc1   :  { %v3530_v11 = vadd.f32 %v6081_v36, %v3529_v12  ;;  %v4924_v57 = vpop.f32.mrb[91].mxu0  ;;  %v525_v12 = vadd.f32 %v6361_v35, %v5657_v60 }
0x1cc3   :  { %4936 = vmatmul.mubr.msk.f32.gmra.mrb[94].mxu1 %vm443_vm3, %v3530_v11  ;;  %v3720_v11 = vsel %vm3719_vm6, %v3716_v17, %v3655_v6  ;;  %v3713_v57 = vsel %vm3711_vm4, %v525_v12, %v3633_v2 }
0x1cc4   :  { %v3534_v59 = vpop.f32.mrb[92].mxu0  ;;  %4938 = vmatprep.mubr.msk.f32.mxu1 %vm5340_vm0, %v6569_v24  ;;  %v3724_v58 = vsel %vm3723_vm7, %v3720_v11, %v3667_v49  ;;  %v3741_v49 = vld [vmem:[%s6557_s1 + $0x10] sm:$0x3] }
0x1cc5   :  { %v3535_v46 = vadd.f32 %v6081_v36, %v3534_v59  ;;  %v4927_v54 = vpop.f32.mrb[93].mxu0  ;;  %v3728_v59 = vsel %vm3727_vm8, %v3724_v58, %v3679_v53  ;;  %vm3744_vm14 = vcmp.gt.f32.partialorder %v3741_v49, 0.5 }
0x1cc6   :  { %v3717_v54 = vsel %vm3715_vm5, %v3713_v57, %v3645_v42 }
0x1cc7   :  { %4939 = vmatmul.mubr.msk.f32.gmra.mrb[96].mxu1 %vm443_vm3, %v3535_v46  ;;  %v530_v46 = vadd.f32 %v6361_v35, %v5659_v62 }
0x1d92   :  { %v3613_v5 = vpop.f32.mrb[92].mxu1 }
0x1d93   :  { %v3614_v8 = vadd.f32 %v6361_v35, %v3613_v5  ;;  %v4934_v32 = vpop.f32.mrb[93].mxu1  ;;  %v3732_v5 = vsel %vm3731_vm9, %v3728_v59, %v3691_v14 }
0x1d94   :  { %v3740_v32 = vld [vmem:[%s6557_s1 + $0x8] sm:$0xff] }
0x1d95   :  { %3702 = vrot.lane.b32.xlu1 %v3614_v8, %s5350_s12  ;;  %v3683_v8 = vpop.permute.xlu0 %3682  ;;  %vm3743_vm13 = vcmp.gt.f32.partialorder %v3740_v32, 0.5  ;;  %v5351_v32 = vmov 1  }
0x1d96   :  { %v3618_v30 = vpop.f32.mrb[94].mxu1  ;;  %5157 = vset.pattern.permute.xlu1 %v5351_v32 }
0x1d97   :  { %v3619_v63 = vadd.f32 %v6361_v35, %v3618_v30  ;;  %v4937_v43 = vpop.f32.mrb[95].mxu1  ;;  %v3721_v30 = vsel %vm3719_vm6, %v3717_v54, %v3657_v31 }
0x1d98   :  { %v3714_v43 = vsel %vm3711_vm4, %v530_v46, %v3635_v51 }
0x1d99   :  { %3670 = vrot.lane.b32.xlu1 %v2298_v26, %s5347_s19  ;;  %3704 = vrot.lane.b32.xlu0 %v3619_v63, %s5350_s12  ;;  %v3725_v63 = vsel %vm3723_vm7, %v3721_v30, %v3669_v45  ;;  %v5352_v30 = vmov 0  }
0x1d9a   :  { %v3623_v36 = vpop.f32.mrb[96].mxu1  ;;  %5156 = vset.pattern.permute.xlu0 %v5352_v30 }
0x1d9b   :  { %v3624_v47 = vadd.f32 %v6361_v35, %v3623_v36  ;;  %v4940_v23 = vpop.f32.mrb[97].mxu1  ;;  %v3729_v35 = vsel %vm3727_vm8, %v3725_v63, %v3681_v16  ;;  %v3718_v36 = vsel %vm3715_vm5, %v3714_v43, %v3647_v7 }
0x1d9c   :  { %v3722_v23 = vsel %vm3719_vm6, %v3718_v36, %v3659_v40 }
0x1d9d   :  { %3694 = vrot.lane.b32.xlu1 %v3182_v44, %s5349_s20  ;;  %3706 = vrot.lane.b32.xlu0 %v3624_v47, %s5350_s12  ;;  %v3733_v47 = vsel %vm3731_vm9, %v3729_v35, %v3693_v37  ;;  %v5353_v35 = vmov 2  }
0x1e07   :  { %v3703_v60 = vpop.permute.xlu1 %3702 }
0x1e08   :  { %v3736_v26 = vsel %vm3735_vm10, %v3732_v5, %v3703_v60 }
0x1e09   :  { %v3745_v62 = vsel %vm3742_vm11, -1e+09, %v3736_v26 }
0x1e0a   :  { %v3749_v44 = vsel %vm3748_vm12, %v3745_v62, -inf }
0x1e0b   :  { %3750 = vmax.xlane.f32.xlu1 %v3749_v44  ;;  %v3671_v50 = vpop.permute.xlu1 %3670  ;;  %v3705_v6 = vpop.permute.xlu0 %3704 }
0x1e0c   :  { %v3726_v15 = vsel %vm3723_vm7, %v3722_v23, %v3671_v50  ;;  %v3737_v2 = vsel %vm3735_vm10, %v3733_v47, %v3705_v6  ;;  %v5354_v47 = vmov 3   ;;  %v5355_v50 = vmov 4  }
0x1e0d   :  { %v3746_v42 = vsel %vm3743_vm13, -1e+09, %v3737_v2  ;;  %v3730_v31 = vsel %vm3727_vm8, %v3726_v15, %v3683_v8  ;;  %v5356_v6 = vmov 5   ;;  %v5357_v2 = vmov 6  }
0x1e0e   :  { %v3752_v53 = vsel %vm3748_vm12, %v3746_v42, -inf }
0x1e0f   :  { %v3695_v14 = vpop.permute.xlu1 %3694  ;;  %3753 = vmax.xlane.f32.xlu0 %v3752_v53  ;;  %v3707_v45 = vpop.permute.xlu0 %3706  ;;  %v3930_v53 = vld [vmem:[%s6558_s10] sm:$0xff] }
0x1e10   :  { %v3734_v51 = vsel %vm3731_vm9, %v3730_v31, %v3695_v14  ;;  %v3931_v31 = vld [vmem:[%s6558_s10 + $0x8] sm:$0xff]  ;;  %v3932_v14 = vld [vmem:[%s6558_s10 + $0x10] sm:$0xff] }
0x1e11   :  { %v3738_v16 = vsel %vm3735_vm10, %v3734_v51, %v3707_v45  ;;  %v5127_v45 = vpack.c.bf16 %v3931_v31, %v3930_v53  ;;  %v3933_v51 = vld [vmem:[%s6558_s10 + $0x18] sm:$0xff] }
0x1e12   :  { %v3747_v7 = vsel %vm3744_vm14, -1e+09, %v3738_v16  ;;  %v5130_v16 = vpack.c.bf16 %v3933_v51, %v3932_v14 }
0x1e13   :  { %v3756_v25 = vsel %vm3755_vm15, %v3747_v7, -inf  ;;  %5128 = vmatpush3.bf16.msra.mxu0 %v5127_v45 }
0x1e14   :  { %3757 = vmax.xlane.f32.xlu0 %v3756_v25  ;;  %5129 = vmatprep.subr.bf16.mxu0 %v6570_v0 }
0x1e17   :  { %5131 = vmatpush3.bf16.msra.mxu0 %v5130_v16 }
0x1e98   :  { %v3751_v55 = vpop.xlane.xlu1 %3750 }
0x1e99   :  { %v3759_v17 = vsub.f32 %v3745_v62, %v3751_v55 }
0x1e9b   :  { %v3762_v37 = vmul.f32 1.442695, %v3759_v17 }
0x1e9c   :  { %v3754_v40 = vpop.xlane.xlu0 %3753 }
0x1e9d   :  { %5324 = vpow2.f32 %v3762_v37  ;;  %v3760_v21 = vsub.f32 %v3746_v42, %v3754_v40  ;;  %v5358_v42 = vmov 7  }
0x1e9f   :  { %v3764_v12 = vmul.f32 1.442695, %v3760_v21 }
0x1ea1   :  { %5326 = vpow2.f32 %v3764_v12  ;;  %v3758_v11 = vpop.xlane.xlu0 %3757 }
0x1ea2   :  { %v3761_v58 = vsub.f32 %v3747_v7, %v3758_v11 }
0x1ea4   :  { %v3766_v57 = vmul.f32 1.442695, %v3761_v58 }
0x1ea6   :  { %5328 = vpow2.f32 %v3766_v57 }
0x1ea7   :  { %v5325_v59 = vpop.eup %5324 }
0x1ea8   :  { %v3768_v46 = vsel %vm3748_vm12, %v5325_v59, 0.0 }
0x1ea9   :  { %3769 = vadd.xlane.f32.xlu1 %v3768_v46 }
0x1eab   :  { %v5327_v54 = vpop.eup %5326 }
0x1eac   :  { %v3771_v5 = vsel %vm3748_vm12, %v5327_v54, 0.0 }
0x1ead   :  { %3772 = vadd.xlane.f32.xlu0 %v3771_v5 }
0x1eb0   :  { %v5329_v8 = vpop.eup %5328 }
0x1eb1   :  { %v3774_v60 = vsel %vm3755_vm15, %v5329_v8, 0.0 }
0x1eb2   :  { %3775 = vadd.xlane.f32.xlu1 %v3774_v60 }
0x1f36   :  { %v3770_v26 = vpop.xlane.xlu1 %3769 }
0x1f37   :  { %5330 = vrcp.f32 %v3770_v26 }
0x1f3a   :  { %v3773_v23 = vpop.xlane.xlu0 %3772 }
0x1f3f   :  { %v3776_v63 = vpop.xlane.xlu1 %3775 }
0x1f40   :  { %5332 = vrcp.f32 %v3776_v63 }
0x1f41   :  { %v5331_v43 = vpop.eup %5330  ;;  %5334 = vrcp.f32 %v3773_v23 }
0x1f42   :  { %v3780_v62 = vmul.f32 %v5331_v43, %v5325_v59 }
0x1f44   :  { %3785 = vperm.xlu0 %5156, %v3780_v62   ;;  %3805 = vperm.xlu1 %5157, %v3780_v62  }
0x1f48   :  { %5158 = vset.pattern.permute.xlu1 %v5353_v35  ;;  %5172 = vset.pattern.permute.xlu0 %v5351_v32 }
0x1f49   :  { %3823 = vperm.xlu1 %5158, %v3780_v62  }
0x1f4a   :  { %v5333_v36 = vpop.eup %5332 }
0x1f4b   :  { %v3782_v44 = vmul.f32 %v5333_v36, %v5329_v8  ;;  %v5335_v15 = vpop.eup %5334 }
0x1f4c   :  { %v3781_v49 = vmul.f32 %v5335_v15, %v5327_v54 }
0x1f4d   :  { %5159 = vset.pattern.permute.xlu1 %v5354_v47  ;;  %3813 = vperm.xlu0 %5172, %v3782_v44  }
0x1f4e   :  { %3841 = vperm.xlu1 %5159, %v3780_v62  }
0x1f51   :  { %5173 = vset.pattern.permute.xlu0 %v5353_v35 }
0x1f52   :  { %5160 = vset.pattern.permute.xlu1 %v5355_v50  ;;  %3831 = vperm.xlu0 %5173, %v3782_v44  }
0x1f53   :  { %3859 = vperm.xlu1 %5160, %v3780_v62  }
0x1f56   :  { %5174 = vset.pattern.permute.xlu0 %v5354_v47 }
0x1f57   :  { %5161 = vset.pattern.permute.xlu1 %v5356_v6  ;;  %3849 = vperm.xlu0 %5174, %v3782_v44  }
0x1f58   :  { %3877 = vperm.xlu1 %5161, %v3780_v62  }
0x1f5b   :  { %5175 = vset.pattern.permute.xlu0 %v5355_v50 }
0x1f5c   :  { %5162 = vset.pattern.permute.xlu1 %v5357_v2  ;;  %3867 = vperm.xlu0 %5175, %v3782_v44  }
0x1f5d   :  { %3895 = vperm.xlu1 %5162, %v3780_v62  }
0x1f60   :  { %5176 = vset.pattern.permute.xlu0 %v5358_v42 }
0x1f61   :  { %5163 = vset.pattern.permute.xlu1 %v5358_v42  ;;  %3917 = vperm.xlu0 %5176, %v3781_v49  }
0x1f62   :  { %3913 = vperm.xlu1 %5163, %v3780_v62  }
0x1f66   :  { %5164 = vset.pattern.permute.xlu1 %v5352_v30 }
0x1f67   :  { %3790 = vperm.xlu1 %5164, %v3781_v49  }
0x1f6b   :  { %5165 = vset.pattern.permute.xlu1 %v5351_v32 }
0x1f6c   :  { %3809 = vperm.xlu1 %5165, %v3781_v49  }
0x1f70   :  { %5166 = vset.pattern.permute.xlu1 %v5353_v35 }
0x1f71   :  { %3827 = vperm.xlu1 %5166, %v3781_v49  }
0x1f75   :  { %5167 = vset.pattern.permute.xlu1 %v5354_v47 }
0x1f76   :  { %3845 = vperm.xlu1 %5167, %v3781_v49  }
0x1f7a   :  { %5168 = vset.pattern.permute.xlu1 %v5355_v50 }
0x1f7b   :  { %3863 = vperm.xlu1 %5168, %v3781_v49  }
0x1f7f   :  { %5169 = vset.pattern.permute.xlu1 %v5356_v6 }
0x1f80   :  { %3881 = vperm.xlu1 %5169, %v3781_v49  }
0x1f84   :  { %5170 = vset.pattern.permute.xlu1 %v5357_v2 }
0x1f85   :  { %3899 = vperm.xlu1 %5170, %v3781_v49  }
0x1f89   :  { %5171 = vset.pattern.permute.xlu1 %v5352_v30 }
0x1f8a   :  { %3795 = vperm.xlu1 %5171, %v3782_v44  }
0x1f8e   :  { %5177 = vset.pattern.permute.xlu1 %v5356_v6 }
0x1f8f   :  { %3885 = vperm.xlu1 %5177, %v3782_v44  }
0x1f93   :  { %5178 = vset.pattern.permute.xlu1 %v5357_v2 }
0x1f94   :  { %3903 = vperm.xlu1 %5178, %v3782_v44  }
0x1f98   :  { %5179 = vset.pattern.permute.xlu1 %v5358_v42 }
0x1f99   :  { %3921 = vperm.xlu1 %5179, %v3782_v44  }
0x1fc3   :  { %v3806_v7 = vpop.permute.xlu1 %3805  ;;  %v3786_v17 = vpop.permute.xlu0 %3785 }
0x1fc4   :  { %v3816_v40 = vmul.f32 %v3806_v7, %v5677_v1  ;;  %v3798_v21 = vmul.f32 %v3786_v17, %v5559_v22  ;;  %v6571_v7 = vld [vmem:[#allocation3_spill] sm:$0xff] }
0x1fc6   :  { %v3819_v58 = vadd.f32 %v3816_v40, %v3798_v21 }
0x1fc8   :  { %v3824_v25 = vpop.permute.xlu1 %3823 }
0x1fc9   :  { %v3834_v12 = vmul.f32 %v3824_v25, %v5787_v61 }
0x1fcb   :  { %v3837_v59 = vadd.f32 %v3834_v12, %v3819_v58 }
0x1fcc   :  { %v3814_v63 = vpop.permute.xlu0 %3813 }
0x1fcd   :  { %v3842_v55 = vpop.permute.xlu1 %3841 }
0x1fce   :  { %v3852_v57 = vmul.f32 %v3842_v55, %v5897_v20 }
0x1fd0   :  { %v3855_v0 = vadd.f32 %v3852_v57, %v3837_v59 }
0x1fd2   :  { %v3860_v37 = vpop.permute.xlu1 %3859 }
0x1fd3   :  { %v3870_v46 = vmul.f32 %v3860_v37, %v6017_v56  ;;  %v3832_v56 = vpop.permute.xlu0 %3831  ;;  %v6572_v37 = vld [vmem:[#allocation4_spill] sm:$0xff] }
0x1fd5   :  { %v3873_v8 = vadd.f32 %v3870_v46, %v3855_v0 }
0x1fd7   :  { %v3878_v11 = vpop.permute.xlu1 %3877  ;;  %v3850_v35 = vpop.permute.xlu0 %3849 }
0x1fd8   :  { %v3888_v54 = vmul.f32 %v3878_v11, %v6132_v38  ;;  %v3854_v25 = vmul.f32 %v3850_v35, %v6571_v7 }
0x1fda   :  { %v3891_v32 = vadd.f32 %v3888_v54, %v3873_v8 }
0x1fdb   :  { %v3868_v23 = vpop.permute.xlu0 %3867 }
0x1fdc   :  { %v3896_v5 = vpop.permute.xlu1 %3895 }
0x1fdd   :  { %v3906_v60 = vmul.f32 %v3896_v5, %v6242_v27 }
0x1fdf   :  { %v3909_v30 = vadd.f32 %v3906_v60, %v3891_v32 }
0x1fe0   :  { %v3918_v53 = vpop.permute.xlu0 %3917 }
0x1fe1   :  { %v3914_v1 = vpop.permute.xlu1 %3913 }
0x1fe2   :  { %v3924_v22 = vmul.f32 %v3914_v1, %v6351_v4 }
0x1fe4   :  { %v3927_v61 = vadd.f32 %v3924_v22, %v3909_v30 }
0x1fe6   :  { %v3791_v26 = vpop.permute.xlu1 %3790  ;;  %3944 = vrot.lane.b32.xlu0 %v3927_v61, %s5343_s16 }
0x1fe7   :  { %v3799_v27 = vmul.f32 %v3791_v26, %v5565_v28  ;;  %v3925_v28 = vmul.f32 %v3918_v53, %v6356_v41 }
0x1feb   :  { %v3810_v20 = vpop.permute.xlu1 %3809 }
0x1fec   :  { %v3817_v38 = vmul.f32 %v3810_v20, %v5682_v10 }
0x1fee   :  { %v3820_v47 = vadd.f32 %v3817_v38, %v3799_v27 }
0x1ff0   :  { %v3828_v43 = vpop.permute.xlu1 %3827 }
0x1ff1   :  { %v3835_v44 = vmul.f32 %v3828_v43, %v5792_v9 }
0x1ff3   :  { %v3838_v50 = vadd.f32 %v3835_v44, %v3820_v47 }
0x1ff5   :  { %v3846_v62 = vpop.permute.xlu1 %3845 }
0x1ff6   :  { %v3853_v4 = vmul.f32 %v3846_v62, %v5902_v29  ;;  %v3818_v29 = vmul.f32 %v3814_v63, %v5687_v18 }
0x1ff8   :  { %v3856_v2 = vadd.f32 %v3853_v4, %v3838_v50 }
0x1ffa   :  { %v3864_v36 = vpop.permute.xlu1 %3863 }
0x1ffb   :  { %v3871_v6 = vmul.f32 %v3864_v36, %v6022_v3  ;;  %v3836_v3 = vmul.f32 %v3832_v56, %v5797_v19 }
0x1ffd   :  { %v3874_v42 = vadd.f32 %v3871_v6, %v3856_v2 }
0x1fff   :  { %v3882_v15 = vpop.permute.xlu1 %3881 }
0x2000   :  { %v3889_v49 = vmul.f32 %v3882_v15, %v6137_v52 }
0x2002   :  { %v3892_v10 = vadd.f32 %v3889_v49, %v3874_v42 }
0x2004   :  { %v3900_v31 = vpop.permute.xlu1 %3899 }
0x2005   :  { %v3907_v14 = vmul.f32 %v3900_v31, %v6247_v48  ;;  %v3872_v48 = vmul.f32 %v3868_v23, %v6572_v37 }
0x2007   :  { %v3910_v9 = vadd.f32 %v3907_v14, %v3892_v10 }
0x2009   :  { %v3928_v45 = vadd.f32 %v3925_v28, %v3910_v9  ;;  %v3796_v51 = vpop.permute.xlu1 %3795 }
0x200a   :  { %v3800_v16 = vmul.f32 %v3796_v51, %v5569_v34 }
0x200b   :  { %3946 = vrot.lane.b32.xlu1 %v3928_v45, %s5343_s16 }
0x200c   :  { %v3821_v52 = vadd.f32 %v3818_v29, %v3800_v16 }
0x200e   :  { %v3839_v55 = vadd.f32 %v3836_v3, %v3821_v52  ;;  %v3886_v17 = vpop.permute.xlu1 %3885 }
0x200f   :  { %v3890_v21 = vmul.f32 %v3886_v17, %v6142_v33 }
0x2010   :  { %v3857_v40 = vadd.f32 %v3854_v25, %v3839_v55 }
0x2012   :  { %v3875_v41 = vadd.f32 %v3872_v48, %v3857_v40 }
0x2013   :  { %v3904_v12 = vpop.permute.xlu1 %3903 }
0x2014   :  { %v3893_v11 = vadd.f32 %v3890_v21, %v3875_v41  ;;  %v3908_v18 = vmul.f32 %v3904_v12, %v6252_v13  ;;  %v4210_v13 = vld [vmem:[%s6559_s11] ss:$0 sm:$0xff] }
0x2016   :  { %v3911_v58 = vadd.f32 %v3908_v18, %v3893_v11 }
0x2018   :  { %v3922_v34 = vpop.permute.xlu1 %3921 }
0x2019   :  { %v3926_v57 = vmul.f32 %v3922_v34, %v6365_v39 }
0x201b   :  { %v3929_v19 = vadd.f32 %v3926_v57, %v3911_v58 }
0x201d   :  { %3948 = vrot.lane.b32.xlu0 %v3929_v19, %s5343_s16 }
0x2058   :  { %v3945_v59 = vpop.permute.xlu0 %3944 }
0x2059   :  { %4950 = vmatmul.mubr.msk.f32.vlgmr.msra.gmra.mrb[94].mxu0 %vm72_vm1, %v3945_v59 }
0x205a   :  { %4952 = vmatprep.mubr.msk.f32.mxu0 %vm5340_vm0, %v6569_v24 }
0x207d   :  { %v3947_v46 = vpop.permute.xlu1 %3946 }
0x207e   :  { %4953 = vmatmul.mubr.msk.f32.gmra.mrb[96].mxu0 %vm72_vm1, %v3947_v46 }
0x207f   :  { %4955 = vmatprep.mubr.msk.f32.mxu0 %vm5340_vm0, %v6569_v24 }
0x208f   :  { %v3949_v33 = vpop.permute.xlu0 %3948 }
0x2090   :  { %4956 = vmatmul.mubr.msk.f32.gmra.mrb[98].mxu0 %vm72_vm1, %v3949_v33 }
0x212c   :  { %v4022_v39 = vpop.f32.mrb[94].mxu0 }
0x212d   :  { %v4023_v0 = vadd.f32 %v4210_v13, %v4022_v39  ;;  %v4951_v54 = vpop.f32.mrb[95].mxu0 }
0x212f   :  { %4036 = vst.msk [vmem:[%s6560_s13] sm:$0xff] %vm72_vm1, %v4023_v0 }
0x2151   :  { %v4027_v5 = vpop.f32.mrb[96].mxu0 }
0x2152   :  { %v4028_v8 = vadd.f32 %v4210_v13, %v4027_v5  ;;  %v4954_v60 = vpop.f32.mrb[97].mxu0 }
0x2154   :  { %4037 = vst.msk [vmem:[%s6560_s13 + $0x8] sm:$0xff] %vm72_vm1, %v4028_v8 }
0x2163   :  { %v4032_v24 = vpop.f32.mrb[98].mxu0 }
0x2164   :  { %v4033_v32 = vadd.f32 %v4210_v13, %v4032_v24  ;;  %v4957_v1 = vpop.f32.mrb[99].mxu0 }
0x2166   :  { %4038 = vst.msk [vmem:[%s6560_s13 + $0x10] sm:$0x3] %vm343_vm2, %v4033_v32 }

// kernel: net_forward.8
= control target key start
LH: loop header
LB: loop body
LE: loop exit
PB: predicated region body
PF: predicated region fallthrough
CT: control target
= control target key end

     0   :  { %v765_v0 = vmov 0.0|0.0   ;;  %vm766_vm0 = vmmov 0   ;;  %v767_v6 = vmov 0.0   ;;  %vm37_vm1 = vcmask 261120   ;;  %s918_s3 = inlined_call_operand.vmem [shape: f32[64,32], index: 3, kind: input, shape index: {}]   ;;  %s919_s2 = inlined_call_operand.vmem [shape: f32[32,32], index: 2, kind: input, shape index: {}]   ;;  %s920_s0 = inlined_call_operand.vmem [shape: f32[2,8,32], index: 0, kind: input, shape index: {}]   ;;  %s921_s1 = inlined_call_operand.vmem [shape: f32[2,64], index: 1, kind: input, shape index: {}]   ;;  %s922_s4 = inlined_call_operand.vmem [shape: f32[32,32], index: 4, kind: input, shape index: {}]   ;;  %s923_s5 = inlined_call_operand.vmem [shape: f32[2,32], index: 5, kind: output, shape index: {}]  }
   0x1   :  { %712 = vmatprep.subr.bf16.mxu1 %v765_v0  ;;  %v24_v1 = vld [vmem:[%s918_s3] sm:$0xff]  ;;  %v25_v2 = vld [vmem:[%s918_s3 + $0x8] sm:$0xff]  ;;  %v26_v3 = vld [vmem:[%s918_s3 + $0x10] sm:$0xff]  ;;  %706 = vmatprep.subr.bf16.mxu0 %v765_v0  ;;  %vm112_vm2 = vcmask 523264   ;;  %v186_v23 = vlaneseq  ;;  %vm571_vm3 = vcmask 1040384   ;;  %vm573_vm4 = vcmask 254976  }
   0x2   :  { %v713_v4 = vpack.c.bf16 %v25_v2, %v24_v1  ;;  %v27_v5 = vld [vmem:[%s918_s3 + $0x18] sm:$0xff]  ;;  %651 = vmatprep.mubr.msk.f32.mxu1 %vm766_vm0, %v767_v6  ;;  %632 = vmatprep.mubr.msk.f32.mxu0 %vm766_vm0, %v767_v6  ;;  %v20_v7 = vld [vmem:[%s919_s2] sm:$0xff]  ;;  %v21_v8 = vld [vmem:[%s919_s2 + $0x8] sm:$0xff] }
   0x3   :  { %v716_v9 = vpack.c.bf16 %v27_v5, %v26_v3  ;;  %v822_v10 = vpack.c.bf16 %v21_v8, %v20_v7  ;;  %v22_v11 = vld [vmem:[%s919_s2 + $0x10] sm:$0xff]  ;;  %v23_v12 = vld [vmem:[%s919_s2 + $0x18] sm:$0xff]  ;;  %v28_v13 = vld [vmem:[%s918_s3 + $0x20] sm:$0xff]  ;;  %v872_v24 = vshrl.u32 %v186_v23, 7 }
   0x4   :  { %714 = vmatpush3.bf16.msra.mxu1 %v713_v4  ;;  %v29_v14 = vld [vmem:[%s918_s3 + $0x28] sm:$0xff]  ;;  %v838_v15 = vpack.c.bf16 %v23_v12, %v22_v11  ;;  %v30_v17 = vld [vmem:[%s918_s3 + $0x30] sm:$0xff]  ;;  %v31_v18 = vld [vmem:[%s918_s3 + $0x38] sm:$0xff] }
   0x5   :  { %715 = vmatprep.subr.bf16.mxu1 %v765_v0  ;;  %708 = vmatpush3.bf16.msra.mxu0 %v822_v10  ;;  %v719_v16 = vpack.c.bf16 %v29_v14, %v28_v13  ;;  %v852_v19 = vld [vmem:[%s920_s0] sm:$0xff]  ;;  %v722_v20 = vpack.c.bf16 %v31_v18, %v30_v17  ;;  %v188_v27 = vsub.s32 0, %v872_v24  ;;  %v33_v34 = vld [vmem:[%s922_s4 + $0x8] sm:$0xff]  ;;  %v34_v35 = vld [vmem:[%s922_s4 + $0x10] sm:$0xff] }
   0x6   :  { %709 = vmatprep.subr.bf16.mxu0 %v765_v0  ;;  %v111_v21 = vld [vmem:[%s921_s1] sm:$0x1]  ;;  %v378_v22 = vld [vmem:[%s921_s1 + $0x1] sm:$0x1]  ;;  %v35_v37 = vld [vmem:[%s922_s4 + $0x18] sm:$0xff]  ;;  %v293_v7 = vsel %vm37_vm1, %v852_v19, 0.0 }
   0x7   :  { %v32_v33 = vld [vmem:[%s922_s4] sm:$0xff]  ;;  %v728_v38 = vpack.c.bf16 %v35_v37, %v34_v35  ;;  %v582_v3 = vld [vmem:[%s920_s0 + $0x8] sm:$0xff]  ;;  %v294_v8 = vrot.slane %v293_v7, 4 }
   0x8   :  { %717 = vmatpush3.bf16.msra.mxu1 %v716_v9  ;;  %v725_v36 = vpack.c.bf16 %v33_v34, %v32_v33 }
   0x9   :  { %718 = vmatprep.subr.bf16.mxu1 %v765_v0  ;;  %711 = vmatpush3.bf16.msra.mxu0 %v838_v15 }
   0xa   :  { %724 = vmatprep.subr.bf16.mxu0 %v765_v0 }
   0xc   :  { %720 = vmatpush3.bf16.msra.mxu1 %v719_v16  ;;  %633 = vmatmul.mubr.msk.f32.vlgmr.msra.gmra.mrb[0].mxu0 %vm37_vm1, %v852_v19 }
   0xd   :  { %721 = vmatprep.subr.bf16.mxu1 %v765_v0  ;;  %662 = vmatprep.mubr.msk.f32.mxu0 %vm766_vm0, %v767_v6 }
   0xe   :  { %726 = vmatpush3.bf16.msra.mxu0 %v725_v36 }
   0xf   :  { %727 = vmatprep.subr.bf16.mxu0 %v765_v0 }
  0x10   :  { %723 = vmatpush3.bf16.msra.mxu1 %v722_v20 }
  0x11   :  { %736 = vmatprep.subr.bf16.mxu1 %v765_v0 }
  0x12   :  { %729 = vmatpush3.bf16.msra.mxu0 %v728_v38 }
  0x13   :  { %652 = vmatmul.mubr.msk.f32.vlgmr.msra.gmra.mrb[0].mxu1 %vm112_vm2, %v111_v21  ;;  %730 = vmatprep.subr.bf16.mxu0 %v765_v0 }
  0x14   :  { %738 = vmatpush3.bf16.msra.mxu1 %v713_v4  ;;  %692 = vmatprep.mubr.msk.f32.mxu1 %vm766_vm0, %v767_v6 }
  0x15   :  { %739 = vmatprep.subr.bf16.mxu1 %v765_v0 }
  0x18   :  { %741 = vmatpush3.bf16.msra.mxu1 %v716_v9  ;;  %v295_v9 = vadd.f32 %v294_v8, %v293_v7 }
  0x19   :  { %742 = vmatprep.subr.bf16.mxu1 %v765_v0 }
  0x1c   :  { %744 = vmatpush3.bf16.msra.mxu1 %v719_v16 }
  0x1d   :  { %745 = vmatprep.subr.bf16.mxu1 %v765_v0 }
  0x20   :  { %747 = vmatpush3.bf16.msra.mxu1 %v722_v20 }
  0x23   :  { %693 = vmatmul.mubr.msk.f32.vlgmr.msra.gmra.mrb[2].mxu1 %vm112_vm2, %v378_v22 }
  0xdf   :  { %v107_v25 = vpop.f32.mrb[0].mxu0 }
  0xe0   :  { %v634_v26 = vpop.f32.mrb[1].mxu0 }
  0xe6   :  { %v182_v28 = vpop.f32.mrb[0].mxu1 }
  0xe7   :  { %v189_v29 = vrot.slane %v182_v28, %v188_v27  ;;  %v653_v30 = vpop.f32.mrb[1].mxu1 }
  0xe9   :  { %v190_v31 = vmul.f32 %v189_v29, %v107_v25 }
  0xeb   :  { %v191_v32 = vsel %vm37_vm1, %v190_v31, 0.0 }
  0xec   :  { %192 = vadd.xlane.f32.xlu0 %v191_v32 }
  0xf6   :  { %v448_v4 = vpop.f32.mrb[2].mxu1 }
  0xf7   :  { %v694_v5 = vpop.f32.mrb[3].mxu1 }
 0x179   :  { %v193_v39 = vpop.xlane.xlu0 %192 }
 0x17a   :  { %v194_v40 = vrot.slane %v193_v39, 4 }
 0x17c   :  { %v195_v41 = vmax.f32 %v193_v39, %v194_v40 }
 0x17e   :  { %v196_v42 = vrot.slane %v195_v41, 2 }
 0x180   :  { %v197_v43 = vmax.f32 %v195_v41, %v196_v42 }
 0x182   :  { %v198_v44 = vrot.slane %v197_v43, 1 }
 0x184   :  { %v199_v45 = vmax.f32 %v197_v43, %v198_v44 }
 0x186   :  { %v200_v46 = vsub.f32 %v193_v39, %v199_v45 }
 0x188   :  { %v201_v47 = vmul.f32 1.442695, %v200_v46 }
 0x18a   :  { %757 = vpow2.f32 %v201_v47 }
 0x194   :  { %v758_v48 = vpop.eup %757 }
 0x195   :  { %v203_v49 = vrot.slane %v758_v48, 4 }
 0x197   :  { %v204_v50 = vadd.f32 %v758_v48, %v203_v49 }
 0x199   :  { %v205_v51 = vrot.slane %v204_v50, 2 }
 0x19b   :  { %v206_v52 = vadd.f32 %v205_v51, %v204_v50 }
 0x19d   :  { %v207_v53 = vrot.slane %v206_v52, 1 }
 0x19f   :  { %v208_v54 = vadd.f32 %v207_v53, %v206_v52 }
 0x1a1   :  { %759 = vrcp.f32 %v208_v54 }
 0x1ab   :  { %v760_v55 = vpop.eup %759 }
 0x1ac   :  { %v210_v56 = vmul.f32 %v760_v55, %v758_v48  ;;  %v559_v48 = vsel %vm37_vm1, %v582_v3, 0.0 }
 0x1ad   :  { %v560_v49 = vrot.slane %v559_v48, 4 }
 0x1ae   :  { %v211_v57 = vmul.f32 %v210_v56, %v107_v25 }
 0x1af   :  { %v561_v50 = vadd.f32 %v560_v49, %v559_v48 }
 0x1b0   :  { %v212_v58 = vsel %vm37_vm1, %v211_v57, 0.0 }
 0x1b1   :  { %v213_v59 = vrot.slane %v212_v58, 4  ;;  %v562_v51 = vrot.slane %v561_v50, 2 }
 0x1b3   :  { %v214_v60 = vadd.f32 %v213_v59, %v212_v58  ;;  %v563_v52 = vadd.f32 %v562_v51, %v561_v50 }
 0x1b5   :  { %v215_v61 = vrot.slane %v214_v60, 2  ;;  %v564_v53 = vrot.slane %v563_v52, 1 }
 0x1b7   :  { %v216_v62 = vadd.f32 %v215_v61, %v214_v60  ;;  %v565_v54 = vadd.f32 %v564_v53, %v563_v52 }
 0x1b9   :  { %v217_v63 = vrot.slane %v216_v62, 1  ;;  %v566_v55 = vmul.f32 0.125, %v565_v54 }
 0x1bb   :  { %v218_v1 = vadd.f32 %v217_v63, %v216_v62 }
 0x1bd   :  { %v219_v2 = vmul.f32 %v218_v1, %v182_v28 }
 0x1bf   :  { %663 = vmatmul.mubr.msk.f32.vlgmr.msra.gmra.mrb[2].mxu0 %vm37_vm1, %v219_v2 }
 0x1c0   :  { %732 = vmatpush3.bf16.msra.mxu0 %v822_v10  ;;  %673 = vmatprep.mubr.msk.f32.mxu0 %vm766_vm0, %v767_v6  ;;  %v296_v10 = vrot.slane %v295_v9, 2 }
 0x1c1   :  { %733 = vmatprep.subr.bf16.mxu0 %v765_v0 }
 0x1c2   :  { %v297_v11 = vadd.f32 %v296_v10, %v295_v9 }
 0x1c4   :  { %735 = vmatpush3.bf16.msra.mxu0 %v838_v15  ;;  %v298_v12 = vrot.slane %v297_v11, 1 }
 0x1c5   :  { %748 = vmatprep.subr.bf16.mxu0 %v765_v0 }
 0x1c6   :  { %v299_v13 = vadd.f32 %v298_v12, %v297_v11 }
 0x1c7   :  { %674 = vmatmul.mubr.msk.f32.vlgmr.msra.gmra.mrb[4].mxu0 %vm37_vm1, %v582_v3 }
 0x1c8   :  { %750 = vmatpush3.bf16.msra.mxu0 %v725_v36  ;;  %703 = vmatprep.mubr.msk.f32.mxu0 %vm766_vm0, %v767_v6  ;;  %v301_v14 = vmul.f32 0.125, %v299_v13  ;;  %v455_v6 = vrot.slane %v448_v4, %v188_v27 }
 0x1c9   :  { %751 = vmatprep.subr.bf16.mxu0 %v765_v0 }
 0x1cc   :  { %753 = vmatpush3.bf16.msra.mxu0 %v728_v38 }
 0x292   :  { %v289_v15 = vpop.f32.mrb[2].mxu0 }
 0x293   :  { %v302_v16 = vadd.f32 %v301_v14, %v289_v15  ;;  %v664_v17 = vpop.f32.mrb[3].mxu0 }
 0x29a   :  { %v374_v0 = vpop.f32.mrb[4].mxu0 }
 0x29b   :  { %v456_v18 = vmul.f32 %v455_v6, %v374_v0  ;;  %v675_v20 = vpop.f32.mrb[5].mxu0 }
 0x29d   :  { %v457_v21 = vsel %vm37_vm1, %v456_v18, 0.0 }
 0x29e   :  { %458 = vadd.xlane.f32.xlu0 %v457_v21 }
 0x32b   :  { %v459_v19 = vpop.xlane.xlu0 %458 }
 0x32c   :  { %v460_v22 = vrot.slane %v459_v19, 4 }
 0x32e   :  { %v461_v23 = vmax.f32 %v459_v19, %v460_v22 }
 0x330   :  { %v462_v25 = vrot.slane %v461_v23, 2 }
 0x332   :  { %v463_v26 = vmax.f32 %v461_v23, %v462_v25 }
 0x334   :  { %v464_v28 = vrot.slane %v463_v26, 1 }
 0x336   :  { %v465_v29 = vmax.f32 %v463_v26, %v464_v28 }
 0x338   :  { %v466_v30 = vsub.f32 %v459_v19, %v465_v29 }
 0x33a   :  { %v467_v31 = vmul.f32 1.442695, %v466_v30 }
 0x33c   :  { %761 = vpow2.f32 %v467_v31 }
 0x346   :  { %v762_v32 = vpop.eup %761 }
 0x347   :  { %v469_v33 = vrot.slane %v762_v32, 4 }
 0x349   :  { %v470_v24 = vadd.f32 %v762_v32, %v469_v33 }
 0x34b   :  { %v471_v27 = vrot.slane %v470_v24, 2 }
 0x34d   :  { %v472_v34 = vadd.f32 %v471_v27, %v470_v24 }
 0x34f   :  { %v473_v35 = vrot.slane %v472_v34, 1 }
 0x351   :  { %v474_v36 = vadd.f32 %v473_v35, %v472_v34 }
 0x353   :  { %763 = vrcp.f32 %v474_v36 }
 0x35d   :  { %v764_v37 = vpop.eup %763 }
 0x35e   :  { %v476_v38 = vmul.f32 %v764_v37, %v762_v32 }
 0x360   :  { %v477_v39 = vmul.f32 %v476_v38, %v374_v0 }
 0x362   :  { %v478_v40 = vsel %vm37_vm1, %v477_v39, 0.0 }
 0x363   :  { %v479_v41 = vrot.slane %v478_v40, 4 }
 0x365   :  { %v480_v42 = vadd.f32 %v479_v41, %v478_v40 }
 0x367   :  { %v481_v43 = vrot.slane %v480_v42, 2 }
 0x369   :  { %v482_v44 = vadd.f32 %v481_v43, %v480_v42 }
 0x36b   :  { %v483_v45 = vrot.slane %v482_v44, 1 }
 0x36d   :  { %v484_v46 = vadd.f32 %v483_v45, %v482_v44 }
 0x36f   :  { %v485_v47 = vmul.f32 %v484_v46, %v448_v4 }
 0x371   :  { %704 = vmatmul.mubr.msk.f32.vlgmr.msra.gmra.mrb[6].mxu0 %vm37_vm1, %v485_v47 }
 0x444   :  { %v555_v56 = vpop.f32.mrb[6].mxu0 }
 0x445   :  { %v567_v57 = vadd.f32 %v566_v55, %v555_v56  ;;  %v705_v58 = vpop.f32.mrb[7].mxu0 }
 0x447   :  { %v569_v59 = vrot.slane %v567_v57, 7 }
 0x449   :  { %v572_v60 = vsel %vm571_vm3, %v302_v16, %v569_v59 }
 0x44a   :  { %574 = vst.msk [vmem:[%s923_s5] sm:$0x3] %vm573_vm4, %v572_v60 }

// kernel: net_forward.6
= control target key start
LH: loop header
LB: loop body
LE: loop exit
PB: predicated region body
PF: predicated region fallthrough
CT: control target
= control target key end

     0   :  { %v364_v0 = vmov 0.0|0.0   ;;  %vm59_vm0 = vcmask 523264   ;;  %vm365_vm1 = vmmov 0   ;;  %v366_v57 = vmov 0.0   ;;  %s551_s1 = inlined_call_operand.vmem [shape: f32[192,64], index: 1, kind: input, shape index: {}]   ;;  %s552_s0 = inlined_call_operand.vmem [shape: f32[32,192], index: 0, kind: input, shape index: {}]   ;;  %s553_s3 = inlined_call_operand.vmem [shape: f32[64,64], index: 3, kind: input, shape index: {}]   ;;  %s554_s2 = inlined_call_operand.vmem [shape: f32[1,64], index: 2, kind: input, shape index: {}, may-alias: {2,4}]   ;;  %s555_s4 = inlined_call_operand.vmem [shape: f32[1,64], index: 4, kind: input, shape index: {}, may-alias: {2,4}]   ;;  %s556_s5 = inlined_call_operand.vmem [shape: f32[2,64], index: 5, kind: output, shape index: {}]  }
   0x1   :  { %313 = vmatprep.subr.bf16.mxu0 %v364_v0  ;;  %v28_v1 = vld [vmem:[%s551_s1] sm:$0xff]  ;;  %v29_v2 = vld [vmem:[%s551_s1 + $0x8] sm:$0xff]  ;;  %v30_v3 = vld [vmem:[%s551_s1 + $0x10] sm:$0xff]  ;;  %349 = vmatprep.subr.bf16.mxu1 %v364_v0  ;;  %vm182_vm2 = vcmask 1040384   ;;  %vm272_vm3 = vcmask 517120  }
   0x2   :  { %v314_v4 = vpack.c.bf16 %v29_v2, %v28_v1  ;;  %v31_v5 = vld [vmem:[%s551_s1 + $0x18] sm:$0xff]  ;;  %v32_v7 = vld [vmem:[%s551_s1 + $0x20] sm:$0xff]  ;;  %v33_v8 = vld [vmem:[%s551_s1 + $0x28] sm:$0xff]  ;;  %310 = vmatprep.mubr.msk.f32.mxu1 %vm365_vm1, %v366_v57 }
   0x3   :  { %v317_v6 = vpack.c.bf16 %v31_v5, %v30_v3  ;;  %v320_v9 = vpack.c.bf16 %v33_v8, %v32_v7  ;;  %v34_v10 = vld [vmem:[%s551_s1 + $0x30] sm:$0xff]  ;;  %v35_v11 = vld [vmem:[%s551_s1 + $0x38] sm:$0xff]  ;;  %v21_v12 = vld [vmem:[%s552_s0 + $0x8] sm:$0xff] }
   0x4   :  { %315 = vmatpush1.bf16.msra.mxu0 %v314_v4  ;;  %279 = vmatprep.mubr.msk.f32.mxu0 %vm59_vm0, %v21_v12  ;;  %v323_v13 = vpack.c.bf16 %v35_v11, %v34_v10  ;;  %v36_v14 = vld [vmem:[%s551_s1 + $0x40] sm:$0xff]  ;;  %v37_v15 = vld [vmem:[%s551_s1 + $0x48] sm:$0xff]  ;;  %v38_v17 = vld [vmem:[%s551_s1 + $0x50] sm:$0xff] }
   0x5   :  { %316 = vmatprep.subr.bf16.mxu0 %v364_v0  ;;  %v326_v16 = vpack.c.bf16 %v37_v15, %v36_v14  ;;  %v39_v18 = vld [vmem:[%s551_s1 + $0x58] sm:$0xff]  ;;  %v40_v20 = vld [vmem:[%s551_s1 + $0x60] sm:$0xff]  ;;  %v41_v21 = vld [vmem:[%s551_s1 + $0x68] sm:$0xff] }
   0x6   :  { %v329_v19 = vpack.c.bf16 %v39_v18, %v38_v17  ;;  %v332_v22 = vpack.c.bf16 %v41_v21, %v40_v20  ;;  %v42_v23 = vld [vmem:[%s551_s1 + $0x70] sm:$0xff]  ;;  %v43_v24 = vld [vmem:[%s551_s1 + $0x78] sm:$0xff]  ;;  %v44_v26 = vld [vmem:[%s551_s1 + $0x80] sm:$0xff] }
   0x7   :  { %v335_v25 = vpack.c.bf16 %v43_v24, %v42_v23  ;;  %v45_v27 = vld [vmem:[%s551_s1 + $0x88] sm:$0xff]  ;;  %v46_v29 = vld [vmem:[%s551_s1 + $0x90] sm:$0xff]  ;;  %v47_v30 = vld [vmem:[%s551_s1 + $0x98] sm:$0xff] }
   0x8   :  { %318 = vmatpush1.bf16.msra.mxu0 %v317_v6  ;;  %v338_v28 = vpack.c.bf16 %v45_v27, %v44_v26  ;;  %v341_v31 = vpack.c.bf16 %v47_v30, %v46_v29  ;;  %v48_v32 = vld [vmem:[%s551_s1 + $0xa0] sm:$0xff]  ;;  %v49_v33 = vld [vmem:[%s551_s1 + $0xa8] sm:$0xff]  ;;  %v50_v35 = vld [vmem:[%s551_s1 + $0xb0] sm:$0xff] }
   0x9   :  { %319 = vmatprep.subr.bf16.mxu0 %v364_v0  ;;  %v344_v34 = vpack.c.bf16 %v49_v33, %v48_v32  ;;  %v51_v36 = vld [vmem:[%s551_s1 + $0xb8] sm:$0xff]  ;;  %v20_v38 = vld [vmem:[%s552_s0] sm:$0xff]  ;;  %v22_v40 = vld [vmem:[%s552_s0 + $0x10] sm:$0xff] }
   0xa   :  { %v347_v37 = vpack.c.bf16 %v51_v36, %v50_v35  ;;  %v23_v39 = vld [vmem:[%s552_s0 + $0x18] sm:$0xff]  ;;  %v25_v41 = vld [vmem:[%s552_s0 + $0x28] sm:$0xff]  ;;  %v24_v42 = vld [vmem:[%s552_s0 + $0x20] sm:$0xff] }
   0xb   :  { %v27_v43 = vld [vmem:[%s552_s0 + $0x38] sm:$0xff]  ;;  %v26_v44 = vld [vmem:[%s552_s0 + $0x30] sm:$0xff]  ;;  %v184_v45 = vld [vmem:[%s553_s3] sm:$0xff] }
   0xc   :  { %321 = vmatpush1.bf16.msra.mxu0 %v320_v9  ;;  %v185_v46 = vld [vmem:[%s553_s3 + $0x8] sm:$0xff]  ;;  %v186_v48 = vld [vmem:[%s553_s3 + $0x10] sm:$0xff]  ;;  %v187_v49 = vld [vmem:[%s553_s3 + $0x18] sm:$0xff] }
   0xd   :  { %322 = vmatprep.subr.bf16.mxu0 %v364_v0  ;;  %v350_v47 = vpack.c.bf16 %v185_v46, %v184_v45  ;;  %v353_v50 = vpack.c.bf16 %v187_v49, %v186_v48  ;;  %v188_v51 = vld [vmem:[%s553_s3 + $0x20] sm:$0xff]  ;;  %v189_v52 = vld [vmem:[%s553_s3 + $0x28] sm:$0xff]  ;;  %v190_v54 = vld [vmem:[%s553_s3 + $0x30] sm:$0xff] }
   0xe   :  { %v356_v53 = vpack.c.bf16 %v189_v52, %v188_v51  ;;  %v191_v55 = vld [vmem:[%s553_s3 + $0x38] sm:$0xff]  ;;  %v278_v58 = vld [vmem:[%s554_s2] ss:$0 sm:$0xff] }
   0xf   :  { %351 = vmatpush3.bf16.msra.mxu1 %v350_v47  ;;  %v359_v56 = vpack.c.bf16 %v191_v55, %v190_v54  ;;  %v283_v32 = vld [vmem:[%s555_s4] ss:$0 sm:$0xff] }
  0x10   :  { %324 = vmatpush1.bf16.msra.mxu0 %v323_v13  ;;  %352 = vmatprep.subr.bf16.mxu1 %v364_v0 }
  0x11   :  { %325 = vmatprep.subr.bf16.mxu0 %v364_v0 }
  0x13   :  { %354 = vmatpush3.bf16.msra.mxu1 %v353_v50 }
  0x14   :  { %327 = vmatpush1.bf16.msra.mxu0 %v326_v16  ;;  %355 = vmatprep.subr.bf16.mxu1 %v364_v0 }
  0x15   :  { %328 = vmatprep.subr.bf16.mxu0 %v364_v0 }
  0x17   :  { %357 = vmatpush3.bf16.msra.mxu1 %v356_v53 }
  0x18   :  { %330 = vmatpush1.bf16.msra.mxu0 %v329_v19  ;;  %358 = vmatprep.subr.bf16.mxu1 %v364_v0 }
  0x19   :  { %331 = vmatprep.subr.bf16.mxu0 %v364_v0 }
  0x1b   :  { %360 = vmatpush3.bf16.msra.mxu1 %v359_v56 }
  0x1c   :  { %333 = vmatpush1.bf16.msra.mxu0 %v332_v22 }
  0x1d   :  { %334 = vmatprep.subr.bf16.mxu0 %v364_v0 }
  0x20   :  { %336 = vmatpush1.bf16.msra.mxu0 %v335_v25 }
  0x21   :  { %337 = vmatprep.subr.bf16.mxu0 %v364_v0 }
  0x24   :  { %339 = vmatpush1.bf16.msra.mxu0 %v338_v28 }
  0x25   :  { %340 = vmatprep.subr.bf16.mxu0 %v364_v0 }
  0x28   :  { %342 = vmatpush1.bf16.msra.mxu0 %v341_v31 }
  0x29   :  { %343 = vmatprep.subr.bf16.mxu0 %v364_v0 }
  0x2c   :  { %345 = vmatpush1.bf16.msra.mxu0 %v344_v34 }
  0x2d   :  { %346 = vmatprep.subr.bf16.mxu0 %v364_v0 }
  0x30   :  { %348 = vmatpush1.bf16.msra.mxu0 %v347_v37 }
  0x33   :  { %137 = vmatmul.mubr.f32.vlgmr.msra.gmra.mrb[0].mxu0 %v20_v38 }
  0x34   :  { %280 = vmatprep.mubr.msk.f32.mxu0 %vm59_vm0, %v23_v39 }
  0x37   :  { %142 = vmatmul.mubr.f32.gmra.mrb[2].mxu0 %v22_v40 }
  0x38   :  { %281 = vmatprep.mubr.msk.f32.mxu0 %vm59_vm0, %v25_v41 }
  0x3b   :  { %147 = vmatmul.mubr.f32.gmra.mrb[4].mxu0 %v24_v42 }
  0x3c   :  { %282 = vmatprep.mubr.msk.f32.mxu0 %vm59_vm0, %v27_v43 }
  0x3f   :  { %152 = vmatmul.mubr.f32.gmra.mrb[6].mxu0 %v26_v44 }
 0x106   :  { %v138_v59 = vpop.f32.mrb[0].mxu0 }
 0x107   :  { %v139_v60 = vadd.f32 %v278_v58, %v138_v59  ;;  %v140_v61 = vpop.f32.mrb[1].mxu0 }
 0x109   :  { %v157_v63 = vmax.f32 %v139_v60, 0.0 }
 0x10a   :  { %v143_v62 = vpop.f32.mrb[2].mxu0 }
 0x10b   :  { %v144_v1 = vadd.f32 %v278_v58, %v143_v62  ;;  %v145_v2 = vpop.f32.mrb[3].mxu0  ;;  %v161_v0 = vsel %vm59_vm0, %v157_v63, 0.0 }
 0x10d   :  { %v158_v3 = vmax.f32 %v144_v1, 0.0 }
 0x10e   :  { %v148_v4 = vpop.f32.mrb[4].mxu0 }
 0x10f   :  { %v162_v5 = vsel %vm59_vm0, %v158_v3, 0.0  ;;  %v149_v6 = vadd.f32 %v278_v58, %v148_v4  ;;  %v150_v7 = vpop.f32.mrb[5].mxu0 }
 0x110   :  { %v163_v8 = vadd.f32 %v162_v5, %v161_v0 }
 0x111   :  { %v159_v11 = vmax.f32 %v149_v6, 0.0 }
 0x112   :  { %v164_v9 = vrot.slane %v163_v8, 4  ;;  %v153_v10 = vpop.f32.mrb[6].mxu0 }
 0x113   :  { %v154_v12 = vadd.f32 %v278_v58, %v153_v10  ;;  %v155_v13 = vpop.f32.mrb[7].mxu0  ;;  %v172_v17 = vsel %vm59_vm0, %v159_v11, 0.0 }
 0x114   :  { %v165_v14 = vadd.f32 %v164_v9, %v163_v8 }
 0x115   :  { %v160_v15 = vmax.f32 %v154_v12, 0.0 }
 0x116   :  { %v166_v16 = vrot.slane %v165_v14, 2 }
 0x117   :  { %v173_v18 = vsel %vm59_vm0, %v160_v15, 0.0 }
 0x118   :  { %v174_v19 = vadd.f32 %v173_v18, %v172_v17  ;;  %v167_v20 = vadd.f32 %v166_v16, %v165_v14 }
 0x11a   :  { %v175_v21 = vrot.slane %v174_v19, 4  ;;  %v168_v23 = vrot.slane %v167_v20, 1 }
 0x11c   :  { %v176_v22 = vadd.f32 %v175_v21, %v174_v19  ;;  %v169_v27 = vadd.f32 %v168_v23, %v167_v20 }
 0x11e   :  { %v177_v24 = vrot.slane %v176_v22, 2  ;;  %v171_v29 = vmul.f32 0.0625, %v169_v27 }
 0x120   :  { %v178_v25 = vadd.f32 %v177_v24, %v176_v22 }
 0x122   :  { %v179_v26 = vrot.slane %v178_v25, 1 }
 0x124   :  { %v180_v28 = vadd.f32 %v179_v26, %v178_v25 }
 0x126   :  { %v181_v30 = vmul.f32 0.0625, %v180_v28 }
 0x128   :  { %v183_v31 = vsel %vm182_vm2, %v171_v29, %v181_v30 }
 0x129   :  { %311 = vmatmul.mubr.msk.f32.vlgmr.msra.gmra.mrb[0].mxu1 %vm59_vm0, %v183_v31 }
 0x1fc   :  { %v268_v33 = vpop.f32.mrb[0].mxu1 }
 0x1fd   :  { %v269_v34 = vadd.f32 %v283_v32, %v268_v33  ;;  %v312_v35 = vpop.f32.mrb[1].mxu1 }
 0x1ff   :  { %273 = vst.msk [vmem:[%s556_s5] sm:$0x3] %vm272_vm3, %v269_v34 }

// kernel: net_forward.9
= control target key start
LH: loop header
LB: loop body
LE: loop exit
PB: predicated region body
PF: predicated region fallthrough
CT: control target
= control target key end

     0   :  { %v421_v3 = vmov 0.0|0.0   ;;  %vm422_vm0 = vmmov 0   ;;  %v423_v4 = vmov 0.0   ;;  %vm68_vm1 = vcmask 261120   ;;  %s602_s1 = inlined_call_operand.vmem [shape: f32[288,32], index: 1, kind: input, shape index: {}]   ;;  %s603_s0 = inlined_call_operand.vmem [shape: f32[8,288], index: 0, kind: input, shape index: {}]   ;;  %s604_s3 = inlined_call_operand.vmem [shape: f32[32,1], index: 3, kind: input, shape index: {}]   ;;  %s605_s4 = inlined_call_operand.<no memory space> [shape: f32[1,1], index: 4, kind: input, shape index: {}]   ;;  %s606_s2 = inlined_call_operand.vmem [shape: f32[1,32], index: 2, kind: input, shape index: {}]   ;;  %s607_s5 = inlined_call_operand.vmem [shape: f32[8,1], index: 5, kind: output, shape index: {}]  }
   0x1   :  { %v41_v0 = vld [vmem:[%s602_s1 + $0x80] sm:$0xff]  ;;  %v42_v1 = vld [vmem:[%s602_s1 + $0x88] sm:$0xff]  ;;  %406 = vmatprep.subr.bf16.mxu1 %v421_v3  ;;  %360 = vmatprep.mubr.msk.f32.mxu1 %vm422_vm0, %v423_v4  ;;  %v43_v7 = vld [vmem:[%s602_s1 + $0x90] sm:$0xff]  ;;  %vm297_vm2 = vcmask 7168  }
   0x2   :  { %v25_v2 = vld [vmem:[%s602_s1] sm:$0xff]  ;;  %v374_v5 = vpack.c.bf16 %v42_v1, %v41_v0  ;;  %v26_v6 = vld [vmem:[%s602_s1 + $0x8] sm:$0xff]  ;;  %v44_v8 = vld [vmem:[%s602_s1 + $0x98] sm:$0xff]  ;;  %v10_v1 = vstv %s605_s4 }
   0x3   :  { %v376_v9 = vpack.c.bf16 %v26_v6, %v25_v2  ;;  %v378_v10 = vpack.c.bf16 %v44_v8, %v43_v7  ;;  %v27_v11 = vld [vmem:[%s602_s1 + $0x10] sm:$0xff]  ;;  %v28_v12 = vld [vmem:[%s602_s1 + $0x18] sm:$0xff]  ;;  %v45_v13 = vld [vmem:[%s602_s1 + $0xa0] sm:$0xff]  ;;  %11 = vst [vmem:[#allocation2] sm:$0x1] %v10_v1 }
   0x4   :  { %375 = vmatprep.subr.bf16.mxu0 %v374_v5  ;;  %v46_v14 = vld [vmem:[%s602_s1 + $0xa8] sm:$0xff]  ;;  %v380_v15 = vpack.c.bf16 %v28_v12, %v27_v11  ;;  %v29_v17 = vld [vmem:[%s602_s1 + $0x20] sm:$0xff]  ;;  %v47_v19 = vld [vmem:[%s602_s1 + $0xb0] sm:$0xff] }
   0x5   :  { %377 = vmatpush3.bf16.msra.mxu0 %v376_v9  ;;  %v382_v16 = vpack.c.bf16 %v46_v14, %v45_v13  ;;  %v30_v18 = vld [vmem:[%s602_s1 + $0x28] sm:$0xff]  ;;  %v48_v20 = vld [vmem:[%s602_s1 + $0xb8] sm:$0xff]  ;;  %v31_v23 = vld [vmem:[%s602_s1 + $0x30] sm:$0xff] }
   0x6   :  { %379 = vmatprep.subr.bf16.mxu0 %v378_v10  ;;  %v384_v21 = vpack.c.bf16 %v30_v18, %v29_v17  ;;  %v386_v22 = vpack.c.bf16 %v48_v20, %v47_v19  ;;  %v32_v24 = vld [vmem:[%s602_s1 + $0x38] sm:$0xff]  ;;  %v49_v25 = vld [vmem:[%s602_s1 + $0xc0] sm:$0xff]  ;;  %v50_v26 = vld [vmem:[%s602_s1 + $0xc8] sm:$0xff] }
   0x7   :  { %v57_v27 = vld [vmem:[%s602_s1 + $0x100] sm:$0xff]  ;;  %v58_v28 = vld [vmem:[%s602_s1 + $0x108] sm:$0xff]  ;;  %v388_v30 = vpack.c.bf16 %v32_v24, %v31_v23  ;;  %v59_v32 = vld [vmem:[%s602_s1 + $0x110] sm:$0xff]  ;;  %v390_v34 = vpack.c.bf16 %v50_v26, %v49_v25 }
   0x8   :  { %v23_v29 = vld [vmem:[%s603_s0 + $0x8] sm:$0xff]  ;;  %v407_v31 = vpack.c.bf16 %v58_v28, %v57_v27  ;;  %v60_v33 = vld [vmem:[%s602_s1 + $0x118] sm:$0xff]  ;;  %v33_v35 = vld [vmem:[%s602_s1 + $0x40] sm:$0xff] }
   0x9   :  { %381 = vmatpush3.bf16.msra.mxu0 %v380_v15  ;;  %136 = vmatprep.mubr.f32.mxu0 %v23_v29  ;;  %v34_v36 = vld [vmem:[%s602_s1 + $0x48] sm:$0xff]  ;;  %v51_v37 = vld [vmem:[%s602_s1 + $0xd0] sm:$0xff]  ;;  %v52_v38 = vld [vmem:[%s602_s1 + $0xd8] sm:$0xff]  ;;  %v410_v39 = vpack.c.bf16 %v60_v33, %v59_v32 }
   0xa   :  { %383 = vmatprep.subr.bf16.mxu0 %v382_v16  ;;  %408 = vmatpush3.bf16.msra.mxu1 %v407_v31  ;;  %v392_v40 = vpack.c.bf16 %v34_v36, %v33_v35  ;;  %v394_v41 = vpack.c.bf16 %v52_v38, %v51_v37  ;;  %v35_v42 = vld [vmem:[%s602_s1 + $0x50] sm:$0xff]  ;;  %v36_v43 = vld [vmem:[%s602_s1 + $0x58] sm:$0xff]  ;;  %v53_v44 = vld [vmem:[%s602_s1 + $0xe0] sm:$0xff] }
   0xb   :  { %409 = vmatprep.subr.bf16.mxu1 %v421_v3  ;;  %v54_v45 = vld [vmem:[%s602_s1 + $0xe8] sm:$0xff]  ;;  %v24_v46 = vld [vmem:[%s603_s0 + $0x10] sm:$0xff]  ;;  %v396_v47 = vpack.c.bf16 %v36_v43, %v35_v42  ;;  %v37_v49 = vld [vmem:[%s602_s1 + $0x60] sm:$0xff] }
   0xc   :  { %v398_v48 = vpack.c.bf16 %v54_v45, %v53_v44  ;;  %v38_v50 = vld [vmem:[%s602_s1 + $0x68] sm:$0xff]  ;;  %v55_v51 = vld [vmem:[%s602_s1 + $0xf0] sm:$0xff]  ;;  %v56_v52 = vld [vmem:[%s602_s1 + $0xf8] sm:$0xff] }
   0xd   :  { %385 = vmatpush3.bf16.msra.mxu0 %v384_v21  ;;  %v400_v53 = vpack.c.bf16 %v38_v50, %v37_v49  ;;  %v402_v54 = vpack.c.bf16 %v56_v52, %v55_v51  ;;  %v39_v55 = vld [vmem:[%s602_s1 + $0x70] sm:$0xff]  ;;  %v40_v56 = vld [vmem:[%s602_s1 + $0x78] sm:$0xff]  ;;  %v22_v58 = vld [vmem:[%s603_s0] sm:$0xff] }
   0xe   :  { %387 = vmatprep.subr.bf16.mxu0 %v386_v22  ;;  %411 = vmatpush3.bf16.msra.mxu1 %v410_v39  ;;  %v404_v57 = vpack.c.bf16 %v40_v56, %v39_v55  ;;  %v213_v59 = vld [vmem:[%s604_s3] sm:$0xff]  ;;  %v214_v60 = vld [vmem:[%s604_s3 + $0x8] sm:$0xff]  ;;  %v215_v62 = vld [vmem:[%s604_s3 + $0x10] sm:$0xff] }
   0xf   :  { %412 = vmatprep.subr.bf16.mxu1 %v421_v3  ;;  %v413_v61 = vpack.c.bf16 %v214_v60, %v213_v59  ;;  %v216_v63 = vld [vmem:[%s604_s3 + $0x18] sm:$0xff]  ;;  %v305_v11 = vld [vmem:[#allocation2] ss:$0 sm:$0xff] }
  0x10   :  { %v416_v0 = vpack.c.bf16 %v216_v63, %v215_v62 }
  0x11   :  { %389 = vmatpush3.bf16.msra.mxu0 %v388_v30  ;;  %361 = vmatmul.mubr.msk.f32.vlgmr.msra.gmra.mrb[0].mxu1 %vm68_vm1, %v24_v46 }
  0x12   :  { %391 = vmatprep.subr.bf16.mxu0 %v390_v34  ;;  %371 = vmatprep.mubr.msk.f32.mxu1 %vm422_vm0, %v423_v4 }
  0x13   :  { %414 = vmatpush3.bf16.msra.mxu1 %v413_v61 }
  0x14   :  { %415 = vmatprep.subr.bf16.mxu1 %v421_v3  ;;  %v303_v3 = vld [vmem:[%s606_s2] ss:$0 sm:$0xff] }
  0x15   :  { %393 = vmatpush3.bf16.msra.mxu0 %v392_v40 }
  0x16   :  { %395 = vmatprep.subr.bf16.mxu0 %v394_v41 }
  0x17   :  { %417 = vmatpush3.bf16.msra.mxu1 %v416_v0 }
  0x19   :  { %397 = vmatpush3.bf16.msra.mxu0 %v396_v47 }
  0x1a   :  { %399 = vmatprep.subr.bf16.mxu0 %v398_v48 }
  0x1d   :  { %401 = vmatpush3.bf16.msra.mxu0 %v400_v53 }
  0x1e   :  { %403 = vmatprep.subr.bf16.mxu0 %v402_v54 }
  0x21   :  { %405 = vmatpush3.bf16.msra.mxu0 %v404_v57 }
  0x24   :  { %137 = vmatmul.mubr.f32.vlgmr.msra.gmra.mrb[0].mxu0 %v22_v58 }
  0xe4   :  { %v208_v2 = vpop.f32.mrb[0].mxu1 }
  0xe5   :  { %v362_v4 = vpop.f32.mrb[1].mxu1 }
  0xf7   :  { %v339_v5 = vpop.f32.mrb[0].mxu0 }
  0xf8   :  { %v340_v6 = vpop.f32.mrb[1].mxu0 }
  0xf9   :  { %v341_v7 = vadd.f32 %v340_v6, %v339_v5 }
  0xfb   :  { %v139_v8 = vadd.f32 %v341_v7, %v303_v3 }
  0xfd   :  { %v209_v9 = vadd.f32 %v208_v2, %v139_v8 }
  0xff   :  { %v212_v10 = vmax.f32 %v209_v9, 0.0 }
 0x101   :  { %372 = vmatmul.mubr.msk.f32.vlgmr.msra.gmra.mrb[2].mxu1 %vm68_vm1, %v212_v10 }
 0x1d4   :  { %v293_v12 = vpop.f32.mrb[2].mxu1 }
 0x1d5   :  { %v294_v13 = vadd.f32 %v305_v11, %v293_v12  ;;  %v373_v14 = vpop.f32.mrb[3].mxu1 }
 0x1d7   :  { %298 = vst.msk [vmem:[%s607_s5] sm:$0xff] %vm297_vm2, %v294_v13 }

</bundles_post_ra>
